<compile_context>
chip_gen: v6e
topology: v6e:2x2x1
jax: 0.10.0
libtpu: 0.0.40
codegen_flags: <defaults>
</compile_context>

<pallas_src>
import jax
import jax.numpy as jnp
from jax.experimental import pallas as pl
from jax.experimental.pallas import tpu as pltpu

X_DIM = 784
LATENT = 4
ENC_DIMS = [(X_DIM, 256), (256, 128), (128, 32), (32, 2 * LATENT)]
DEC_DIMS = [(LATENT, 32), (32, 128), (128, 256), (256, X_DIM)]


def _linear(h, w_ref, b_ref):
    return jnp.dot(h, w_ref[...], preferred_element_type=jnp.float32) + b_ref[...]


def vae_fwd_kernel(
    x_ref, eps_ref,
    ew1, eb1, ew2, eb2, ew3, eb3, ew4, eb4,
    dw1, db1, dw2, db2, dw3, db3, dw4, db4,
    out_ref,
):
    # ---- Encoder: 784 -> 256 -> 128 -> 32 -> 8 (ReLU, ReLU, ReLU, identity)
    h = jnp.maximum(_linear(x_ref[...], ew1, eb1), 0.0)
    h = jnp.maximum(_linear(h, ew2, eb2), 0.0)
    h = jnp.maximum(_linear(h, ew3, eb3), 0.0)
    enc = _linear(h, ew4, eb4)                      # (TB, 8)

    # ---- Reparameterization sample: z = mu + exp(logvar / 2) * eps
    mu = enc[:, :LATENT]                            # (TB, 4)
    logvar = enc[:, LATENT:]                        # (TB, 4)
    z = mu + jnp.exp(logvar * 0.5) * eps_ref[...]   # (TB, 4)

    # ---- Decoder: 4 -> 32 -> 128 -> 256 -> 784 (ReLU, ReLU, ReLU, sigmoid)
    h = jnp.maximum(_linear(z, dw1, db1), 0.0)
    h = jnp.maximum(_linear(h, dw2, db2), 0.0)
    h = jnp.maximum(_linear(h, dw3, db3), 0.0)
    logits = _linear(h, dw4, db4)                   # (TB, 784)
    # sigmoid = 1 / (1 + exp(-x)): exp on EUP, approx reciprocal on EUP
    # (frees VALU slots vs. an f32 divide over the whole tile).
    out_ref[...] = pl.reciprocal(1.0 + jnp.exp(-logits), approx=True)


def autoencoder_forward(x, eps, params, *, tb=128):
    """x: (B, 784) f32, eps: (B, 4) f32, params: flat list of 16 arrays."""
    B = x.shape[0]
    nb = pl.cdiv(B, tb)
    Bp = nb * tb
    if Bp != B:
        x = jnp.pad(x, ((0, Bp - B), (0, 0)))
        eps = jnp.pad(eps, ((0, Bp - B), (0, 0)))

    # Batch-tiled activations: pipelined (double-buffered) across the grid.
    x_spec = pl.BlockSpec((tb, X_DIM), lambda i: (i, 0))
    eps_spec = pl.BlockSpec((tb, LATENT), lambda i: (i, 0))
    out_spec = pl.BlockSpec((tb, X_DIM), lambda i: (i, 0))
    # Weights/biases: full block + constant index_map -> stay VMEM-resident.
    w_specs = [pl.BlockSpec(p.shape, lambda i: (0, 0)) for p in params]

    flops = 2 * Bp * sum(fi * fo for fi, fo in ENC_DIMS + DEC_DIMS)
    weight_bytes = sum(int(p.size) * p.dtype.itemsize for p in params)
    bytes_accessed = weight_bytes + Bp * (X_DIM + LATENT + X_DIM) * 4
    transcendentals = Bp * (LATENT + 2 * X_DIM)  # reparam exp + sigmoid exp/rcp

    out = pl.pallas_call(
        vae_fwd_kernel,
        out_shape=jax.ShapeDtypeStruct((Bp, X_DIM), jnp.float32),
        grid=(nb,),
        in_specs=[x_spec, eps_spec] + w_specs,
        out_specs=out_spec,
        compiler_params=pltpu.CompilerParams(
            dimension_semantics=("parallel",),
            vmem_limit_bytes=16 << 20,
        ),
        cost_estimate=pl.CostEstimate(
            flops=flops,
            transcendentals=transcendentals,
            bytes_accessed=bytes_accessed,
        ),
    )(x, eps, *params)
    return out[:B]


def init_params(key):
    """Deterministic parameter init. Weights stored (in, out); biases (1, out)."""
    # TODO(synk): optionally cast weights to bf16 at this boundary to halve
    # HBM weight traffic (requires loosening the correctness tolerance).
    params = []
    for (fan_in, fan_out) in ENC_DIMS + DEC_DIMS:
        key, kw, kb = jax.random.split(key, 3)
        bound = 1.0 / jnp.sqrt(fan_in)
        w = jax.random.uniform(kw, (fan_in, fan_out), jnp.float32, -bound, bound)
        b = jax.random.uniform(kb, (1, fan_out), jnp.float32, -bound, bound)
        params += [w, b]
    return params


def reference_forward(x, eps, params):
    (ew1, eb1, ew2, eb2, ew3, eb3, ew4, eb4,
     dw1, db1, dw2, db2, dw3, db3, dw4, db4) = params
    h = jax.nn.relu(x @ ew1 + eb1)
    h = jax.nn.relu(h @ ew2 + eb2)
    h = jax.nn.relu(h @ ew3 + eb3)
    enc = h @ ew4 + eb4
    z = enc[:, :LATENT] + jnp.exp(enc[:, LATENT:] / 2.0) * eps
    h = jax.nn.relu(z @ dw1 + db1)
    h = jax.nn.relu(h @ dw2 + db2)
    h = jax.nn.relu(h @ dw3 + db3)
    return jax.nn.sigmoid(h @ dw4 + db4)


if __name__ == "__main__":
    key = jax.random.PRNGKey(0)
    k_param, k_x, k_eps = jax.random.split(key, 3)

    B = 8
    params = init_params(k_param)
    x = jax.random.uniform(k_x, (B, X_DIM), jnp.float32)       # MNIST-like in [0,1]
    eps = jax.random.normal(k_eps, (B, LATENT), jnp.float32)   # reparam noise

    out = autoencoder_forward(x, eps, params)
    out = jax.block_until_ready(out)

    ref = reference_forward(x, eps, params)
    assert out.shape == (B, X_DIM)
    # Tolerance loosened slightly vs 1e-5 because the output sigmoid uses the
    # EUP approximate reciprocal (pl.reciprocal(approx=True)).
    assert jnp.allclose(out, ref, atol=2e-3, rtol=2e-3)

    print("KERNEL_OK")
</pallas_src>

<mosaic_0001>
module attributes {stable_mosaic.version = 11 : i64} {
  func.func @vae_fwd_kernel(%arg0: i32, %arg1: memref<128x784xf32, #tpu.memory_space<vmem>>, %arg2: memref<128x4xf32, #tpu.memory_space<vmem>>, %arg3: memref<784x256xf32, #tpu.memory_space<vmem>>, %arg4: memref<1x256xf32, #tpu.memory_space<vmem>>, %arg5: memref<256x128xf32, #tpu.memory_space<vmem>>, %arg6: memref<1x128xf32, #tpu.memory_space<vmem>>, %arg7: memref<128x32xf32, #tpu.memory_space<vmem>>, %arg8: memref<1x32xf32, #tpu.memory_space<vmem>>, %arg9: memref<32x8xf32, #tpu.memory_space<vmem>>, %arg10: memref<1x8xf32, #tpu.memory_space<vmem>>, %arg11: memref<4x32xf32, #tpu.memory_space<vmem>>, %arg12: memref<1x32xf32, #tpu.memory_space<vmem>>, %arg13: memref<32x128xf32, #tpu.memory_space<vmem>>, %arg14: memref<1x128xf32, #tpu.memory_space<vmem>>, %arg15: memref<128x256xf32, #tpu.memory_space<vmem>>, %arg16: memref<1x256xf32, #tpu.memory_space<vmem>>, %arg17: memref<256x784xf32, #tpu.memory_space<vmem>>, %arg18: memref<1x784xf32, #tpu.memory_space<vmem>>, %arg19: memref<128x784xf32, #tpu.memory_space<vmem>>) attributes {dimension_semantics = [#tpu.dimension_semantics<parallel>], iteration_bounds = array<i64: 1>, scalar_prefetch = 0 : i64, scratch_operands = 0 : i64, tpu.core_type = #tpu.core_type<tc>, window_params = [{transform_indices = @transform_0, window_bounds = array<i64: 128, 784>}, {transform_indices = @transform_1, window_bounds = array<i64: 128, 4>}, {pipeline_mode = #tpu.pipeline_mode<synchronous>, transform_indices = @transform_2, window_bounds = array<i64: 784, 256>}, {pipeline_mode = #tpu.pipeline_mode<synchronous>, transform_indices = @transform_3, window_bounds = array<i64: 1, 256>}, {pipeline_mode = #tpu.pipeline_mode<synchronous>, transform_indices = @transform_4, window_bounds = array<i64: 256, 128>}, {pipeline_mode = #tpu.pipeline_mode<synchronous>, transform_indices = @transform_5, window_bounds = array<i64: 1, 128>}, {pipeline_mode = #tpu.pipeline_mode<synchronous>, transform_indices = @transform_6, window_bounds = array<i64: 128, 32>}, {pipeline_mode = #tpu.pipeline_mode<synchronous>, transform_indices = @transform_7, window_bounds = array<i64: 1, 32>}, {pipeline_mode = #tpu.pipeline_mode<synchronous>, transform_indices = @transform_8, window_bounds = array<i64: 32, 8>}, {pipeline_mode = #tpu.pipeline_mode<synchronous>, transform_indices = @transform_9, window_bounds = array<i64: 1, 8>}, {pipeline_mode = #tpu.pipeline_mode<synchronous>, transform_indices = @transform_10, window_bounds = array<i64: 4, 32>}, {pipeline_mode = #tpu.pipeline_mode<synchronous>, transform_indices = @transform_11, window_bounds = array<i64: 1, 32>}, {pipeline_mode = #tpu.pipeline_mode<synchronous>, transform_indices = @transform_12, window_bounds = array<i64: 32, 128>}, {pipeline_mode = #tpu.pipeline_mode<synchronous>, transform_indices = @transform_13, window_bounds = array<i64: 1, 128>}, {pipeline_mode = #tpu.pipeline_mode<synchronous>, transform_indices = @transform_14, window_bounds = array<i64: 128, 256>}, {pipeline_mode = #tpu.pipeline_mode<synchronous>, transform_indices = @transform_15, window_bounds = array<i64: 1, 256>}, {pipeline_mode = #tpu.pipeline_mode<synchronous>, transform_indices = @transform_16, window_bounds = array<i64: 256, 784>}, {pipeline_mode = #tpu.pipeline_mode<synchronous>, transform_indices = @transform_17, window_bounds = array<i64: 1, 784>}, {transform_indices = @transform_18, window_bounds = array<i64: 128, 784>}]} {
    %c0 = arith.constant 0 : index
    %c0_0 = arith.constant 0 : index
    %0 = vector.load %arg1[%c0, %c0_0] : memref<128x784xf32, #tpu.memory_space<vmem>>, vector<128x784xf32>
    %c0_1 = arith.constant 0 : index
    %c0_2 = arith.constant 0 : index
    %1 = vector.load %arg3[%c0_1, %c0_2] : memref<784x256xf32, #tpu.memory_space<vmem>>, vector<784x256xf32>
    %cst = arith.constant dense<0.000000e+00> : vector<128x256xf32>
    %2 = tpu.matmul %0, %1, %cst {dimension_numbers = #tpu.dot_dimension_numbers<[1], [0], [0], [1], [0, 0, 1, 1], [], []>} : vector<128x784xf32>, vector<784x256xf32>, vector<128x256xf32> -> vector<128x256xf32>
    %c0_3 = arith.constant 0 : index
    %c0_4 = arith.constant 0 : index
    %3 = vector.load %arg4[%c0_3, %c0_4] : memref<1x256xf32, #tpu.memory_space<vmem>>, vector<1x256xf32>
    %4 = vector.broadcast %3 : vector<1x256xf32> to vector<128x256xf32>
    %5 = arith.addf %2, %4 : vector<128x256xf32>
    %cst_5 = arith.constant 0.000000e+00 : f32
    %6 = vector.broadcast %cst_5 : f32 to vector<128x256xf32>
    %7 = arith.maximumf %5, %6 : vector<128x256xf32>
    %c0_6 = arith.constant 0 : index
    %c0_7 = arith.constant 0 : index
    %8 = vector.load %arg5[%c0_6, %c0_7] : memref<256x128xf32, #tpu.memory_space<vmem>>, vector<256x128xf32>
    %cst_8 = arith.constant dense<0.000000e+00> : vector<128x128xf32>
    %9 = tpu.matmul %7, %8, %cst_8 {dimension_numbers = #tpu.dot_dimension_numbers<[1], [0], [0], [1], [0, 0, 1, 1], [], []>} : vector<128x256xf32>, vector<256x128xf32>, vector<128x128xf32> -> vector<128x128xf32>
    %c0_9 = arith.constant 0 : index
    %c0_10 = arith.constant 0 : index
    %10 = vector.load %arg6[%c0_9, %c0_10] : memref<1x128xf32, #tpu.memory_space<vmem>>, vector<1x128xf32>
    %11 = vector.broadcast %10 : vector<1x128xf32> to vector<128x128xf32>
    %12 = arith.addf %9, %11 : vector<128x128xf32>
    %cst_11 = arith.constant 0.000000e+00 : f32
    %13 = vector.broadcast %cst_11 : f32 to vector<128x128xf32>
    %14 = arith.maximumf %12, %13 : vector<128x128xf32>
    %c0_12 = arith.constant 0 : index
    %c0_13 = arith.constant 0 : index
    %15 = vector.load %arg7[%c0_12, %c0_13] : memref<128x32xf32, #tpu.memory_space<vmem>>, vector<128x32xf32>
    %cst_14 = arith.constant dense<0.000000e+00> : vector<128x32xf32>
    %16 = tpu.matmul %14, %15, %cst_14 {dimension_numbers = #tpu.dot_dimension_numbers<[1], [0], [0], [1], [0, 0, 1, 1], [], []>} : vector<128x128xf32>, vector<128x32xf32>, vector<128x32xf32> -> vector<128x32xf32>
    %c0_15 = arith.constant 0 : index
    %c0_16 = arith.constant 0 : index
    %17 = vector.load %arg8[%c0_15, %c0_16] : memref<1x32xf32, #tpu.memory_space<vmem>>, vector<1x32xf32>
    %18 = vector.broadcast %17 : vector<1x32xf32> to vector<128x32xf32>
    %19 = arith.addf %16, %18 : vector<128x32xf32>
    %cst_17 = arith.constant 0.000000e+00 : f32
    %20 = vector.broadcast %cst_17 : f32 to vector<128x32xf32>
    %21 = arith.maximumf %19, %20 : vector<128x32xf32>
    %c0_18 = arith.constant 0 : index
    %c0_19 = arith.constant 0 : index
    %22 = vector.load %arg9[%c0_18, %c0_19] : memref<32x8xf32, #tpu.memory_space<vmem>>, vector<32x8xf32>
    %cst_20 = arith.constant dense<0.000000e+00> : vector<128x8xf32>
    %23 = tpu.matmul %21, %22, %cst_20 {dimension_numbers = #tpu.dot_dimension_numbers<[1], [0], [0], [1], [0, 0, 1, 1], [], []>} : vector<128x32xf32>, vector<32x8xf32>, vector<128x8xf32> -> vector<128x8xf32>
    %c0_21 = arith.constant 0 : index
    %c0_22 = arith.constant 0 : index
    %24 = vector.load %arg10[%c0_21, %c0_22] : memref<1x8xf32, #tpu.memory_space<vmem>>, vector<1x8xf32>
    %25 = vector.broadcast %24 : vector<1x8xf32> to vector<128x8xf32>
    %26 = arith.addf %23, %25 : vector<128x8xf32>
    %27 = vector.extract_strided_slice %26 {offsets = [0, 0], sizes = [128, 4], strides = [1, 1]} : vector<128x8xf32> to vector<128x4xf32>
    %28 = vector.extract_strided_slice %26 {offsets = [0, 4], sizes = [128, 4], strides = [1, 1]} : vector<128x8xf32> to vector<128x4xf32>
    %cst_23 = arith.constant 5.000000e-01 : f32
    %29 = vector.broadcast %cst_23 : f32 to vector<128x4xf32>
    %30 = arith.mulf %28, %29 : vector<128x4xf32>
    %31 = math.exp %30 : vector<128x4xf32>
    %c0_24 = arith.constant 0 : index
    %c0_25 = arith.constant 0 : index
    %32 = vector.load %arg2[%c0_24, %c0_25] : memref<128x4xf32, #tpu.memory_space<vmem>>, vector<128x4xf32>
    %33 = arith.mulf %31, %32 : vector<128x4xf32>
    %34 = arith.addf %27, %33 : vector<128x4xf32>
    %c0_26 = arith.constant 0 : index
    %c0_27 = arith.constant 0 : index
    %35 = vector.load %arg11[%c0_26, %c0_27] : memref<4x32xf32, #tpu.memory_space<vmem>>, vector<4x32xf32>
    %cst_28 = arith.constant dense<0.000000e+00> : vector<128x32xf32>
    %36 = tpu.matmul %34, %35, %cst_28 {dimension_numbers = #tpu.dot_dimension_numbers<[1], [0], [0], [1], [0, 0, 1, 1], [], []>} : vector<128x4xf32>, vector<4x32xf32>, vector<128x32xf32> -> vector<128x32xf32>
    %c0_29 = arith.constant 0 : index
    %c0_30 = arith.constant 0 : index
    %37 = vector.load %arg12[%c0_29, %c0_30] : memref<1x32xf32, #tpu.memory_space<vmem>>, vector<1x32xf32>
    %38 = vector.broadcast %37 : vector<1x32xf32> to vector<128x32xf32>
    %39 = arith.addf %36, %38 : vector<128x32xf32>
    %cst_31 = arith.constant 0.000000e+00 : f32
    %40 = vector.broadcast %cst_31 : f32 to vector<128x32xf32>
    %41 = arith.maximumf %39, %40 : vector<128x32xf32>
    %c0_32 = arith.constant 0 : index
    %c0_33 = arith.constant 0 : index
    %42 = vector.load %arg13[%c0_32, %c0_33] : memref<32x128xf32, #tpu.memory_space<vmem>>, vector<32x128xf32>
    %cst_34 = arith.constant dense<0.000000e+00> : vector<128x128xf32>
    %43 = tpu.matmul %41, %42, %cst_34 {dimension_numbers = #tpu.dot_dimension_numbers<[1], [0], [0], [1], [0, 0, 1, 1], [], []>} : vector<128x32xf32>, vector<32x128xf32>, vector<128x128xf32> -> vector<128x128xf32>
    %c0_35 = arith.constant 0 : index
    %c0_36 = arith.constant 0 : index
    %44 = vector.load %arg14[%c0_35, %c0_36] : memref<1x128xf32, #tpu.memory_space<vmem>>, vector<1x128xf32>
    %45 = vector.broadcast %44 : vector<1x128xf32> to vector<128x128xf32>
    %46 = arith.addf %43, %45 : vector<128x128xf32>
    %cst_37 = arith.constant 0.000000e+00 : f32
    %47 = vector.broadcast %cst_37 : f32 to vector<128x128xf32>
    %48 = arith.maximumf %46, %47 : vector<128x128xf32>
    %c0_38 = arith.constant 0 : index
    %c0_39 = arith.constant 0 : index
    %49 = vector.load %arg15[%c0_38, %c0_39] : memref<128x256xf32, #tpu.memory_space<vmem>>, vector<128x256xf32>
    %cst_40 = arith.constant dense<0.000000e+00> : vector<128x256xf32>
    %50 = tpu.matmul %48, %49, %cst_40 {dimension_numbers = #tpu.dot_dimension_numbers<[1], [0], [0], [1], [0, 0, 1, 1], [], []>} : vector<128x128xf32>, vector<128x256xf32>, vector<128x256xf32> -> vector<128x256xf32>
    %c0_41 = arith.constant 0 : index
    %c0_42 = arith.constant 0 : index
    %51 = vector.load %arg16[%c0_41, %c0_42] : memref<1x256xf32, #tpu.memory_space<vmem>>, vector<1x256xf32>
    %52 = vector.broadcast %51 : vector<1x256xf32> to vector<128x256xf32>
    %53 = arith.addf %50, %52 : vector<128x256xf32>
    %cst_43 = arith.constant 0.000000e+00 : f32
    %54 = vector.broadcast %cst_43 : f32 to vector<128x256xf32>
    %55 = arith.maximumf %53, %54 : vector<128x256xf32>
    %c0_44 = arith.constant 0 : index
    %c0_45 = arith.constant 0 : index
    %56 = vector.load %arg17[%c0_44, %c0_45] : memref<256x784xf32, #tpu.memory_space<vmem>>, vector<256x784xf32>
    %cst_46 = arith.constant dense<0.000000e+00> : vector<128x784xf32>
    %57 = tpu.matmul %55, %56, %cst_46 {dimension_numbers = #tpu.dot_dimension_numbers<[1], [0], [0], [1], [0, 0, 1, 1], [], []>} : vector<128x256xf32>, vector<256x784xf32>, vector<128x784xf32> -> vector<128x784xf32>
    %c0_47 = arith.constant 0 : index
    %c0_48 = arith.constant 0 : index
    %58 = vector.load %arg18[%c0_47, %c0_48] : memref<1x784xf32, #tpu.memory_space<vmem>>, vector<1x784xf32>
    %59 = vector.broadcast %58 : vector<1x784xf32> to vector<128x784xf32>
    %60 = arith.addf %57, %59 : vector<128x784xf32>
    %cst_49 = arith.constant 0.000000e+00 : f32
    %61 = vector.broadcast %cst_49 : f32 to vector<128x784xf32>
    %62 = arith.subf %61, %60 : vector<128x784xf32>
    %63 = math.exp %62 : vector<128x784xf32>
    %cst_50 = arith.constant 1.000000e+00 : f32
    %64 = vector.broadcast %cst_50 : f32 to vector<128x784xf32>
    %65 = arith.addf %64, %63 : vector<128x784xf32>
    %66 = tpu.reciprocal %65 {approx = true} : vector<128x784xf32> -> vector<128x784xf32>
    %c0_51 = arith.constant 0 : index
    %c0_52 = arith.constant 0 : index
    %67 = vector.load %arg19[%c0_51, %c0_52] : memref<128x784xf32, #tpu.memory_space<vmem>>, vector<128x784xf32>
    tpu.vector_store %arg19[%c0_51, %c0_52], %66 {strides = array<i32>} : memref<128x784xf32, #tpu.memory_space<vmem>>, vector<128x784xf32>,
    return
  }
  func.func @transform_0(%arg0: i32) -> (i32, i32) {
    %c0_i32 = arith.constant 0 : i32
    %c0_i32_0 = arith.constant 0 : i32
    return %arg0, %c0_i32 : i32, i32
  }
  func.func @transform_1(%arg0: i32) -> (i32, i32) {
    %c0_i32 = arith.constant 0 : i32
    %c0_i32_0 = arith.constant 0 : i32
    return %arg0, %c0_i32 : i32, i32
  }
  func.func @transform_2(%arg0: i32) -> (i32, i32) {
    %c0_i32 = arith.constant 0 : i32
    %c0_i32_0 = arith.constant 0 : i32
    %c0_i32_1 = arith.constant 0 : i32
    return %c0_i32, %c0_i32_0 : i32, i32
  }
  func.func @transform_3(%arg0: i32) -> (i32, i32) {
    %c0_i32 = arith.constant 0 : i32
    %c0_i32_0 = arith.constant 0 : i32
    %c0_i32_1 = arith.constant 0 : i32
    return %c0_i32, %c0_i32_0 : i32, i32
  }
  func.func @transform_4(%arg0: i32) -> (i32, i32) {
    %c0_i32 = arith.constant 0 : i32
    %c0_i32_0 = arith.constant 0 : i32
    %c0_i32_1 = arith.constant 0 : i32
    return %c0_i32, %c0_i32_0 : i32, i32
  }
  func.func @transform_5(%arg0: i32) -> (i32, i32) {
    %c0_i32 = arith.constant 0 : i32
    %c0_i32_0 = arith.constant 0 : i32
    %c0_i32_1 = arith.constant 0 : i32
    return %c0_i32, %c0_i32_0 : i32, i32
  }
  func.func @transform_6(%arg0: i32) -> (i32, i32) {
    %c0_i32 = arith.constant 0 : i32
    %c0_i32_0 = arith.constant 0 : i32
    %c0_i32_1 = arith.constant 0 : i32
    return %c0_i32, %c0_i32_0 : i32, i32
  }
  func.func @transform_7(%arg0: i32) -> (i32, i32) {
    %c0_i32 = arith.constant 0 : i32
    %c0_i32_0 = arith.constant 0 : i32
    %c0_i32_1 = arith.constant 0 : i32
    return %c0_i32, %c0_i32_0 : i32, i32
  }
  func.func @transform_8(%arg0: i32) -> (i32, i32) {
    %c0_i32 = arith.constant 0 : i32
    %c0_i32_0 = arith.constant 0 : i32
    %c0_i32_1 = arith.constant 0 : i32
    return %c0_i32, %c0_i32_0 : i32, i32
  }
  func.func @transform_9(%arg0: i32) -> (i32, i32) {
    %c0_i32 = arith.constant 0 : i32
    %c0_i32_0 = arith.constant 0 : i32
    %c0_i32_1 = arith.constant 0 : i32
    return %c0_i32, %c0_i32_0 : i32, i32
  }
  func.func @transform_10(%arg0: i32) -> (i32, i32) {
    %c0_i32 = arith.constant 0 : i32
    %c0_i32_0 = arith.constant 0 : i32
    %c0_i32_1 = arith.constant 0 : i32
    return %c0_i32, %c0_i32_0 : i32, i32
  }
  func.func @transform_11(%arg0: i32) -> (i32, i32) {
    %c0_i32 = arith.constant 0 : i32
    %c0_i32_0 = arith.constant 0 : i32
    %c0_i32_1 = arith.constant 0 : i32
    return %c0_i32, %c0_i32_0 : i32, i32
  }
  func.func @transform_12(%arg0: i32) -> (i32, i32) {
    %c0_i32 = arith.constant 0 : i32
    %c0_i32_0 = arith.constant 0 : i32
    %c0_i32_1 = arith.constant 0 : i32
    return %c0_i32, %c0_i32_0 : i32, i32
  }
  func.func @transform_13(%arg0: i32) -> (i32, i32) {
    %c0_i32 = arith.constant 0 : i32
    %c0_i32_0 = arith.constant 0 : i32
    %c0_i32_1 = arith.constant 0 : i32
    return %c0_i32, %c0_i32_0 : i32, i32
  }
  func.func @transform_14(%arg0: i32) -> (i32, i32) {
    %c0_i32 = arith.constant 0 : i32
    %c0_i32_0 = arith.constant 0 : i32
    %c0_i32_1 = arith.constant 0 : i32
    return %c0_i32, %c0_i32_0 : i32, i32
  }
  func.func @transform_15(%arg0: i32) -> (i32, i32) {
    %c0_i32 = arith.constant 0 : i32
    %c0_i32_0 = arith.constant 0 : i32
    %c0_i32_1 = arith.constant 0 : i32
    return %c0_i32, %c0_i32_0 : i32, i32
  }
  func.func @transform_16(%arg0: i32) -> (i32, i32) {
    %c0_i32 = arith.constant 0 : i32
    %c0_i32_0 = arith.constant 0 : i32
    %c0_i32_1 = arith.constant 0 : i32
    return %c0_i32, %c0_i32_0 : i32, i32
  }
  func.func @transform_17(%arg0: i32) -> (i32, i32) {
    %c0_i32 = arith.constant 0 : i32
    %c0_i32_0 = arith.constant 0 : i32
    %c0_i32_1 = arith.constant 0 : i32
    return %c0_i32, %c0_i32_0 : i32, i32
  }
  func.func @transform_18(%arg0: i32) -> (i32, i32) {
    %c0_i32 = arith.constant 0 : i32
    %c0_i32_0 = arith.constant 0 : i32
    return %arg0, %c0_i32 : i32, i32
  }
}

</mosaic_0001>

<bundles_post_ra>
// kernel: tpu_custom_call.1
= control target key start
LH: loop header
LB: loop body
LE: loop exit
PB: predicated region body
PF: predicated region fallthrough
CT: control target
= control target key end

     0   :  { %vm379_vm0 = vcmask 130048   ;;  %vm1499_vm1 = vcmask 261120   ;;  %vm1974_vm2 = vcmask 1043456   ;;  %vm1925_vm3 = vcmask 31744   ;;  %s8645_s2 = inlined_call_operand.vmem [shape: f32[784,256], index: 2, kind: input, shape index: {}]   ;;  %s8646_s0 = inlined_call_operand.vmem [shape: f32[128,784], index: 0, kind: input, shape index: {}]   ;;  %s8647_s4 = inlined_call_operand.vmem [shape: f32[256,128], index: 4, kind: input, shape index: {}]   ;;  %s8648_s6 = inlined_call_operand.vmem [shape: f32[128,32], index: 6, kind: input, shape index: {}]   ;;  %s8649_s3 = inlined_call_operand.vmem [shape: f32[1,256], index: 3, kind: input, shape index: {}]   ;;  %s8650_s8 = inlined_call_operand.vmem [shape: f32[32,8], index: 8, kind: input, shape index: {}]   ;;  %s8651_s5 = inlined_call_operand.vmem [shape: f32[1,128], index: 5, kind: input, shape index: {}]   ;;  %s8652_s1 = inlined_call_operand.vmem [shape: f32[128,4], index: 1, kind: input, shape index: {}]   ;;  %s8653_s7 = inlined_call_operand.vmem [shape: f32[1,32], index: 7, kind: input, shape index: {}]   ;;  %s8654_s10 = inlined_call_operand.vmem [shape: f32[4,32], index: 10, kind: input, shape index: {}]   ;;  %s8655_s9 = inlined_call_operand.vmem [shape: f32[1,8], index: 9, kind: input, shape index: {}]   ;;  %s8656_s12 = inlined_call_operand.vmem [shape: f32[32,128], index: 12, kind: input, shape index: {}]   ;;  %s8657_s14 = inlined_call_operand.vmem [shape: f32[128,256], index: 14, kind: input, shape index: {}]   ;;  %s8658_s11 = inlined_call_operand.vmem [shape: f32[1,32], index: 11, kind: input, shape index: {}]   ;;  %s8659_s16 = inlined_call_operand.vmem [shape: f32[256,784], index: 16, kind: input, shape index: {}]   ;;  %s8660_s13 = inlined_call_operand.vmem [shape: f32[1,128], index: 13, kind: input, shape index: {}]   ;;  %s8661_s15 = inlined_call_operand.vmem [shape: f32[1,256], index: 15, kind: input, shape index: {}]   ;;  %s8662_s17 = inlined_call_operand.vmem [shape: f32[1,784], index: 17, kind: input, shape index: {}]   ;;  %s8663_s18 = inlined_call_operand.vmem [shape: f32[128,784], index: 18, kind: output, shape index: {}]  }
   0x1   :  { %8675 = sst [smem:[#allocation28_spill]] %s8645_s2 }
   0x2   :  { %8676 = sst [smem:[#allocation29_spill]] %s8646_s0 }
   0x3   :  { %8677 = sst [smem:[#allocation30_spill]] %s8647_s4  ;;  %s5175_s4 = smov 4  }
   0x4   :  { %s8678_s29 = sld [smem:[#allocation28_spill]] }
   0x5   :  { %s8679_s19 = sld [smem:[#allocation29_spill]] }
   0x6   :  { %s8680_s21 = sld [smem:[#allocation30_spill]] }
   0xa   :  { %v202_v0 = vld [vmem:[%s8678_s29 + $0xf8] sm:$0xff]  ;;  %v201_v2 = vld [vmem:[%s8678_s29 + $0xf0] sm:$0xff]  ;;  %v200_v4 = vld [vmem:[%s8678_s29 + $0xe8] sm:$0xff] }
   0xb   :  { %v266_v1 = vld [vmem:[%s8678_s29 + $0x2f8] sm:$0xff]  ;;  %428 = vmatprep.subr.mxu0 %v202_v0  ;;  %v265_v3 = vld [vmem:[%s8678_s29 + $0x2f0] sm:$0xff]  ;;  %v264_v5 = vld [vmem:[%s8678_s29 + $0x2e8] sm:$0xff] }
   0xc   :  { %589 = vmatprep.subr.mxu1 %v266_v1  ;;  %429 = vmatpush1.msra.mxu0 %v201_v2  ;;  %v199_v6 = vld [vmem:[%s8678_s29 + $0xe0] sm:$0xff]  ;;  %v198_v8 = vld [vmem:[%s8678_s29 + $0xd8] sm:$0xff]  ;;  %v197_v10 = vld [vmem:[%s8678_s29 + $0xd0] sm:$0xff] }
   0xd   :  { %590 = vmatpush1.msra.mxu1 %v265_v3  ;;  %v263_v7 = vld [vmem:[%s8678_s29 + $0x2e0] sm:$0xff]  ;;  %430 = vmatprep.subr.mxu0 %v200_v4  ;;  %v262_v9 = vld [vmem:[%s8678_s29 + $0x2d8] sm:$0xff]  ;;  %v261_v11 = vld [vmem:[%s8678_s29 + $0x2d0] sm:$0xff] }
   0xe   :  { %591 = vmatprep.subr.mxu1 %v264_v5  ;;  %431 = vmatpush1.msra.mxu0 %v199_v6  ;;  %v196_v12 = vld [vmem:[%s8678_s29 + $0xc8] sm:$0xff]  ;;  %v195_v14 = vld [vmem:[%s8678_s29 + $0xc0] sm:$0xff]  ;;  %v194_v16 = vld [vmem:[%s8678_s29 + $0xb8] sm:$0xff] }
   0xf   :  { %592 = vmatpush1.msra.mxu1 %v263_v7  ;;  %v260_v13 = vld [vmem:[%s8678_s29 + $0x2c8] sm:$0xff]  ;;  %432 = vmatprep.subr.mxu0 %v198_v8  ;;  %v259_v15 = vld [vmem:[%s8678_s29 + $0x2c0] sm:$0xff]  ;;  %v258_v17 = vld [vmem:[%s8678_s29 + $0x2b8] sm:$0xff] }
  0x10   :  { %593 = vmatprep.subr.mxu1 %v262_v9  ;;  %433 = vmatpush1.msra.mxu0 %v197_v10  ;;  %v193_v18 = vld [vmem:[%s8678_s29 + $0xb0] sm:$0xff]  ;;  %v192_v20 = vld [vmem:[%s8678_s29 + $0xa8] sm:$0xff]  ;;  %v191_v22 = vld [vmem:[%s8678_s29 + $0xa0] sm:$0xff] }
  0x11   :  { %594 = vmatpush1.msra.mxu1 %v261_v11  ;;  %434 = vmatprep.subr.mxu0 %v196_v12  ;;  %v257_v19 = vld [vmem:[%s8678_s29 + $0x2b0] sm:$0xff]  ;;  %v256_v21 = vld [vmem:[%s8678_s29 + $0x2a8] sm:$0xff]  ;;  %v255_v23 = vld [vmem:[%s8678_s29 + $0x2a0] sm:$0xff] }
  0x12   :  { %595 = vmatprep.subr.mxu1 %v260_v13  ;;  %435 = vmatpush1.msra.mxu0 %v195_v14  ;;  %v190_v24 = vld [vmem:[%s8678_s29 + $0x98] sm:$0xff]  ;;  %v189_v26 = vld [vmem:[%s8678_s29 + $0x90] sm:$0xff]  ;;  %v188_v28 = vld [vmem:[%s8678_s29 + $0x88] sm:$0xff] }
  0x13   :  { %596 = vmatpush1.msra.mxu1 %v259_v15  ;;  %436 = vmatprep.subr.mxu0 %v194_v16  ;;  %v254_v25 = vld [vmem:[%s8678_s29 + $0x298] sm:$0xff]  ;;  %v253_v27 = vld [vmem:[%s8678_s29 + $0x290] sm:$0xff]  ;;  %v252_v29 = vld [vmem:[%s8678_s29 + $0x288] sm:$0xff] }
  0x14   :  { %597 = vmatprep.subr.mxu1 %v258_v17  ;;  %437 = vmatpush1.msra.mxu0 %v193_v18  ;;  %v187_v30 = vld [vmem:[%s8678_s29 + $0x80] sm:$0xff]  ;;  %v186_v32 = vld [vmem:[%s8678_s29 + $0x78] sm:$0xff]  ;;  %v185_v34 = vld [vmem:[%s8678_s29 + $0x70] sm:$0xff] }
  0x15   :  { %598 = vmatpush1.msra.mxu1 %v257_v19  ;;  %438 = vmatprep.subr.mxu0 %v192_v20  ;;  %v251_v31 = vld [vmem:[%s8678_s29 + $0x280] sm:$0xff]  ;;  %v250_v33 = vld [vmem:[%s8678_s29 + $0x278] sm:$0xff]  ;;  %v249_v35 = vld [vmem:[%s8678_s29 + $0x270] sm:$0xff] }
  0x16   :  { %599 = vmatprep.subr.mxu1 %v256_v21  ;;  %439 = vmatpush1.msra.mxu0 %v191_v22  ;;  %v184_v36 = vld [vmem:[%s8678_s29 + $0x68] sm:$0xff]  ;;  %v183_v38 = vld [vmem:[%s8678_s29 + $0x60] sm:$0xff]  ;;  %v182_v40 = vld [vmem:[%s8678_s29 + $0x58] sm:$0xff] }
  0x17   :  { %600 = vmatpush1.msra.mxu1 %v255_v23  ;;  %440 = vmatprep.subr.mxu0 %v190_v24  ;;  %v248_v37 = vld [vmem:[%s8678_s29 + $0x268] sm:$0xff]  ;;  %v247_v39 = vld [vmem:[%s8678_s29 + $0x260] sm:$0xff]  ;;  %v246_v41 = vld [vmem:[%s8678_s29 + $0x258] sm:$0xff] }
  0x18   :  { %601 = vmatprep.subr.mxu1 %v254_v25  ;;  %441 = vmatpush1.msra.mxu0 %v189_v26  ;;  %v181_v42 = vld [vmem:[%s8678_s29 + $0x50] sm:$0xff]  ;;  %v180_v44 = vld [vmem:[%s8678_s29 + $0x48] sm:$0xff]  ;;  %v179_v46 = vld [vmem:[%s8678_s29 + $0x40] sm:$0xff] }
  0x19   :  { %602 = vmatpush1.msra.mxu1 %v253_v27  ;;  %442 = vmatprep.subr.mxu0 %v188_v28  ;;  %v245_v43 = vld [vmem:[%s8678_s29 + $0x250] sm:$0xff]  ;;  %v244_v45 = vld [vmem:[%s8678_s29 + $0x248] sm:$0xff]  ;;  %v243_v47 = vld [vmem:[%s8678_s29 + $0x240] sm:$0xff] }
  0x1a   :  { %603 = vmatprep.subr.mxu1 %v252_v29  ;;  %443 = vmatpush1.msra.mxu0 %v187_v30  ;;  %v178_v48 = vld [vmem:[%s8678_s29 + $0x38] sm:$0xff]  ;;  %v177_v50 = vld [vmem:[%s8678_s29 + $0x30] sm:$0xff]  ;;  %v176_v52 = vld [vmem:[%s8678_s29 + $0x28] sm:$0xff] }
  0x1b   :  { %604 = vmatpush1.msra.mxu1 %v251_v31  ;;  %444 = vmatprep.subr.mxu0 %v186_v32  ;;  %v242_v49 = vld [vmem:[%s8678_s29 + $0x238] sm:$0xff]  ;;  %v241_v51 = vld [vmem:[%s8678_s29 + $0x230] sm:$0xff]  ;;  %v240_v53 = vld [vmem:[%s8678_s29 + $0x228] sm:$0xff] }
  0x1c   :  { %605 = vmatprep.subr.mxu1 %v250_v33  ;;  %445 = vmatpush1.msra.mxu0 %v185_v34  ;;  %v175_v54 = vld [vmem:[%s8678_s29 + $0x20] sm:$0xff]  ;;  %v174_v56 = vld [vmem:[%s8678_s29 + $0x18] sm:$0xff]  ;;  %v173_v58 = vld [vmem:[%s8678_s29 + $0x10] sm:$0xff] }
  0x1d   :  { %606 = vmatpush1.msra.mxu1 %v249_v35  ;;  %446 = vmatprep.subr.mxu0 %v184_v36  ;;  %v239_v55 = vld [vmem:[%s8678_s29 + $0x220] sm:$0xff]  ;;  %v238_v57 = vld [vmem:[%s8678_s29 + $0x218] sm:$0xff]  ;;  %v237_v59 = vld [vmem:[%s8678_s29 + $0x210] sm:$0xff] }
  0x1e   :  { %607 = vmatprep.subr.mxu1 %v248_v37  ;;  %447 = vmatpush1.msra.mxu0 %v183_v38  ;;  %v172_v60 = vld [vmem:[%s8678_s29 + $0x8] sm:$0xff]  ;;  %v171_v62 = vld [vmem:[%s8678_s29] sm:$0xff]  ;;  %v234_v0 = vld [vmem:[%s8678_s29 + $0x1f8] sm:$0xff] }
  0x1f   :  { %608 = vmatpush1.msra.mxu1 %v247_v39  ;;  %448 = vmatprep.subr.mxu0 %v182_v40  ;;  %v236_v61 = vld [vmem:[%s8678_s29 + $0x208] sm:$0xff]  ;;  %v235_v63 = vld [vmem:[%s8678_s29 + $0x200] sm:$0xff]  ;;  %v298_v1 = vld [vmem:[%s8678_s29 + $0x3f8] sm:$0xff] }
  0x20   :  { %609 = vmatprep.subr.mxu1 %v246_v41  ;;  %449 = vmatpush1.msra.mxu0 %v181_v42  ;;  %v233_v2 = vld [vmem:[%s8678_s29 + $0x1f0] sm:$0xff]  ;;  %v232_v4 = vld [vmem:[%s8678_s29 + $0x1e8] sm:$0xff]  ;;  %v231_v6 = vld [vmem:[%s8678_s29 + $0x1e0] sm:$0xff] }
  0x21   :  { %610 = vmatpush1.msra.mxu1 %v245_v43  ;;  %450 = vmatprep.subr.mxu0 %v180_v44  ;;  %v297_v3 = vld [vmem:[%s8678_s29 + $0x3f0] sm:$0xff]  ;;  %v296_v5 = vld [vmem:[%s8678_s29 + $0x3e8] sm:$0xff]  ;;  %v295_v7 = vld [vmem:[%s8678_s29 + $0x3e0] sm:$0xff] }
  0x22   :  { %611 = vmatprep.subr.mxu1 %v244_v45  ;;  %451 = vmatpush1.msra.mxu0 %v179_v46  ;;  %v230_v8 = vld [vmem:[%s8678_s29 + $0x1d8] sm:$0xff]  ;;  %v229_v10 = vld [vmem:[%s8678_s29 + $0x1d0] sm:$0xff]  ;;  %v228_v12 = vld [vmem:[%s8678_s29 + $0x1c8] sm:$0xff] }
  0x23   :  { %612 = vmatpush1.msra.mxu1 %v243_v47  ;;  %452 = vmatprep.subr.mxu0 %v178_v48  ;;  %v294_v9 = vld [vmem:[%s8678_s29 + $0x3d8] sm:$0xff]  ;;  %v293_v11 = vld [vmem:[%s8678_s29 + $0x3d0] sm:$0xff]  ;;  %v292_v13 = vld [vmem:[%s8678_s29 + $0x3c8] sm:$0xff] }
  0x24   :  { %613 = vmatprep.subr.mxu1 %v242_v49  ;;  %453 = vmatpush1.msra.mxu0 %v177_v50  ;;  %v227_v14 = vld [vmem:[%s8678_s29 + $0x1c0] sm:$0xff]  ;;  %v226_v16 = vld [vmem:[%s8678_s29 + $0x1b8] sm:$0xff]  ;;  %v225_v18 = vld [vmem:[%s8678_s29 + $0x1b0] sm:$0xff] }
  0x25   :  { %614 = vmatpush1.msra.mxu1 %v241_v51  ;;  %454 = vmatprep.subr.mxu0 %v176_v52  ;;  %v291_v15 = vld [vmem:[%s8678_s29 + $0x3c0] sm:$0xff]  ;;  %v290_v17 = vld [vmem:[%s8678_s29 + $0x3b8] sm:$0xff]  ;;  %v289_v19 = vld [vmem:[%s8678_s29 + $0x3b0] sm:$0xff] }
  0x26   :  { %615 = vmatprep.subr.mxu1 %v240_v53  ;;  %455 = vmatpush1.msra.mxu0 %v175_v54  ;;  %v224_v20 = vld [vmem:[%s8678_s29 + $0x1a8] sm:$0xff]  ;;  %v223_v22 = vld [vmem:[%s8678_s29 + $0x1a0] sm:$0xff]  ;;  %v222_v24 = vld [vmem:[%s8678_s29 + $0x198] sm:$0xff] }
  0x27   :  { %616 = vmatpush1.msra.mxu1 %v239_v55  ;;  %456 = vmatprep.subr.mxu0 %v174_v56  ;;  %v288_v21 = vld [vmem:[%s8678_s29 + $0x3a8] sm:$0xff]  ;;  %v287_v23 = vld [vmem:[%s8678_s29 + $0x3a0] sm:$0xff]  ;;  %v286_v25 = vld [vmem:[%s8678_s29 + $0x398] sm:$0xff] }
  0x28   :  { %617 = vmatprep.subr.mxu1 %v238_v57  ;;  %457 = vmatpush1.msra.mxu0 %v173_v58  ;;  %v221_v26 = vld [vmem:[%s8678_s29 + $0x190] sm:$0xff]  ;;  %v220_v28 = vld [vmem:[%s8678_s29 + $0x188] sm:$0xff]  ;;  %v219_v30 = vld [vmem:[%s8678_s29 + $0x180] sm:$0xff] }
  0x29   :  { %618 = vmatpush1.msra.mxu1 %v237_v59  ;;  %458 = vmatprep.subr.mxu0 %v172_v60  ;;  %v285_v27 = vld [vmem:[%s8678_s29 + $0x390] sm:$0xff]  ;;  %v284_v29 = vld [vmem:[%s8678_s29 + $0x388] sm:$0xff]  ;;  %v283_v31 = vld [vmem:[%s8678_s29 + $0x380] sm:$0xff] }
  0x2a   :  { %619 = vmatprep.subr.mxu1 %v236_v61  ;;  %459 = vmatpush1.msra.mxu0 %v171_v62  ;;  %v218_v32 = vld [vmem:[%s8678_s29 + $0x178] sm:$0xff]  ;;  %v217_v34 = vld [vmem:[%s8678_s29 + $0x170] sm:$0xff]  ;;  %v216_v36 = vld [vmem:[%s8678_s29 + $0x168] sm:$0xff] }
  0x2b   :  { %620 = vmatpush1.msra.mxu1 %v235_v63  ;;  %460 = vmatprep.subr.mxu0 %v234_v0  ;;  %v282_v33 = vld [vmem:[%s8678_s29 + $0x378] sm:$0xff]  ;;  %v281_v35 = vld [vmem:[%s8678_s29 + $0x370] sm:$0xff]  ;;  %v280_v37 = vld [vmem:[%s8678_s29 + $0x368] sm:$0xff] }
  0x2c   :  { %621 = vmatprep.subr.mxu1 %v298_v1  ;;  %461 = vmatpush2.msra.mxu0 %v233_v2  ;;  %v215_v38 = vld [vmem:[%s8678_s29 + $0x160] sm:$0xff]  ;;  %v214_v40 = vld [vmem:[%s8678_s29 + $0x158] sm:$0xff]  ;;  %v213_v42 = vld [vmem:[%s8678_s29 + $0x150] sm:$0xff] }
  0x2d   :  { %622 = vmatpush2.msra.mxu1 %v297_v3  ;;  %462 = vmatprep.subr.mxu0 %v232_v4  ;;  %v279_v39 = vld [vmem:[%s8678_s29 + $0x360] sm:$0xff]  ;;  %v278_v41 = vld [vmem:[%s8678_s29 + $0x358] sm:$0xff]  ;;  %v277_v43 = vld [vmem:[%s8678_s29 + $0x350] sm:$0xff] }
  0x2e   :  { %623 = vmatprep.subr.mxu1 %v296_v5  ;;  %463 = vmatpush2.msra.mxu0 %v231_v6  ;;  %v212_v44 = vld [vmem:[%s8678_s29 + $0x148] sm:$0xff]  ;;  %v211_v46 = vld [vmem:[%s8678_s29 + $0x140] sm:$0xff]  ;;  %v210_v48 = vld [vmem:[%s8678_s29 + $0x138] sm:$0xff] }
  0x2f   :  { %624 = vmatpush2.msra.mxu1 %v295_v7  ;;  %464 = vmatprep.subr.mxu0 %v230_v8  ;;  %v276_v45 = vld [vmem:[%s8678_s29 + $0x348] sm:$0xff]  ;;  %v275_v47 = vld [vmem:[%s8678_s29 + $0x340] sm:$0xff]  ;;  %v274_v49 = vld [vmem:[%s8678_s29 + $0x338] sm:$0xff] }
  0x30   :  { %625 = vmatprep.subr.mxu1 %v294_v9  ;;  %465 = vmatpush2.msra.mxu0 %v229_v10  ;;  %v209_v50 = vld [vmem:[%s8678_s29 + $0x130] sm:$0xff]  ;;  %v208_v52 = vld [vmem:[%s8678_s29 + $0x128] sm:$0xff]  ;;  %v207_v54 = vld [vmem:[%s8678_s29 + $0x120] sm:$0xff] }
  0x31   :  { %626 = vmatpush2.msra.mxu1 %v293_v11  ;;  %466 = vmatprep.subr.mxu0 %v228_v12  ;;  %v273_v51 = vld [vmem:[%s8678_s29 + $0x330] sm:$0xff]  ;;  %v272_v53 = vld [vmem:[%s8678_s29 + $0x328] sm:$0xff]  ;;  %v271_v55 = vld [vmem:[%s8678_s29 + $0x320] sm:$0xff] }
  0x32   :  { %627 = vmatprep.subr.mxu1 %v292_v13  ;;  %467 = vmatpush2.msra.mxu0 %v227_v14  ;;  %v206_v56 = vld [vmem:[%s8678_s29 + $0x118] sm:$0xff]  ;;  %v205_v58 = vld [vmem:[%s8678_s29 + $0x110] sm:$0xff]  ;;  %v204_v60 = vld [vmem:[%s8678_s29 + $0x108] sm:$0xff] }
  0x33   :  { %628 = vmatpush2.msra.mxu1 %v291_v15  ;;  %468 = vmatprep.subr.mxu0 %v226_v16  ;;  %v270_v57 = vld [vmem:[%s8678_s29 + $0x318] sm:$0xff]  ;;  %v269_v59 = vld [vmem:[%s8678_s29 + $0x310] sm:$0xff]  ;;  %v268_v61 = vld [vmem:[%s8678_s29 + $0x308] sm:$0xff] }
  0x34   :  { %629 = vmatprep.subr.mxu1 %v290_v17  ;;  %469 = vmatpush2.msra.mxu0 %v225_v18  ;;  %v203_v62 = vld [vmem:[%s8678_s29 + $0x100] sm:$0xff]  ;;  %v60_v63 = vld [vmem:[%s8679_s19 + $0x8] sm:$0xff]  ;;  %v62_v1 = vld [vmem:[%s8679_s19 + $0x18] sm:$0xff] }
  0x35   :  { %630 = vmatpush2.msra.mxu1 %v289_v19  ;;  %470 = vmatprep.subr.mxu0 %v224_v20  ;;  %v267_v0 = vld [vmem:[%s8678_s29 + $0x300] sm:$0xff]  ;;  %v61_v3 = vld [vmem:[%s8679_s19 + $0x10] sm:$0xff]  ;;  %v330_v4 = vld [vmem:[%s8678_s29 + $0x4f8] sm:$0xff] }
  0x36   :  { %631 = vmatprep.subr.mxu1 %v288_v21  ;;  %471 = vmatpush2.msra.mxu0 %v223_v22  ;;  %v59_v2 = vld [vmem:[%s8679_s19] sm:$0xff]  ;;  %v329_v5 = vld [vmem:[%s8678_s29 + $0x4f0] sm:$0xff]  ;;  %v328_v6 = vld [vmem:[%s8678_s29 + $0x4e8] sm:$0xff] }
  0x37   :  { %632 = vmatpush2.msra.mxu1 %v287_v23  ;;  %472 = vmatprep.subr.mxu0 %v222_v24  ;;  %v67_v7 = vld [vmem:[%s8679_s19 + $0x40] sm:$0xff]  ;;  %v69_v8 = vld [vmem:[%s8679_s19 + $0x50] sm:$0xff]  ;;  %v66_v10 = vld [vmem:[%s8679_s19 + $0x38] sm:$0xff] }
  0x38   :  { %633 = vmatprep.subr.mxu1 %v286_v25  ;;  %473 = vmatpush2.msra.mxu0 %v221_v26  ;;  %v327_v9 = vld [vmem:[%s8678_s29 + $0x4e0] sm:$0xff]  ;;  %v68_v11 = vld [vmem:[%s8679_s19 + $0x48] sm:$0xff]  ;;  %v326_v12 = vld [vmem:[%s8678_s29 + $0x4d8] sm:$0xff] }
  0x39   :  { %634 = vmatpush2.msra.mxu1 %v285_v27  ;;  %474 = vmatprep.subr.mxu0 %v220_v28  ;;  %v325_v13 = vld [vmem:[%s8678_s29 + $0x4d0] sm:$0xff]  ;;  %v324_v14 = vld [vmem:[%s8678_s29 + $0x4c8] sm:$0xff]  ;;  %v74_v15 = vld [vmem:[%s8679_s19 + $0x78] sm:$0xff] }
  0x3a   :  { %635 = vmatprep.subr.mxu1 %v284_v29  ;;  %475 = vmatpush2.msra.mxu0 %v219_v30  ;;  %v76_v16 = vld [vmem:[%s8679_s19 + $0x88] sm:$0xff]  ;;  %v323_v17 = vld [vmem:[%s8678_s29 + $0x4c0] sm:$0xff]  ;;  %v73_v18 = vld [vmem:[%s8679_s19 + $0x70] sm:$0xff] }
  0x3b   :  { %636 = vmatpush2.msra.mxu1 %v283_v31  ;;  %476 = vmatprep.subr.mxu0 %v218_v32  ;;  %v75_v19 = vld [vmem:[%s8679_s19 + $0x80] sm:$0xff]  ;;  %v322_v20 = vld [vmem:[%s8678_s29 + $0x4b8] sm:$0xff]  ;;  %v321_v21 = vld [vmem:[%s8678_s29 + $0x4b0] sm:$0xff] }
  0x3c   :  { %637 = vmatprep.subr.mxu1 %v282_v33  ;;  %477 = vmatpush2.msra.mxu0 %v217_v34  ;;  %v320_v22 = vld [vmem:[%s8678_s29 + $0x4a8] sm:$0xff]  ;;  %v81_v23 = vld [vmem:[%s8679_s19 + $0xb0] sm:$0xff]  ;;  %v83_v24 = vld [vmem:[%s8679_s19 + $0xc0] sm:$0xff] }
  0x3d   :  { %638 = vmatpush2.msra.mxu1 %v281_v35  ;;  %478 = vmatprep.subr.mxu0 %v216_v36  ;;  %v319_v25 = vld [vmem:[%s8678_s29 + $0x4a0] sm:$0xff]  ;;  %v80_v26 = vld [vmem:[%s8679_s19 + $0xa8] sm:$0xff]  ;;  %v82_v27 = vld [vmem:[%s8679_s19 + $0xb8] sm:$0xff] }
  0x3e   :  { %639 = vmatprep.subr.mxu1 %v280_v37  ;;  %479 = vmatpush2.msra.mxu0 %v215_v38  ;;  %v318_v28 = vld [vmem:[%s8678_s29 + $0x498] sm:$0xff]  ;;  %v317_v29 = vld [vmem:[%s8678_s29 + $0x490] sm:$0xff]  ;;  %v316_v30 = vld [vmem:[%s8678_s29 + $0x488] sm:$0xff] }
  0x3f   :  { %640 = vmatpush2.msra.mxu1 %v279_v39  ;;  %480 = vmatprep.subr.mxu0 %v214_v40  ;;  %v88_v31 = vld [vmem:[%s8679_s19 + $0xe8] sm:$0xff]  ;;  %v90_v32 = vld [vmem:[%s8679_s19 + $0xf8] sm:$0xff]  ;;  %v315_v33 = vld [vmem:[%s8678_s29 + $0x480] sm:$0xff] }
  0x40   :  { %641 = vmatprep.subr.mxu1 %v278_v41  ;;  %481 = vmatpush2.msra.mxu0 %v213_v42  ;;  %v87_v34 = vld [vmem:[%s8679_s19 + $0xe0] sm:$0xff]  ;;  %v89_v35 = vld [vmem:[%s8679_s19 + $0xf0] sm:$0xff]  ;;  %v314_v36 = vld [vmem:[%s8678_s29 + $0x478] sm:$0xff] }
  0x41   :  { %642 = vmatpush2.msra.mxu1 %v277_v43  ;;  %482 = vmatprep.subr.mxu0 %v212_v44  ;;  %v313_v37 = vld [vmem:[%s8678_s29 + $0x470] sm:$0xff]  ;;  %v312_v38 = vld [vmem:[%s8678_s29 + $0x468] sm:$0xff]  ;;  %v95_v39 = vld [vmem:[%s8679_s19 + $0x120] sm:$0xff] }
  0x42   :  { %643 = vmatprep.subr.mxu1 %v276_v45  ;;  %483 = vmatpush2.msra.mxu0 %v211_v46  ;;  %v97_v40 = vld [vmem:[%s8679_s19 + $0x130] sm:$0xff]  ;;  %v311_v41 = vld [vmem:[%s8678_s29 + $0x460] sm:$0xff]  ;;  %v94_v42 = vld [vmem:[%s8679_s19 + $0x118] sm:$0xff] }
  0x43   :  { %644 = vmatpush2.msra.mxu1 %v275_v47  ;;  %484 = vmatprep.subr.mxu0 %v210_v48  ;;  %v96_v43 = vld [vmem:[%s8679_s19 + $0x128] sm:$0xff]  ;;  %v310_v44 = vld [vmem:[%s8678_s29 + $0x458] sm:$0xff]  ;;  %v309_v45 = vld [vmem:[%s8678_s29 + $0x450] sm:$0xff] }
  0x44   :  { %645 = vmatprep.subr.mxu1 %v274_v49  ;;  %485 = vmatpush2.msra.mxu0 %v209_v50  ;;  %v308_v46 = vld [vmem:[%s8678_s29 + $0x448] sm:$0xff]  ;;  %v102_v47 = vld [vmem:[%s8679_s19 + $0x158] sm:$0xff]  ;;  %v307_v49 = vld [vmem:[%s8678_s29 + $0x440] sm:$0xff] }
  0x45   :  { %646 = vmatpush2.msra.mxu1 %v273_v51  ;;  %486 = vmatprep.subr.mxu0 %v208_v52  ;;  %v104_v48 = vld [vmem:[%s8679_s19 + $0x168] sm:$0xff]  ;;  %v101_v50 = vld [vmem:[%s8679_s19 + $0x150] sm:$0xff]  ;;  %v103_v51 = vld [vmem:[%s8679_s19 + $0x160] sm:$0xff] }
  0x46   :  { %647 = vmatprep.subr.mxu1 %v272_v53  ;;  %487 = vmatpush2.msra.mxu0 %v207_v54  ;;  %v306_v52 = vld [vmem:[%s8678_s29 + $0x438] sm:$0xff]  ;;  %v305_v53 = vld [vmem:[%s8678_s29 + $0x430] sm:$0xff]  ;;  %v304_v54 = vld [vmem:[%s8678_s29 + $0x428] sm:$0xff] }
  0x47   :  { %648 = vmatpush2.msra.mxu1 %v271_v55  ;;  %488 = vmatprep.subr.mxu0 %v206_v56  ;;  %v109_v55 = vld [vmem:[%s8679_s19 + $0x190] sm:$0xff]  ;;  %v111_v56 = vld [vmem:[%s8679_s19 + $0x1a0] sm:$0xff] }
  0x48   :  { %649 = vmatprep.subr.mxu1 %v270_v57  ;;  %489 = vmatpush2.msra.mxu0 %v205_v58  ;;  %v303_v57 = vld [vmem:[%s8678_s29 + $0x420] sm:$0xff]  ;;  %v108_v58 = vld [vmem:[%s8679_s19 + $0x188] sm:$0xff] }
  0x49   :  { %650 = vmatpush2.msra.mxu1 %v269_v59  ;;  %490 = vmatprep.subr.mxu0 %v204_v60  ;;  %v110_v59 = vld [vmem:[%s8679_s19 + $0x198] sm:$0xff] }
  0x4a   :  { %651 = vmatprep.subr.mxu1 %v268_v61  ;;  %491 = vmatpush2.msra.mxu0 %v203_v62  ;;  %v302_v60 = vld [vmem:[%s8678_s29 + $0x418] sm:$0xff]  ;;  %v301_v61 = vld [vmem:[%s8678_s29 + $0x410] sm:$0xff]  ;;  %v300_v62 = vld [vmem:[%s8678_s29 + $0x408] sm:$0xff] }
  0x4b   :  { %492 = vmatprep.mubr.f32.mxu0 %v60_v63  ;;  %652 = vmatpush2.msra.mxu1 %v267_v0  ;;  %v116_v63 = vld [vmem:[%s8679_s19 + $0x1c8] sm:$0xff]  ;;  %v118_v0 = vld [vmem:[%s8679_s19 + $0x1d8] sm:$0xff] }
  0x4c   :  { %653 = vmatprep.mubr.f32.mxu1 %v62_v1  ;;  %493 = vmatmul.mubr.f32.vlgmr.msra.gmra.mxu0 %v59_v2  ;;  %v299_v1 = vld [vmem:[%s8678_s29 + $0x400] sm:$0xff] }
  0x4d   :  { %654 = vmatmul.mubr.f32.vlgmr.msra.gmra.mxu1 %v61_v3  ;;  %750 = vmatprep.subr.mxu0 %v330_v4  ;;  %v115_v2 = vld [vmem:[%s8679_s19 + $0x1c0] sm:$0xff]  ;;  %v117_v3 = vld [vmem:[%s8679_s19 + $0x1d0] sm:$0xff] }
  0x4e   :  { %4626 = vmatprep.subr.mxu1 %v330_v4  ;;  %751 = vmatpush1.msra.mxu0 %v329_v5  ;;  %v362_v4 = vld [vmem:[%s8678_s29 + $0x5f8] sm:$0xff] }
  0x4f   :  { %4658 = vmatpush1.msra.mxu1 %v329_v5  ;;  %752 = vmatprep.subr.mxu0 %v328_v6  ;;  %v361_v5 = vld [vmem:[%s8678_s29 + $0x5f0] sm:$0xff] }
  0x50   :  { %4627 = vmatprep.subr.mxu1 %v328_v6  ;;  %498 = vmatprep.mubr.f32.mxu0 %v67_v7  ;;  %v360_v6 = vld [vmem:[%s8678_s29 + $0x5e8] sm:$0xff]  ;;  %v123_v7 = vld [vmem:[%s8679_s19 + $0x200] sm:$0xff] }
  0x51   :  { %659 = vmatprep.mubr.f32.mxu1 %v69_v8  ;;  %753 = vmatpush1.msra.mxu0 %v327_v9  ;;  %v125_v8 = vld [vmem:[%s8679_s19 + $0x210] sm:$0xff] }
  0x52   :  { %4659 = vmatpush1.msra.mxu1 %v327_v9  ;;  %499 = vmatmul.mubr.f32.gmra.mxu0 %v66_v10  ;;  %v359_v9 = vld [vmem:[%s8678_s29 + $0x5e0] sm:$0xff]  ;;  %v122_v10 = vld [vmem:[%s8679_s19 + $0x1f8] sm:$0xff] }
  0x53   :  { %660 = vmatmul.mubr.f32.gmra.mxu1 %v68_v11  ;;  %754 = vmatprep.subr.mxu0 %v326_v12  ;;  %v124_v11 = vld [vmem:[%s8679_s19 + $0x208] sm:$0xff] }
  0x54   :  { %4628 = vmatprep.subr.mxu1 %v326_v12  ;;  %755 = vmatpush1.msra.mxu0 %v325_v13  ;;  %v358_v12 = vld [vmem:[%s8678_s29 + $0x5d8] sm:$0xff] }
  0x55   :  { %4660 = vmatpush1.msra.mxu1 %v325_v13  ;;  %756 = vmatprep.subr.mxu0 %v324_v14  ;;  %v357_v13 = vld [vmem:[%s8678_s29 + $0x5d0] sm:$0xff] }
  0x56   :  { %4629 = vmatprep.subr.mxu1 %v324_v14  ;;  %504 = vmatprep.mubr.f32.mxu0 %v74_v15  ;;  %v356_v14 = vld [vmem:[%s8678_s29 + $0x5c8] sm:$0xff]  ;;  %v130_v15 = vld [vmem:[%s8679_s19 + $0x238] sm:$0xff] }
  0x57   :  { %665 = vmatprep.mubr.f32.mxu1 %v76_v16  ;;  %757 = vmatpush1.msra.mxu0 %v323_v17  ;;  %v132_v16 = vld [vmem:[%s8679_s19 + $0x248] sm:$0xff] }
  0x58   :  { %4661 = vmatpush1.msra.mxu1 %v323_v17  ;;  %505 = vmatmul.mubr.f32.gmra.mxu0 %v73_v18  ;;  %v355_v17 = vld [vmem:[%s8678_s29 + $0x5c0] sm:$0xff]  ;;  %v129_v18 = vld [vmem:[%s8679_s19 + $0x230] sm:$0xff] }
  0x59   :  { %666 = vmatmul.mubr.f32.gmra.mxu1 %v75_v19  ;;  %758 = vmatprep.subr.mxu0 %v322_v20  ;;  %v131_v19 = vld [vmem:[%s8679_s19 + $0x240] sm:$0xff] }
  0x5a   :  { %4630 = vmatprep.subr.mxu1 %v322_v20  ;;  %759 = vmatpush1.msra.mxu0 %v321_v21  ;;  %v354_v20 = vld [vmem:[%s8678_s29 + $0x5b8] sm:$0xff] }
  0x5b   :  { %4662 = vmatpush1.msra.mxu1 %v321_v21  ;;  %760 = vmatprep.subr.mxu0 %v320_v22  ;;  %v353_v21 = vld [vmem:[%s8678_s29 + $0x5b0] sm:$0xff] }
  0x5c   :  { %4631 = vmatprep.subr.mxu1 %v320_v22  ;;  %510 = vmatprep.mubr.f32.mxu0 %v81_v23  ;;  %v352_v22 = vld [vmem:[%s8678_s29 + $0x5a8] sm:$0xff]  ;;  %v137_v23 = vld [vmem:[%s8679_s19 + $0x270] sm:$0xff] }
  0x5d   :  { %671 = vmatprep.mubr.f32.mxu1 %v83_v24  ;;  %761 = vmatpush1.msra.mxu0 %v319_v25  ;;  %v139_v24 = vld [vmem:[%s8679_s19 + $0x280] sm:$0xff] }
  0x5e   :  { %4663 = vmatpush1.msra.mxu1 %v319_v25  ;;  %511 = vmatmul.mubr.f32.gmra.mxu0 %v80_v26  ;;  %v351_v25 = vld [vmem:[%s8678_s29 + $0x5a0] sm:$0xff]  ;;  %v136_v26 = vld [vmem:[%s8679_s19 + $0x268] sm:$0xff] }
  0x5f   :  { %672 = vmatmul.mubr.f32.gmra.mxu1 %v82_v27  ;;  %762 = vmatprep.subr.mxu0 %v318_v28  ;;  %v138_v27 = vld [vmem:[%s8679_s19 + $0x278] sm:$0xff] }
  0x60   :  { %4632 = vmatprep.subr.mxu1 %v318_v28  ;;  %763 = vmatpush1.msra.mxu0 %v317_v29  ;;  %v350_v28 = vld [vmem:[%s8678_s29 + $0x598] sm:$0xff] }
  0x61   :  { %4664 = vmatpush1.msra.mxu1 %v317_v29  ;;  %764 = vmatprep.subr.mxu0 %v316_v30  ;;  %v349_v29 = vld [vmem:[%s8678_s29 + $0x590] sm:$0xff] }
  0x62   :  { %4633 = vmatprep.subr.mxu1 %v316_v30  ;;  %516 = vmatprep.mubr.f32.mxu0 %v88_v31  ;;  %v348_v30 = vld [vmem:[%s8678_s29 + $0x588] sm:$0xff] }
  0x63   :  { %677 = vmatprep.mubr.f32.mxu1 %v90_v32  ;;  %765 = vmatpush1.msra.mxu0 %v315_v33  ;;  %v144_v31 = vld [vmem:[%s8679_s19 + $0x2a8] sm:$0xff]  ;;  %v146_v32 = vld [vmem:[%s8679_s19 + $0x2b8] sm:$0xff] }
  0x64   :  { %4665 = vmatpush1.msra.mxu1 %v315_v33  ;;  %517 = vmatmul.mubr.f32.gmra.mxu0 %v87_v34  ;;  %v347_v33 = vld [vmem:[%s8678_s29 + $0x580] sm:$0xff] }
  0x65   :  { %678 = vmatmul.mubr.f32.gmra.mxu1 %v89_v35  ;;  %766 = vmatprep.subr.mxu0 %v314_v36  ;;  %v143_v34 = vld [vmem:[%s8679_s19 + $0x2a0] sm:$0xff]  ;;  %v145_v35 = vld [vmem:[%s8679_s19 + $0x2b0] sm:$0xff] }
  0x66   :  { %4634 = vmatprep.subr.mxu1 %v314_v36  ;;  %767 = vmatpush1.msra.mxu0 %v313_v37  ;;  %v346_v36 = vld [vmem:[%s8678_s29 + $0x578] sm:$0xff] }
  0x67   :  { %4666 = vmatpush1.msra.mxu1 %v313_v37  ;;  %768 = vmatprep.subr.mxu0 %v312_v38  ;;  %v345_v37 = vld [vmem:[%s8678_s29 + $0x570] sm:$0xff] }
  0x68   :  { %4635 = vmatprep.subr.mxu1 %v312_v38  ;;  %522 = vmatprep.mubr.f32.mxu0 %v95_v39  ;;  %v344_v38 = vld [vmem:[%s8678_s29 + $0x568] sm:$0xff]  ;;  %v151_v39 = vld [vmem:[%s8679_s19 + $0x2e0] sm:$0xff] }
  0x69   :  { %683 = vmatprep.mubr.f32.mxu1 %v97_v40  ;;  %769 = vmatpush1.msra.mxu0 %v311_v41  ;;  %v153_v40 = vld [vmem:[%s8679_s19 + $0x2f0] sm:$0xff] }
  0x6a   :  { %4667 = vmatpush1.msra.mxu1 %v311_v41  ;;  %523 = vmatmul.mubr.f32.gmra.mxu0 %v94_v42  ;;  %v343_v41 = vld [vmem:[%s8678_s29 + $0x560] sm:$0xff]  ;;  %v150_v42 = vld [vmem:[%s8679_s19 + $0x2d8] sm:$0xff] }
  0x6b   :  { %684 = vmatmul.mubr.f32.gmra.mxu1 %v96_v43  ;;  %770 = vmatprep.subr.mxu0 %v310_v44  ;;  %v152_v43 = vld [vmem:[%s8679_s19 + $0x2e8] sm:$0xff] }
  0x6c   :  { %4636 = vmatprep.subr.mxu1 %v310_v44  ;;  %771 = vmatpush1.msra.mxu0 %v309_v45  ;;  %v342_v44 = vld [vmem:[%s8678_s29 + $0x558] sm:$0xff] }
  0x6d   :  { %4668 = vmatpush1.msra.mxu1 %v309_v45  ;;  %772 = vmatprep.subr.mxu0 %v308_v46  ;;  %v341_v45 = vld [vmem:[%s8678_s29 + $0x550] sm:$0xff] }
  0x6e   :  { %4637 = vmatprep.subr.mxu1 %v308_v46  ;;  %528 = vmatprep.mubr.f32.mxu0 %v102_v47  ;;  %v340_v46 = vld [vmem:[%s8678_s29 + $0x548] sm:$0xff]  ;;  %v158_v47 = vld [vmem:[%s8679_s19 + $0x318] sm:$0xff] }
  0x6f   :  { %689 = vmatprep.mubr.f32.mxu1 %v104_v48  ;;  %773 = vmatpush1.msra.mxu0 %v307_v49  ;;  %v160_v48 = vld [vmem:[%s8679_s19 + $0x328] sm:$0xff] }
  0x70   :  { %4669 = vmatpush1.msra.mxu1 %v307_v49  ;;  %529 = vmatmul.mubr.f32.gmra.mxu0 %v101_v50  ;;  %v339_v49 = vld [vmem:[%s8678_s29 + $0x540] sm:$0xff]  ;;  %v157_v50 = vld [vmem:[%s8679_s19 + $0x310] sm:$0xff] }
  0x71   :  { %690 = vmatmul.mubr.f32.gmra.mxu1 %v103_v51  ;;  %774 = vmatprep.subr.mxu0 %v306_v52  ;;  %v159_v51 = vld [vmem:[%s8679_s19 + $0x320] sm:$0xff] }
  0x72   :  { %4638 = vmatprep.subr.mxu1 %v306_v52  ;;  %775 = vmatpush1.msra.mxu0 %v305_v53  ;;  %v338_v52 = vld [vmem:[%s8678_s29 + $0x538] sm:$0xff] }
  0x73   :  { %4670 = vmatpush1.msra.mxu1 %v305_v53  ;;  %776 = vmatprep.subr.mxu0 %v304_v54  ;;  %v337_v53 = vld [vmem:[%s8678_s29 + $0x530] sm:$0xff] }
  0x74   :  { %4639 = vmatprep.subr.mxu1 %v304_v54  ;;  %534 = vmatprep.mubr.f32.mxu0 %v109_v55  ;;  %v336_v54 = vld [vmem:[%s8678_s29 + $0x528] sm:$0xff]  ;;  %v165_v55 = vld [vmem:[%s8679_s19 + $0x350] sm:$0xff] }
  0x75   :  { %695 = vmatprep.mubr.f32.mxu1 %v111_v56  ;;  %777 = vmatpush1.msra.mxu0 %v303_v57  ;;  %v167_v56 = vld [vmem:[%s8679_s19 + $0x360] sm:$0xff] }
  0x76   :  { %4671 = vmatpush1.msra.mxu1 %v303_v57  ;;  %535 = vmatmul.mubr.f32.gmra.mxu0 %v108_v58  ;;  %v335_v57 = vld [vmem:[%s8678_s29 + $0x520] sm:$0xff]  ;;  %v164_v58 = vld [vmem:[%s8679_s19 + $0x348] sm:$0xff] }
  0x77   :  { %696 = vmatmul.mubr.f32.gmra.mxu1 %v110_v59  ;;  %778 = vmatprep.subr.mxu0 %v302_v60  ;;  %v166_v59 = vld [vmem:[%s8679_s19 + $0x358] sm:$0xff] }
  0x78   :  { %4640 = vmatprep.subr.mxu1 %v302_v60  ;;  %779 = vmatpush1.msra.mxu0 %v301_v61  ;;  %v334_v60 = vld [vmem:[%s8678_s29 + $0x518] sm:$0xff] }
  0x79   :  { %4672 = vmatpush1.msra.mxu1 %v301_v61  ;;  %780 = vmatprep.subr.mxu0 %v300_v62  ;;  %v333_v61 = vld [vmem:[%s8678_s29 + $0x510] sm:$0xff] }
  0x7a   :  { %4641 = vmatprep.subr.mxu1 %v300_v62  ;;  %540 = vmatprep.mubr.f32.mxu0 %v116_v63  ;;  %v332_v62 = vld [vmem:[%s8678_s29 + $0x508] sm:$0xff]  ;;  %v331_v63 = vld [vmem:[%s8678_s29 + $0x500] sm:$0xff] }
  0x7b   :  { %701 = vmatprep.mubr.f32.mxu1 %v118_v0  ;;  %781 = vmatpush1.msra.mxu0 %v299_v1  ;;  %v64_v0 = vld [vmem:[%s8679_s19 + $0x28] sm:$0xff] }
  0x7c   :  { %4673 = vmatpush1.msra.mxu1 %v299_v1  ;;  %541 = vmatmul.mubr.f32.gmra.mxu0 %v115_v2  ;;  %v148_v1 = vld [vmem:[%s8679_s19 + $0x2c8] sm:$0xff]  ;;  %v63_v2 = vld [vmem:[%s8679_s19 + $0x20] sm:$0xff] }
  0x7d   :  { %702 = vmatmul.mubr.f32.gmra.mxu1 %v117_v3  ;;  %782 = vmatprep.subr.mxu0 %v362_v4  ;;  %v147_v3 = vld [vmem:[%s8679_s19 + $0x2c0] sm:$0xff] }
  0x7e   :  { %4642 = vmatprep.subr.mxu1 %v362_v4  ;;  %783 = vmatpush2.msra.mxu0 %v361_v5  ;;  %v366_v4 = vld [vmem:[%s8678_s29 + $0x618] sm:$0xff] }
  0x7f   :  { %4674 = vmatpush2.msra.mxu1 %v361_v5  ;;  %784 = vmatprep.subr.mxu0 %v360_v6  ;;  %v71_v5 = vld [vmem:[%s8679_s19 + $0x60] sm:$0xff] }
  0x80   :  { %4643 = vmatprep.subr.mxu1 %v360_v6  ;;  %546 = vmatprep.mubr.f32.mxu0 %v123_v7  ;;  %v365_v6 = vld [vmem:[%s8678_s29 + $0x610] sm:$0xff]  ;;  %v155_v7 = vld [vmem:[%s8679_s19 + $0x300] sm:$0xff] }
  0x81   :  { %707 = vmatprep.mubr.f32.mxu1 %v125_v8  ;;  %785 = vmatpush2.msra.mxu0 %v359_v9  ;;  %v364_v8 = vld [vmem:[%s8678_s29 + $0x608] sm:$0xff] }
  0x82   :  { %4675 = vmatpush2.msra.mxu1 %v359_v9  ;;  %547 = vmatmul.mubr.f32.gmra.mxu0 %v122_v10  ;;  %v70_v9 = vld [vmem:[%s8679_s19 + $0x58] sm:$0xff] }
  0x83   :  { %708 = vmatmul.mubr.f32.gmra.mxu1 %v124_v11  ;;  %786 = vmatprep.subr.mxu0 %v358_v12  ;;  %v154_v10 = vld [vmem:[%s8679_s19 + $0x2f8] sm:$0xff] }
  0x84   :  { %4644 = vmatprep.subr.mxu1 %v358_v12  ;;  %787 = vmatpush2.msra.mxu0 %v357_v13  ;;  %v78_v11 = vld [vmem:[%s8679_s19 + $0x98] sm:$0xff] }
  0x85   :  { %4676 = vmatpush2.msra.mxu1 %v357_v13  ;;  %788 = vmatprep.subr.mxu0 %v356_v14  ;;  %v162_v12 = vld [vmem:[%s8679_s19 + $0x338] sm:$0xff]  ;;  %v363_v13 = vld [vmem:[%s8678_s29 + $0x600] sm:$0xff] }
  0x86   :  { %4645 = vmatprep.subr.mxu1 %v356_v14  ;;  %552 = vmatprep.mubr.f32.mxu0 %v130_v15  ;;  %v77_v14 = vld [vmem:[%s8679_s19 + $0x90] sm:$0xff] }
  0x87   :  { %713 = vmatprep.mubr.f32.mxu1 %v132_v16  ;;  %789 = vmatpush2.msra.mxu0 %v355_v17  ;;  %v161_v15 = vld [vmem:[%s8679_s19 + $0x330] sm:$0xff] }
  0x88   :  { %4677 = vmatpush2.msra.mxu1 %v355_v17  ;;  %553 = vmatmul.mubr.f32.gmra.mxu0 %v129_v18  ;;  %v85_v16 = vld [vmem:[%s8679_s19 + $0xd0] sm:$0xff]  ;;  %v84_v18 = vld [vmem:[%s8679_s19 + $0xc8] sm:$0xff] }
  0x89   :  { %714 = vmatmul.mubr.f32.gmra.mxu1 %v131_v19  ;;  %790 = vmatprep.subr.mxu0 %v354_v20  ;;  %v169_v17 = vld [vmem:[%s8679_s19 + $0x370] sm:$0xff]  ;;  %v168_v19 = vld [vmem:[%s8679_s19 + $0x368] sm:$0xff] }
  0x8a   :  { %4646 = vmatprep.subr.mxu1 %v354_v20  ;;  %791 = vmatpush2.msra.mxu0 %v353_v21  ;;  %v92_v20 = vld [vmem:[%s8679_s19 + $0x108] sm:$0xff] }
  0x8b   :  { %4678 = vmatpush2.msra.mxu1 %v353_v21  ;;  %792 = vmatprep.subr.mxu0 %v352_v22  ;;  %v8667_v21 = vmov 0.0  }
  0x8c   :  { %4647 = vmatprep.subr.mxu1 %v352_v22  ;;  %558 = vmatprep.mubr.f32.mxu0 %v137_v23  ;;  %v91_v22 = vld [vmem:[%s8679_s19 + $0x100] sm:$0xff]  ;;  %v65_v23 = vld [vmem:[%s8679_s19 + $0x30] sm:$0xff] }
  0x8d   :  { %719 = vmatprep.mubr.f32.mxu1 %v139_v24  ;;  %793 = vmatpush2.msra.mxu0 %v351_v25  ;;  %v99_v24 = vld [vmem:[%s8679_s19 + $0x140] sm:$0xff] }
  0x8e   :  { %4679 = vmatpush2.msra.mxu1 %v351_v25  ;;  %559 = vmatmul.mubr.f32.gmra.mxu0 %v136_v26  ;;  %v98_v25 = vld [vmem:[%s8679_s19 + $0x138] sm:$0xff]  ;;  %v72_v26 = vld [vmem:[%s8679_s19 + $0x68] sm:$0xff] }
  0x8f   :  { %720 = vmatmul.mubr.f32.gmra.mxu1 %v138_v27  ;;  %794 = vmatprep.subr.mxu0 %v350_v28  ;;  %v106_v27 = vld [vmem:[%s8679_s19 + $0x178] sm:$0xff] }
  0x90   :  { %4648 = vmatprep.subr.mxu1 %v350_v28  ;;  %795 = vmatpush2.msra.mxu0 %v349_v29  ;;  %v105_v28 = vld [vmem:[%s8679_s19 + $0x170] sm:$0xff] }
  0x91   :  { %4680 = vmatpush2.msra.mxu1 %v349_v29  ;;  %796 = vmatprep.subr.mxu0 %v348_v30  ;;  %v79_v29 = vld [vmem:[%s8679_s19 + $0xa0] sm:$0xff] }
  0x92   :  { %4649 = vmatprep.subr.mxu1 %v348_v30  ;;  %564 = vmatprep.mubr.f32.mxu0 %v144_v31  ;;  %v113_v30 = vld [vmem:[%s8679_s19 + $0x1b0] sm:$0xff]  ;;  %v112_v31 = vld [vmem:[%s8679_s19 + $0x1a8] sm:$0xff] }
  0x93   :  { %725 = vmatprep.mubr.f32.mxu1 %v146_v32  ;;  %797 = vmatpush2.msra.mxu0 %v347_v33  ;;  %v86_v32 = vld [vmem:[%s8679_s19 + $0xd8] sm:$0xff] }
  0x94   :  { %4681 = vmatpush2.msra.mxu1 %v347_v33  ;;  %565 = vmatmul.mubr.f32.gmra.mxu0 %v143_v34  ;;  %v120_v33 = vld [vmem:[%s8679_s19 + $0x1e8] sm:$0xff]  ;;  %v119_v34 = vld [vmem:[%s8679_s19 + $0x1e0] sm:$0xff] }
  0x95   :  { %726 = vmatmul.mubr.f32.gmra.mxu1 %v145_v35  ;;  %798 = vmatprep.subr.mxu0 %v346_v36  ;;  %v93_v35 = vld [vmem:[%s8679_s19 + $0x110] sm:$0xff] }
  0x96   :  { %4650 = vmatprep.subr.mxu1 %v346_v36  ;;  %799 = vmatpush2.msra.mxu0 %v345_v37  ;;  %v127_v36 = vld [vmem:[%s8679_s19 + $0x220] sm:$0xff] }
  0x97   :  { %4682 = vmatpush2.msra.mxu1 %v345_v37  ;;  %800 = vmatprep.subr.mxu0 %v344_v38  ;;  %v1135_v37 = vld [vmem:[%s8680_s21 + $0xf8] sm:$0xff] }
  0x98   :  { %4651 = vmatprep.subr.mxu1 %v344_v38  ;;  %570 = vmatprep.mubr.f32.mxu0 %v151_v39  ;;  %v1119_v38 = vld [vmem:[%s8680_s21 + $0x78] sm:$0xff] }
  0x99   :  { %731 = vmatprep.mubr.f32.mxu1 %v153_v40  ;;  %801 = vmatpush2.msra.mxu0 %v343_v41  ;;  %v126_v39 = vld [vmem:[%s8679_s19 + $0x218] sm:$0xff]  ;;  %v100_v40 = vld [vmem:[%s8679_s19 + $0x148] sm:$0xff] }
  0x9a   :  { %4683 = vmatpush2.msra.mxu1 %v343_v41  ;;  %571 = vmatmul.mubr.f32.gmra.mxu0 %v150_v42  ;;  %v134_v41 = vld [vmem:[%s8679_s19 + $0x258] sm:$0xff]  ;;  %v1134_v42 = vld [vmem:[%s8680_s21 + $0xf0] sm:$0xff] }
  0x9b   :  { %732 = vmatmul.mubr.f32.gmra.mxu1 %v152_v43  ;;  %802 = vmatprep.subr.mxu0 %v342_v44  ;;  %v133_v43 = vld [vmem:[%s8679_s19 + $0x250] sm:$0xff] }
  0x9c   :  { %4652 = vmatprep.subr.mxu1 %v342_v44  ;;  %803 = vmatpush2.msra.mxu0 %v341_v45  ;;  %v107_v44 = vld [vmem:[%s8679_s19 + $0x180] sm:$0xff] }
  0x9d   :  { %4684 = vmatpush2.msra.mxu1 %v341_v45  ;;  %804 = vmatprep.subr.mxu0 %v340_v46  ;;  %v1118_v45 = vld [vmem:[%s8680_s21 + $0x70] sm:$0xff] }
  0x9e   :  { %4653 = vmatprep.subr.mxu1 %v340_v46  ;;  %576 = vmatprep.mubr.f32.mxu0 %v158_v47  ;;  %v141_v46 = vld [vmem:[%s8679_s19 + $0x290] sm:$0xff]  ;;  %v1133_v47 = vld [vmem:[%s8680_s21 + $0xe8] sm:$0xff] }
  0x9f   :  { %737 = vmatprep.mubr.f32.mxu1 %v160_v48  ;;  %805 = vmatpush2.msra.mxu0 %v339_v49  ;;  %v1117_v48 = vld [vmem:[%s8680_s21 + $0x68] sm:$0xff] }
  0xa0   :  { %4685 = vmatpush2.msra.mxu1 %v339_v49  ;;  %577 = vmatmul.mubr.f32.gmra.mxu0 %v157_v50  ;;  %v140_v49 = vld [vmem:[%s8679_s19 + $0x288] sm:$0xff]  ;;  %v114_v50 = vld [vmem:[%s8679_s19 + $0x1b8] sm:$0xff] }
  0xa1   :  { %738 = vmatmul.mubr.f32.gmra.mxu1 %v159_v51  ;;  %806 = vmatprep.subr.mxu0 %v338_v52  ;;  %v1132_v51 = vld [vmem:[%s8680_s21 + $0xe0] sm:$0xff] }
  0xa2   :  { %4654 = vmatprep.subr.mxu1 %v338_v52  ;;  %807 = vmatpush2.msra.mxu0 %v337_v53  ;;  %v121_v52 = vld [vmem:[%s8679_s19 + $0x1f0] sm:$0xff] }
  0xa3   :  { %4686 = vmatpush2.msra.mxu1 %v337_v53  ;;  %808 = vmatprep.subr.mxu0 %v336_v54  ;;  %v1116_v53 = vld [vmem:[%s8680_s21 + $0x60] sm:$0xff] }
  0xa4   :  { %4655 = vmatprep.subr.mxu1 %v336_v54  ;;  %582 = vmatprep.mubr.f32.mxu0 %v165_v55  ;;  %v128_v54 = vld [vmem:[%s8679_s19 + $0x228] sm:$0xff]  ;;  %v1131_v55 = vld [vmem:[%s8680_s21 + $0xd8] sm:$0xff] }
  0xa5   :  { %743 = vmatprep.mubr.f32.mxu1 %v167_v56  ;;  %809 = vmatpush2.msra.mxu0 %v335_v57  ;;  %v1115_v56 = vld [vmem:[%s8680_s21 + $0x58] sm:$0xff] }
  0xa6   :  { %4687 = vmatpush2.msra.mxu1 %v335_v57  ;;  %583 = vmatmul.mubr.f32.gmra.mxu0 %v164_v58  ;;  %v1130_v57 = vld [vmem:[%s8680_s21 + $0xd0] sm:$0xff]  ;;  %v135_v58 = vld [vmem:[%s8679_s19 + $0x260] sm:$0xff] }
  0xa7   :  { %744 = vmatmul.mubr.f32.gmra.mxu1 %v166_v59  ;;  %810 = vmatprep.subr.mxu0 %v334_v60  ;;  %v1114_v59 = vld [vmem:[%s8680_s21 + $0x50] sm:$0xff] }
  0xa8   :  { %4656 = vmatprep.subr.mxu1 %v334_v60  ;;  %811 = vmatpush2.msra.mxu0 %v333_v61  ;;  %v142_v60 = vld [vmem:[%s8679_s19 + $0x298] sm:$0xff] }
  0xa9   :  { %4688 = vmatpush2.msra.mxu1 %v333_v61  ;;  %812 = vmatprep.subr.mxu0 %v332_v62  ;;  %v1129_v61 = vld [vmem:[%s8680_s21 + $0xc8] sm:$0xff] }
  0xaa   :  { %4657 = vmatprep.subr.mxu1 %v332_v62  ;;  %813 = vmatpush2.msra.mxu0 %v331_v63  ;;  %v1113_v62 = vld [vmem:[%s8680_s21 + $0x48] sm:$0xff] }
  0xab   :  { %4689 = vmatpush2.msra.mxu1 %v331_v63  ;;  %814 = vmatprep.mubr.f32.mxu0 %v64_v0  ;;  %v149_v63 = vld [vmem:[%s8679_s19 + $0x2d0] sm:$0xff]  ;;  %v1128_v0 = vld [vmem:[%s8680_s21 + $0xc0] sm:$0xff] }
  0xac   :  { %886 = vmatprep.mubr.f32.mxu1 %v148_v1  ;;  %815 = vmatmul.mubr.f32.vlgmr.msra.gmra.mxu0 %v63_v2  ;;  %v1112_v1 = vld [vmem:[%s8680_s21 + $0x40] sm:$0xff]  ;;  %v156_v2 = vld [vmem:[%s8679_s19 + $0x308] sm:$0xff] }
  0xad   :  { %887 = vmatmul.mubr.f32.vlgmr.msra.gmra.mxu1 %v147_v3  ;;  %939 = vmatprep.subr.mxu1 %v366_v4  ;;  %v1127_v3 = vld [vmem:[%s8680_s21 + $0xb8] sm:$0xff] }
  0xae   :  { %820 = vmatprep.mubr.f32.mxu0 %v71_v5  ;;  %940 = vmatpush1.msra.mxu1 %v365_v6  ;;  %v1111_v4 = vld [vmem:[%s8680_s21 + $0x38] sm:$0xff]  ;;  %v1126_v5 = vld [vmem:[%s8680_s21 + $0xb0] sm:$0xff]  ;;  %v163_v6 = vld [vmem:[%s8679_s19 + $0x340] sm:$0xff] }
  0xaf   :  { %892 = vmatprep.mubr.f32.mxu1 %v155_v7  ;;  %941 = vmatprep.subr.mxu1 %v364_v8  ;;  %v1110_v7 = vld [vmem:[%s8680_s21 + $0x30] sm:$0xff]  ;;  %v1125_v8 = vld [vmem:[%s8680_s21 + $0xa8] sm:$0xff] }
  0xb0   :  { %821 = vmatmul.mubr.f32.gmra.mxu0 %v70_v9  ;;  %942 = vmatpush1.msra.mxu1 %v363_v13  ;;  %v1109_v9 = vld [vmem:[%s8680_s21 + $0x28] sm:$0xff]  ;;  %v1123_v13 = vld [vmem:[%s8680_s21 + $0x98] sm:$0xff] }
  0xb1   :  { %893 = vmatmul.mubr.f32.gmra.mxu1 %v154_v10  ;;  %826 = vmatprep.mubr.f32.mxu0 %v78_v11  ;;  %v170_v10 = vld [vmem:[%s8679_s19 + $0x378] sm:$0xff]  ;;  %v1124_v11 = vld [vmem:[%s8680_s21 + $0xa0] sm:$0xff] }
  0xb2   :  { %898 = vmatprep.mubr.f32.mxu1 %v162_v12  ;;  %4231 = vmatprep.subr.mxu0 %v1135_v37  ;;  %v1108_v12 = vld [vmem:[%s8680_s21 + $0x20] sm:$0xff] }
  0xb3   :  { %4232 = vmatpush3.msra.mxu0 %v1119_v38 }
  0xb4   :  { %827 = vmatmul.mubr.f32.gmra.mxu0 %v77_v14  ;;  %4233 = vmatprep.subr.mxu0 %v1134_v42  ;;  %v1107_v14 = vld [vmem:[%s8680_s21 + $0x18] sm:$0xff] }
  0xb5   :  { %899 = vmatmul.mubr.f32.gmra.mxu1 %v161_v15  ;;  %832 = vmatprep.mubr.f32.mxu0 %v85_v16  ;;  %v1122_v15 = vld [vmem:[%s8680_s21 + $0x90] sm:$0xff] }
  0xb6   :  { %904 = vmatprep.mubr.f32.mxu1 %v169_v17  ;;  %4234 = vmatpush3.msra.mxu0 %v1118_v45  ;;  %v1106_v16 = vld [vmem:[%s8680_s21 + $0x10] sm:$0xff]  ;;  %v1121_v17 = vld [vmem:[%s8680_s21 + $0x88] sm:$0xff] }
  0xb7   :  { %4235 = vmatprep.subr.mxu0 %v1133_v47 }
  0xb8   :  { %833 = vmatmul.mubr.f32.gmra.mxu0 %v84_v18  ;;  %v1105_v18 = vld [vmem:[%s8680_s21 + $0x8] sm:$0xff] }
  0xb9   :  { %905 = vmatmul.mubr.f32.gmra.mxu1 %v168_v19  ;;  %838 = vmatprep.mubr.f32.mxu0 %v92_v20  ;;  %v1120_v19 = vld [vmem:[%s8680_s21 + $0x80] sm:$0xff] }
  0xba   :  { %975 = vmatprep.mubr.f32.mxu1 %v8667_v21  ;;  %4236 = vmatpush3.msra.mxu0 %v1117_v48  ;;  %v1104_v20 = vld [vmem:[%s8680_s21] sm:$0xff] }
  0xbb   :  { %4237 = vmatprep.subr.mxu0 %v1132_v51 }
  0xbc   :  { %839 = vmatmul.mubr.f32.gmra.mxu0 %v91_v22 }
  0xbd   :  { %4161 = vmatmul.mubr.msk.f32.vlgmr.msra.gmra.mxu1 %vm379_vm0, %v65_v23  ;;  %844 = vmatprep.mubr.f32.mxu0 %v99_v24 }
  0xbe   :  { %981 = vmatprep.mubr.f32.mxu1 %v8667_v21  ;;  %4238 = vmatpush3.msra.mxu0 %v1116_v53 }
  0xbf   :  { %4239 = vmatprep.subr.mxu0 %v1131_v55 }
  0xc0   :  { %845 = vmatmul.mubr.f32.gmra.mxu0 %v98_v25 }
  0xc1   :  { %4162 = vmatmul.mubr.msk.f32.gmra.mxu1 %vm379_vm0, %v72_v26  ;;  %850 = vmatprep.mubr.f32.mxu0 %v106_v27 }
  0xc2   :  { %987 = vmatprep.mubr.f32.mxu1 %v8667_v21  ;;  %4240 = vmatpush3.msra.mxu0 %v1115_v56 }
  0xc3   :  { %4241 = vmatprep.subr.mxu0 %v1130_v57 }
  0xc4   :  { %851 = vmatmul.mubr.f32.gmra.mxu0 %v105_v28 }
  0xc5   :  { %4163 = vmatmul.mubr.msk.f32.gmra.mxu1 %vm379_vm0, %v79_v29  ;;  %856 = vmatprep.mubr.f32.mxu0 %v113_v30 }
  0xc6   :  { %993 = vmatprep.mubr.f32.mxu1 %v8667_v21  ;;  %4242 = vmatpush3.msra.mxu0 %v1114_v59  ;;  %v1318_v59 = vld [vmem:[%s8648_s6 + $0x70] sm:$0xff] }
  0xc7   :  { %4243 = vmatprep.subr.mxu0 %v1129_v61 }
  0xc8   :  { %857 = vmatmul.mubr.f32.gmra.mxu0 %v112_v31 }
  0xc9   :  { %4164 = vmatmul.mubr.msk.f32.gmra.mxu1 %vm379_vm0, %v86_v32  ;;  %862 = vmatprep.mubr.f32.mxu0 %v120_v33 }
  0xca   :  { %999 = vmatprep.mubr.f32.mxu1 %v8667_v21  ;;  %4244 = vmatpush3.msra.mxu0 %v1113_v62  ;;  %v1317_v62 = vld [vmem:[%s8648_s6 + $0x68] sm:$0xff] }
  0xcb   :  { %4245 = vmatprep.subr.mxu0 %v1128_v0 }
  0xcc   :  { %863 = vmatmul.mubr.f32.gmra.mxu0 %v119_v34 }
  0xcd   :  { %4165 = vmatmul.mubr.msk.f32.gmra.mxu1 %vm379_vm0, %v93_v35  ;;  %868 = vmatprep.mubr.f32.mxu0 %v127_v36 }
  0xce   :  { %1005 = vmatprep.mubr.f32.mxu1 %v8667_v21  ;;  %4246 = vmatpush3.msra.mxu0 %v1112_v1  ;;  %v1316_v1 = vld [vmem:[%s8648_s6 + $0x60] sm:$0xff] }
  0xcf   :  { %4247 = vmatprep.subr.mxu0 %v1127_v3 }
  0xd0   :  { %869 = vmatmul.mubr.f32.gmra.mxu0 %v126_v39 }
  0xd1   :  { %4166 = vmatmul.mubr.msk.f32.gmra.mxu1 %vm379_vm0, %v100_v40  ;;  %874 = vmatprep.mubr.f32.mxu0 %v134_v41 }
  0xd2   :  { %1011 = vmatprep.mubr.f32.mxu1 %v8667_v21  ;;  %4248 = vmatpush3.msra.mxu0 %v1111_v4 }
  0xd3   :  { %4249 = vmatprep.subr.mxu0 %v1126_v5  ;;  %v1314_v5 = vld [vmem:[%s8648_s6 + $0x50] sm:$0xff] }
  0xd4   :  { %875 = vmatmul.mubr.f32.gmra.mxu0 %v133_v43 }
  0xd5   :  { %4167 = vmatmul.mubr.msk.f32.gmra.mxu1 %vm379_vm0, %v107_v44  ;;  %880 = vmatprep.mubr.f32.mxu0 %v141_v46 }
  0xd6   :  { %1017 = vmatprep.mubr.f32.mxu1 %v8667_v21  ;;  %4250 = vmatpush3.msra.mxu0 %v1110_v7 }
  0xd7   :  { %4251 = vmatprep.subr.mxu0 %v1125_v8  ;;  %v1313_v8 = vld [vmem:[%s8648_s6 + $0x48] sm:$0xff] }
  0xd8   :  { %881 = vmatmul.mubr.f32.gmra.mxu0 %v140_v49 }
  0xd9   :  { %4168 = vmatmul.mubr.msk.f32.gmra.mxu1 %vm379_vm0, %v114_v50  ;;  %4252 = vmatpush3.msra.mxu0 %v1109_v9  ;;  %v1312_v9 = vld [vmem:[%s8648_s6 + $0x40] sm:$0xff] }
  0xda   :  { %1023 = vmatprep.mubr.f32.mxu1 %v8667_v21  ;;  %4253 = vmatprep.subr.mxu0 %v1124_v11 }
  0xdb   :  { %4254 = vmatpush3.msra.mxu0 %v1108_v12  ;;  %v1311_v12 = vld [vmem:[%s8648_s6 + $0x38] sm:$0xff] }
  0xdc   :  { %4255 = vmatprep.subr.mxu0 %v1123_v13 }
  0xdd   :  { %4169 = vmatmul.mubr.msk.f32.gmra.mxu1 %vm379_vm0, %v121_v52  ;;  %4256 = vmatpush3.msra.mxu0 %v1107_v14 }
  0xde   :  { %1029 = vmatprep.mubr.f32.mxu1 %v8667_v21  ;;  %4257 = vmatprep.subr.mxu0 %v1122_v15  ;;  %v1310_v15 = vld [vmem:[%s8648_s6 + $0x30] sm:$0xff] }
  0xdf   :  { %4258 = vmatpush3.msra.mxu0 %v1106_v16  ;;  %v1309_v16 = vld [vmem:[%s8648_s6 + $0x28] sm:$0xff] }
  0xe0   :  { %4259 = vmatprep.subr.mxu0 %v1121_v17 }
  0xe1   :  { %4170 = vmatmul.mubr.msk.f32.gmra.mxu1 %vm379_vm0, %v128_v54  ;;  %4260 = vmatpush3.msra.mxu0 %v1105_v18 }
  0xe2   :  { %1035 = vmatprep.mubr.f32.mxu1 %v8667_v21  ;;  %4261 = vmatprep.subr.mxu0 %v1120_v19  ;;  %v1308_v19 = vld [vmem:[%s8648_s6 + $0x20] sm:$0xff] }
  0xe3   :  { %4262 = vmatpush3.msra.mxu0 %v1104_v20 }
  0xe5   :  { %4171 = vmatmul.mubr.msk.f32.gmra.mxu1 %vm379_vm0, %v135_v58  ;;  %v1319_v58 = vld [vmem:[%s8648_s6 + $0x78] sm:$0xff] }
  0xe6   :  { %1041 = vmatprep.mubr.f32.mxu1 %v8667_v21  ;;  %4480 = vmatprep.subr.mxu1 %v1319_v58 }
  0xe7   :  { %4481 = vmatpush3.msra.mxu1 %v1319_v58 }
  0xe8   :  { %4482 = vmatprep.subr.mxu1 %v1318_v59 }
  0xe9   :  { %4172 = vmatmul.mubr.msk.f32.gmra.mxu1 %vm379_vm0, %v142_v60 }
  0xea   :  { %1047 = vmatprep.mubr.f32.mxu1 %v8667_v21  ;;  %4483 = vmatpush3.msra.mxu1 %v1318_v59  ;;  %v1307_v59 = vld [vmem:[%s8648_s6 + $0x18] sm:$0xff] }
  0xeb   :  { %4484 = vmatprep.subr.mxu1 %v1317_v62 }
  0xec   :  { %4485 = vmatpush3.msra.mxu1 %v1317_v62  ;;  %v369_v62 = vlaneseq }
  0xed   :  { %4173 = vmatmul.mubr.msk.f32.gmra.mxu1 %vm379_vm0, %v149_v63  ;;  %4486 = vmatprep.subr.mxu1 %v1316_v1 }
  0xee   :  { %1053 = vmatprep.mubr.f32.mxu1 %v8667_v21  ;;  %4487 = vmatpush3.msra.mxu1 %v1316_v1 }
  0xf1   :  { %4174 = vmatmul.mubr.msk.f32.gmra.mxu1 %vm379_vm0, %v156_v2  ;;  %v1315_v2 = vld [vmem:[%s8648_s6 + $0x58] sm:$0xff] }
  0xf2   :  { %1059 = vmatprep.mubr.f32.mxu1 %v8667_v21  ;;  %4488 = vmatprep.subr.mxu1 %v1315_v2 }
  0xf3   :  { %4489 = vmatpush3.msra.mxu1 %v1315_v2 }
  0xf4   :  { %4490 = vmatprep.subr.mxu1 %v1314_v5 }
  0xf5   :  { %4175 = vmatmul.mubr.msk.f32.gmra.mxu1 %vm379_vm0, %v163_v6 }
  0xf6   :  { %1065 = vmatprep.mubr.f32.mxu1 %v8667_v21  ;;  %4491 = vmatpush3.msra.mxu1 %v1314_v5  ;;  %v367_v21 = vld [vmem:[%s8649_s3] sm:$0x3] }
  0xf7   :  { %4492 = vmatprep.subr.mxu1 %v1313_v8 }
  0xf8   :  { %4493 = vmatpush3.msra.mxu1 %v1313_v8 }
  0xf9   :  { %4176 = vmatmul.mubr.msk.f32.gmra.mxu1 %vm379_vm0, %v170_v10  ;;  %4494 = vmatprep.subr.mxu1 %v1312_v9 }
  0xfa   :  { %4495 = vmatpush3.msra.mxu1 %v1312_v9  ;;  %v6467_v9 = vshrl.u32 %v369_v62, 7 }
  0xfb   :  { %4496 = vmatprep.subr.mxu1 %v1311_v12 }
  0xfc   :  { %4497 = vmatpush3.msra.mxu1 %v1311_v12  ;;  %8694 = vst [vmem:[#allocation15_spill] sm:$0xff] %v6467_v9 }
  0xfd   :  { %4498 = vmatprep.subr.mxu1 %v1310_v15 }
  0xfe   :  { %4499 = vmatpush3.msra.mxu1 %v1310_v15 }
  0xff   :  { %4500 = vmatprep.subr.mxu1 %v1309_v16 }
 0x100   :  { %4501 = vmatpush3.msra.mxu1 %v1309_v16  ;;  %v6470_v16 = vsub.s32 0, %v6467_v9 }
 0x101   :  { %4502 = vmatprep.subr.mxu1 %v1308_v19 }
 0x102   :  { %4503 = vmatpush3.msra.mxu1 %v1308_v19  ;;  %8695 = vst [vmem:[#allocation16_spill] sm:$0xff] %v6470_v16 }
 0x103   :  { %4504 = vmatprep.subr.mxu1 %v1307_v59 }
 0x104   :  { %4505 = vmatpush3.msra.mxu1 %v1307_v59  ;;  %v6480_v59 = vrot.slane %v367_v21, %v6470_v16  ;;  %v6493_v16 = vsub.s32 1, %v6467_v9 }
 0x106   :  { %8701 = vst [vmem:[#allocation22_spill] sm:$0xff] %v6493_v16 }
 0x10c   :  { %v6324_v22 = vpop.f32.mrf.mxu0 }
 0x10d   :  { %v6326_v23 = vpop.f32.mrf.mxu1 }
 0x10e   :  { %v6328_v24 = vpop.f32.mrf.mxu0 }
 0x10f   :  { %v6330_v25 = vpop.f32.mrf.mxu1 }
 0x112   :  { %v6332_v26 = vpop.f32.mrf.mxu0 }
 0x113   :  { %v6334_v27 = vpop.f32.mrf.mxu1 }
 0x114   :  { %v6336_v28 = vpop.f32.mrf.mxu0 }
 0x115   :  { %v6338_v29 = vpop.f32.mrf.mxu1 }
 0x118   :  { %v6340_v30 = vpop.f32.mrf.mxu0 }
 0x119   :  { %v6342_v31 = vpop.f32.mrf.mxu1 }
 0x11a   :  { %v6344_v32 = vpop.f32.mrf.mxu0 }
 0x11b   :  { %v6346_v33 = vpop.f32.mrf.mxu1 }
 0x11e   :  { %v6348_v34 = vpop.f32.mrf.mxu0 }
 0x11f   :  { %v6350_v35 = vpop.f32.mrf.mxu1 }
 0x120   :  { %v6352_v36 = vpop.f32.mrf.mxu0 }
 0x121   :  { %v6354_v37 = vpop.f32.mrf.mxu1 }
 0x124   :  { %v6356_v38 = vpop.f32.mrf.mxu0 }
 0x125   :  { %v6358_v39 = vpop.f32.mrf.mxu1 }
 0x126   :  { %v6360_v40 = vpop.f32.mrf.mxu0 }
 0x127   :  { %v6362_v41 = vpop.f32.mrf.mxu1 }
 0x12a   :  { %v6364_v42 = vpop.f32.mrf.mxu0 }
 0x12b   :  { %v6366_v43 = vpop.f32.mrf.mxu1 }
 0x12c   :  { %v6368_v44 = vpop.f32.mrf.mxu0 }
 0x12d   :  { %v6370_v45 = vpop.f32.mrf.mxu1 }
 0x130   :  { %v6372_v46 = vpop.f32.mrf.mxu0 }
 0x131   :  { %v6374_v47 = vpop.f32.mrf.mxu1 }
 0x132   :  { %v6376_v48 = vpop.f32.mrf.mxu0 }
 0x133   :  { %v6378_v49 = vpop.f32.mrf.mxu1 }
 0x136   :  { %v6380_v50 = vpop.f32.mrf.mxu0 }
 0x137   :  { %v6382_v51 = vpop.f32.mrf.mxu1 }
 0x138   :  { %v6384_v52 = vpop.f32.mrf.mxu0 }
 0x139   :  { %v6386_v53 = vpop.f32.mrf.mxu1 }
 0x13c   :  { %v6388_v54 = vpop.f32.mrf.mxu0 }
 0x13d   :  { %v6390_v55 = vpop.f32.mrf.mxu1 }
 0x13e   :  { %v6392_v56 = vpop.f32.mrf.mxu0 }
 0x13f   :  { %v6394_v57 = vpop.f32.mrf.mxu1 }
 0x142   :  { %v6402_v60 = vpop.f32.mrf.mxu0 }
 0x143   :  { %v6404_v61 = vpop.f32.mrf.mxu1 }
 0x144   :  { %v6409_v63 = vpop.f32.mrf.mxu0 }
 0x145   :  { %v6411_v0 = vpop.f32.mrf.mxu1 }
 0x146   :  { %8681 = vst [vmem:[#allocation2_spill] sm:$0xff] %v6411_v0 }
 0x148   :  { %v6419_v3 = vpop.f32.mrf.mxu0 }
 0x149   :  { %8682 = vst [vmem:[#allocation3_spill] sm:$0xff] %v6419_v3  ;;  %v6421_v4 = vpop.f32.mrf.mxu1 }
 0x14a   :  { %8683 = vst [vmem:[#allocation4_spill] sm:$0xff] %v6421_v4  ;;  %v6426_v6 = vpop.f32.mrf.mxu0 }
 0x14b   :  { %8684 = vst [vmem:[#allocation5_spill] sm:$0xff] %v6426_v6  ;;  %v6428_v7 = vpop.f32.mrf.mxu1 }
 0x14c   :  { %8685 = vst [vmem:[#allocation6_spill] sm:$0xff] %v6428_v7 }
 0x14e   :  { %v6436_v10 = vpop.f32.mrf.mxu0 }
 0x14f   :  { %8686 = vst [vmem:[#allocation7_spill] sm:$0xff] %v6436_v10  ;;  %v6438_v11 = vpop.f32.mrf.mxu1 }
 0x150   :  { %8687 = vst [vmem:[#allocation8_spill] sm:$0xff] %v6438_v11  ;;  %v6443_v13 = vpop.f32.mrf.mxu0 }
 0x151   :  { %8688 = vst [vmem:[#allocation9_spill] sm:$0xff] %v6443_v13  ;;  %v6445_v14 = vpop.f32.mrf.mxu1 }
 0x152   :  { %8689 = vst [vmem:[#allocation10_spill] sm:$0xff] %v6445_v14 }
 0x154   :  { %v566_v17 = vpop.f32.mrf.mxu0 }
 0x155   :  { %v727_v18 = vpop.f32.mrf.mxu1  ;;  %v567_v62 = vadd.f32 %v566_v17, %v6480_v59 }
 0x156   :  { %v6456_v20 = vpop.f32.mrf.mxu0 }
 0x157   :  { %8690 = vst [vmem:[#allocation11_spill] sm:$0xff] %v6456_v20  ;;  %v6458_v58 = vpop.f32.mrf.mxu1  ;;  %v728_v11 = vadd.f32 %v727_v18, %v567_v62 }
 0x158   :  { %8691 = vst [vmem:[#allocation12_spill] sm:$0xff] %v6458_v58 }
 0x15a   :  { %v572_v1 = vpop.f32.mrf.mxu0 }
 0x15b   :  { %v733_v2 = vpop.f32.mrf.mxu1  ;;  %v573_v13 = vadd.f32 %v572_v1, %v6480_v59  ;;  %v6501_v1 = vrot.slane %v367_v21, %v6493_v16 }
 0x15c   :  { %v6463_v5 = vpop.f32.mrf.mxu0 }
 0x15d   :  { %8692 = vst [vmem:[#allocation13_spill] sm:$0xff] %v6463_v5  ;;  %v6465_v8 = vpop.f32.mrf.mxu1  ;;  %v734_v6 = vadd.f32 %v733_v2, %v573_v13  ;;  %v495_v13 = vadd.f32 %v6324_v22, %v6480_v59 }
 0x15e   :  { %8693 = vst [vmem:[#allocation14_spill] sm:$0xff] %v6465_v8 }
 0x160   :  { %v578_v12 = vpop.f32.mrf.mxu0 }
 0x161   :  { %v739_v15 = vpop.f32.mrf.mxu1  ;;  %v579_v17 = vadd.f32 %v578_v12, %v6480_v59 }
 0x162   :  { %v6475_v19 = vpop.f32.mrf.mxu0 }
 0x163   :  { %8696 = vst [vmem:[#allocation17_spill] sm:$0xff] %v6475_v19  ;;  %v6477_v58 = vpop.f32.mrf.mxu1 }
 0x164   :  { %8697 = vst [vmem:[#allocation18_spill] sm:$0xff] %v6477_v58 }
 0x166   :  { %v584_v5 = vpop.f32.mrf.mxu0 }
 0x167   :  { %v745_v8 = vpop.f32.mrf.mxu1 }
 0x168   :  { %v6483_v20 = vpop.f32.mrf.mxu0 }
 0x169   :  { %8698 = vst [vmem:[#allocation19_spill] sm:$0xff] %v6483_v20  ;;  %v6485_v14 = vpop.f32.mrf.mxu1 }
 0x16a   :  { %8699 = vst [vmem:[#allocation20_spill] sm:$0xff] %v6485_v14 }
 0x16c   :  { %v816_v7 = vpop.f32.mrf.mxu0 }
 0x16d   :  { %v888_v10 = vpop.f32.mrf.mxu1 }
 0x16e   :  { %v6488_v4 = vadd.f32 %v888_v10, %v728_v11  ;;  %v818_v19 = vpop.f32.mrf.mxu0  ;;  %v740_v10 = vadd.f32 %v739_v15, %v579_v17  ;;  %v585_v11 = vadd.f32 %v584_v5, %v6480_v59  ;;  %v656_v5 = vadd.f32 %v6326_v23, %v495_v13 }
 0x16f   :  { %v6490_v58 = vpop.f32.mrf.mxu1  ;;  %v507_v23 = vadd.f32 %v6340_v30, %v6480_v59 }
 0x170   :  { %8700 = vst [vmem:[#allocation21_spill] sm:$0xff] %v6488_v4  ;;  %v822_v0 = vpop.f32.mrf.mxu0 }
 0x171   :  { %v894_v20 = vpop.f32.mrf.mxu1 }
 0x172   :  { %v6496_v3 = vadd.f32 %v894_v20, %v734_v6  ;;  %v824_v18 = vpop.f32.mrf.mxu0  ;;  %v497_v6 = vadd.f32 %v6328_v24, %v6501_v1  ;;  %v746_v20 = vadd.f32 %v745_v8, %v585_v11 }
 0x173   :  { %v6498_v62 = vpop.f32.mrf.mxu1 }
 0x174   :  { %8702 = vst [vmem:[#allocation23_spill] sm:$0xff] %v6496_v3  ;;  %v828_v14 = vpop.f32.mrf.mxu0  ;;  %v658_v22 = vadd.f32 %v6330_v25, %v497_v6  ;;  %v509_v25 = vadd.f32 %v6344_v32, %v6501_v1  ;;  %v515_v32 = vadd.f32 %v6352_v36, %v6501_v1  ;;  %v521_v36 = vadd.f32 %v6360_v40, %v6501_v1 }
 0x175   :  { %v900_v4 = vpop.f32.mrf.mxu1  ;;  %v527_v40 = vadd.f32 %v6368_v44, %v6501_v1  ;;  %v533_v44 = vadd.f32 %v6376_v48, %v6501_v1  ;;  %v539_v48 = vadd.f32 %v6384_v52, %v6501_v1  ;;  %v545_v52 = vadd.f32 %v6392_v56, %v6501_v1 }
 0x176   :  { %v6504_v9 = vadd.f32 %v900_v4, %v740_v10  ;;  %v830_v2 = vpop.f32.mrf.mxu0  ;;  %v501_v4 = vadd.f32 %v6332_v26, %v6480_v59  ;;  %v503_v10 = vadd.f32 %v6336_v28, %v6501_v1  ;;  %v819_v11 = vadd.f32 %v818_v19, %v658_v22 }
 0x177   :  { %v6508_v12 = vpop.f32.mrf.mxu1  ;;  %v668_v19 = vadd.f32 %v6342_v31, %v507_v23  ;;  %v551_v56 = vadd.f32 %v6409_v63, %v6501_v1  ;;  %v8709_v63 = vld [vmem:[#allocation5_spill] sm:$0xff] }
 0x178   :  { %8703 = vst [vmem:[#allocation24_spill] sm:$0xff] %v6504_v9  ;;  %8704 = vst [vmem:[#allocation25_spill] sm:$0xff] %v6508_v12  ;;  %v834_v3 = vpop.f32.mrf.mxu0  ;;  %v817_v9 = vadd.f32 %v816_v7, %v656_v5 }
 0x179   :  { %v906_v21 = vpop.f32.mrf.mxu1 }
 0x17a   :  { %v6512_v16 = vadd.f32 %v906_v21, %v746_v20  ;;  %v836_v15 = vpop.f32.mrf.mxu0  ;;  %v662_v20 = vadd.f32 %v6334_v27, %v501_v4  ;;  %v513_v27 = vadd.f32 %v6348_v34, %v6480_v59  ;;  %v519_v34 = vadd.f32 %v6356_v38, %v6480_v59 }
 0x17b   :  { %v6517_v17 = vpop.f32.mrf.mxu1  ;;  %v525_v38 = vadd.f32 %v6364_v42, %v6480_v59  ;;  %v531_v42 = vadd.f32 %v6372_v46, %v6480_v59  ;;  %v537_v46 = vadd.f32 %v6380_v50, %v6480_v59  ;;  %v543_v50 = vadd.f32 %v6388_v54, %v6480_v59 }
 0x17c   :  { %8705 = vst [vmem:[#allocation26_spill] sm:$0xff] %v6512_v16  ;;  %8706 = vst [vmem:[#allocation27_spill] sm:$0xff] %v6517_v17  ;;  %v840_v24 = vpop.f32.mrf.mxu0  ;;  %v664_v16 = vadd.f32 %v6338_v29, %v503_v10  ;;  %v823_v17 = vadd.f32 %v822_v0, %v662_v20  ;;  %v670_v29 = vadd.f32 %v6346_v33, %v509_v25 }
 0x17d   :  { %v977_v8 = vpop.f32.mrf.mxu1  ;;  %v829_v0 = vadd.f32 %v828_v14, %v668_v19  ;;  %v549_v54 = vadd.f32 %v6402_v60, %v6480_v59  ;;  %v8707_v60 = vld [vmem:[#allocation3_spill] sm:$0xff] }
 0x17e   :  { %v978_v13 = vadd.f32 %v977_v8, %v817_v9  ;;  %v842_v21 = vpop.f32.mrf.mxu0  ;;  %v825_v5 = vadd.f32 %v824_v18, %v664_v16  ;;  %v831_v18 = vadd.f32 %v830_v2, %v670_v29  ;;  %v686_v29 = vadd.f32 %v6366_v43, %v525_v38 }
 0x17f   :  { %v979_v26 = vpop.f32.mrf.mxu1  ;;  %v692_v43 = vadd.f32 %v6374_v47, %v531_v42  ;;  %v698_v47 = vadd.f32 %v6382_v51, %v537_v46  ;;  %v704_v51 = vadd.f32 %v6390_v55, %v543_v50  ;;  %v710_v55 = vadd.f32 %v6404_v61, %v549_v54  ;;  %v8710_v61 = vld [vmem:[#allocation4_spill] sm:$0xff] }
 0x180   :  { %v980_v6 = vadd.f32 %v979_v26, %v819_v11  ;;  %v846_v28 = vpop.f32.mrf.mxu0  ;;  %v1072_v30 = vmax.f32 %v978_v13, 0.0  ;;  %v674_v11 = vadd.f32 %v6350_v35, %v513_v27  ;;  %v676_v13 = vadd.f32 %v6354_v37, %v515_v32 }
 0x181   :  { %v983_v7 = vpop.f32.mrf.mxu1  ;;  %v682_v27 = vadd.f32 %v6362_v41, %v521_v36 }
 0x182   :  { %v1073_v12 = vmax.f32 %v980_v6, 0.0  ;;  %v984_v9 = vadd.f32 %v983_v7, %v823_v17  ;;  %v848_v4 = vpop.f32.mrf.mxu0  ;;  %v837_v25 = vadd.f32 %v836_v15, %v676_v13  ;;  %v680_v6 = vadd.f32 %v6358_v39, %v519_v34 }
 0x183   :  { %v985_v22 = vpop.f32.mrf.mxu1 }
 0x184   :  { %v986_v10 = vadd.f32 %v985_v22, %v825_v5  ;;  %1207 = vmatprep.mubr.f32.mxu0 %v1073_v12  ;;  %v852_v8 = vpop.f32.mrf.mxu0  ;;  %v1074_v17 = vmax.f32 %v984_v9, 0.0  ;;  %v835_v12 = vadd.f32 %v834_v3, %v674_v11  ;;  %v843_v22 = vadd.f32 %v842_v21, %v682_v27 }
 0x185   :  { %v989_v16 = vpop.f32.mrf.mxu1  ;;  %1208 = vmatmul.mubr.f32.vlgmr.msra.gmra.mxu0 %v1072_v30  ;;  %v841_v30 = vadd.f32 %v840_v24, %v680_v6 }
 0x186   :  { %v1075_v31 = vmax.f32 %v986_v10, 0.0  ;;  %v990_v20 = vadd.f32 %v989_v16, %v829_v0  ;;  %v854_v23 = vpop.f32.mrf.mxu0  ;;  %v688_v16 = vadd.f32 %v6370_v45, %v527_v40  ;;  %v694_v45 = vadd.f32 %v6378_v49, %v533_v44 }
 0x187   :  { %v991_v33 = vpop.f32.mrf.mxu1  ;;  %v700_v49 = vadd.f32 %v6386_v53, %v539_v48  ;;  %v706_v53 = vadd.f32 %v6394_v57, %v545_v52  ;;  %v8708_v57 = vld [vmem:[#allocation2_spill] sm:$0xff] }
 0x188   :  { %v992_v14 = vadd.f32 %v991_v33, %v831_v18  ;;  %1212 = vmatprep.mubr.f32.mxu0 %v1075_v31  ;;  %v858_v26 = vpop.f32.mrf.mxu0  ;;  %v1076_v7 = vmax.f32 %v990_v20, 0.0  ;;  %v847_v18 = vadd.f32 %v846_v28, %v686_v29  ;;  %v849_v21 = vadd.f32 %v848_v4, %v688_v16 }
 0x189   :  { %v995_v2 = vpop.f32.mrf.mxu1  ;;  %1213 = vmatmul.mubr.f32.gmra.mxu0 %v1074_v17  ;;  %v853_v28 = vadd.f32 %v852_v8, %v692_v43  ;;  %v855_v4 = vadd.f32 %v854_v23, %v694_v45  ;;  %v859_v8 = vadd.f32 %v858_v26, %v698_v47  ;;  %v8713_v45 = vld [vmem:[#allocation9_spill] sm:$0xff] }
 0x18a   :  { %v1077_v35 = vmax.f32 %v992_v14, 0.0  ;;  %v996_v5 = vadd.f32 %v995_v2, %v835_v12  ;;  %v860_v19 = vpop.f32.mrf.mxu0  ;;  %v563_v48 = vadd.f32 %v8713_v45, %v6501_v1 }
 0x18b   :  { %v997_v37 = vpop.f32.mrf.mxu1  ;;  %v861_v23 = vadd.f32 %v860_v19, %v700_v49  ;;  %v8716_v49 = vld [vmem:[#allocation11_spill] sm:$0xff] }
 0x18c   :  { %v998_v3 = vadd.f32 %v997_v37, %v837_v25  ;;  %1217 = vmatprep.mubr.f32.mxu0 %v1077_v35  ;;  %v864_v9 = vpop.f32.mrf.mxu0  ;;  %v1078_v32 = vmax.f32 %v996_v5, 0.0  ;;  %v569_v52 = vadd.f32 %v8716_v49, %v6501_v1  ;;  %v1491_v49 = vld [vmem:[%s8650_s8 + $0x18] sm:$0xff] }
 0x18d   :  { %v1001_v15 = vpop.f32.mrf.mxu1  ;;  %1218 = vmatmul.mubr.f32.gmra.mxu0 %v1076_v7  ;;  %v865_v26 = vadd.f32 %v864_v9, %v704_v51 }
 0x18e   :  { %v1079_v39 = vmax.f32 %v998_v3, 0.0  ;;  %v1002_v10 = vadd.f32 %v1001_v15, %v841_v30  ;;  %v866_v0 = vpop.f32.mrf.mxu0 }
 0x18f   :  { %v1003_v41 = vpop.f32.mrf.mxu1  ;;  %v867_v19 = vadd.f32 %v866_v0, %v706_v53 }
 0x190   :  { %v1004_v24 = vadd.f32 %v1003_v41, %v843_v22  ;;  %1222 = vmatprep.mubr.f32.mxu0 %v1079_v39  ;;  %v1080_v34 = vmax.f32 %v1002_v10, 0.0  ;;  %v870_v17 = vpop.f32.mrf.mxu0  ;;  %v555_v22 = vadd.f32 %v8707_v60, %v6480_v59  ;;  %v712_v10 = vadd.f32 %v8708_v57, %v551_v56 }
 0x191   :  { %v1007_v31 = vpop.f32.mrf.mxu1  ;;  %1223 = vmatmul.mubr.f32.gmra.mxu0 %v1078_v32  ;;  %v557_v41 = vadd.f32 %v8709_v63, %v6501_v1  ;;  %v871_v9 = vadd.f32 %v870_v17, %v710_v55 }
 0x192   :  { %v1081_v11 = vmax.f32 %v1004_v24, 0.0  ;;  %v1008_v20 = vadd.f32 %v1007_v31, %v847_v18  ;;  %v872_v2 = vpop.f32.mrf.mxu0  ;;  %v716_v18 = vadd.f32 %v8710_v61, %v555_v22  ;;  %v8711_v31 = vld [vmem:[#allocation7_spill] sm:$0xff]  ;;  %v8720_v22 = vld [vmem:[#allocation14_spill] sm:$0xff] }
 0x193   :  { %v1009_v33 = vpop.f32.mrf.mxu1  ;;  %v873_v0 = vadd.f32 %v872_v2, %v712_v10 }
 0x194   :  { %v1010_v13 = vadd.f32 %v1009_v33, %v849_v21  ;;  %1227 = vmatprep.mubr.f32.mxu0 %v1081_v11  ;;  %v1082_v12 = vmax.f32 %v1008_v20, 0.0  ;;  %v876_v5 = vpop.f32.mrf.mxu0  ;;  %v561_v21 = vadd.f32 %v8711_v31, %v6480_v59  ;;  %v8712_v20 = vld [vmem:[#allocation6_spill] sm:$0xff] }
 0x195   :  { %v1013_v36 = vpop.f32.mrf.mxu1  ;;  %1228 = vmatmul.mubr.f32.gmra.mxu0 %v1080_v34  ;;  %v718_v33 = vadd.f32 %v8712_v20, %v557_v41  ;;  %v877_v17 = vadd.f32 %v876_v5, %v716_v18 }
 0x196   :  { %v1083_v14 = vmax.f32 %v1010_v13, 0.0  ;;  %v1014_v25 = vadd.f32 %v1013_v36, %v853_v28  ;;  %v878_v39 = vpop.f32.mrf.mxu0 }
 0x197   :  { %v1015_v35 = vpop.f32.mrf.mxu1  ;;  %v879_v36 = vadd.f32 %v878_v39, %v718_v33  ;;  %v8727_v33 = vld [vmem:[#allocation20_spill] sm:$0xff] }
 0x198   :  { %v1016_v6 = vadd.f32 %v1015_v35, %v855_v4  ;;  %1232 = vmatprep.mubr.f32.mxu0 %v1083_v14  ;;  %v1084_v37 = vmax.f32 %v1014_v25, 0.0  ;;  %v882_v11 = vpop.f32.mrf.mxu0  ;;  %v8714_v14 = vld [vmem:[#allocation8_spill] sm:$0xff]  ;;  %v8715_v25 = vld [vmem:[#allocation10_spill] sm:$0xff] }
 0x199   :  { %v1019_v38 = vpop.f32.mrf.mxu1  ;;  %1233 = vmatmul.mubr.f32.gmra.mxu0 %v1082_v12  ;;  %v722_v47 = vadd.f32 %v8714_v14, %v561_v21  ;;  %v724_v35 = vadd.f32 %v8715_v25, %v563_v48  ;;  %v8725_v21 = vld [vmem:[#allocation25_spill] sm:$0xff]  ;;  %v1305_v25 = vld [vmem:[%s8648_s6 + $0x8] sm:$0xff] }
 0x19a   :  { %v1085_v7 = vmax.f32 %v1016_v6, 0.0  ;;  %v1020_v27 = vadd.f32 %v1019_v38, %v859_v8  ;;  %v884_v50 = vpop.f32.mrf.mxu0 }
 0x19b   :  { %v1021_v40 = vpop.f32.mrf.mxu1  ;;  %v883_v8 = vadd.f32 %v882_v11, %v722_v47 }
 0x19c   :  { %v1022_v3 = vadd.f32 %v1021_v40, %v861_v23  ;;  %1237 = vmatprep.mubr.f32.mxu0 %v1085_v7  ;;  %v1086_v29 = vmax.f32 %v1020_v27, 0.0  ;;  %v885_v23 = vadd.f32 %v884_v50, %v724_v35  ;;  %v8718_v40 = vld [vmem:[#allocation13_spill] sm:$0xff]  ;;  %v1304_v35 = vld [vmem:[%s8648_s6] sm:$0xff] }
 0x19d   :  { %v1025_v30 = vpop.f32.mrf.mxu1  ;;  %1238 = vmatmul.mubr.f32.gmra.mxu0 %v1084_v37  ;;  %v8717_v37 = vld [vmem:[#allocation12_spill] sm:$0xff]  ;;  %v575_v53 = vadd.f32 %v8718_v40, %v6501_v1 }
 0x19e   :  { %v1087_v15 = vmax.f32 %v1022_v3, 0.0  ;;  %v1026_v42 = vadd.f32 %v1025_v30, %v865_v26  ;;  %v730_v27 = vadd.f32 %v8717_v37, %v569_v52 }
 0x19f   :  { %v1027_v32 = vpop.f32.mrf.mxu1  ;;  %v736_v39 = vadd.f32 %v8720_v22, %v575_v53 }
 0x1a0   :  { %v1028_v16 = vadd.f32 %v1027_v32, %v867_v19  ;;  %1242 = vmatprep.mubr.f32.mxu0 %v1087_v15  ;;  %v1088_v43 = vmax.f32 %v1026_v42, 0.0  ;;  %v891_v26 = vadd.f32 %v6490_v58, %v730_v27  ;;  %v8719_v15 = vld [vmem:[#allocation21_spill] sm:$0xff] }
 0x1a1   :  { %v1031_v44 = vpop.f32.mrf.mxu1  ;;  %1243 = vmatmul.mubr.f32.gmra.mxu0 %v1086_v29  ;;  %v8721_v29 = vld [vmem:[#allocation17_spill] sm:$0xff]  ;;  %v897_v10 = vadd.f32 %v6498_v62, %v736_v39 }
 0x1a2   :  { %v1089_v24 = vmax.f32 %v1028_v16, 0.0  ;;  %v1032_v46 = vadd.f32 %v1031_v44, %v871_v9  ;;  %v581_v42 = vadd.f32 %v8721_v29, %v6501_v1  ;;  %v8722_v16 = vld [vmem:[#allocation23_spill] sm:$0xff]  ;;  %v8723_v44 = vld [vmem:[#allocation18_spill] sm:$0xff] }
 0x1a3   :  { %v1033_v34 = vpop.f32.mrf.mxu1 }
 0x1a4   :  { %v1034_v13 = vadd.f32 %v1033_v34, %v873_v0  ;;  %1247 = vmatprep.mubr.f32.mxu0 %v1089_v24  ;;  %v1090_v59 = vmax.f32 %v1032_v46, 0.0  ;;  %v742_v0 = vadd.f32 %v8723_v44, %v581_v42  ;;  %v8724_v24 = vld [vmem:[#allocation19_spill] sm:$0xff]  ;;  %v8726_v34 = vld [vmem:[#allocation24_spill] sm:$0xff] }
 0x1a5   :  { %v1037_v28 = vpop.f32.mrf.mxu1  ;;  %1248 = vmatmul.mubr.f32.gmra.mxu0 %v1088_v43  ;;  %v587_v61 = vadd.f32 %v8724_v24, %v6501_v1 }
 0x1a6   :  { %v1091_v4 = vmax.f32 %v1034_v13, 0.0  ;;  %v1038_v12 = vadd.f32 %v1037_v28, %v877_v17  ;;  %v903_v11 = vadd.f32 %v8725_v21, %v742_v0  ;;  %v8728_v17 = vld [vmem:[#allocation27_spill] sm:$0xff] }
 0x1a7   :  { %v1039_v2 = vpop.f32.mrf.mxu1  ;;  %v748_v45 = vadd.f32 %v8727_v33, %v587_v61 }
 0x1a8   :  { %v1040_v6 = vadd.f32 %v1039_v2, %v879_v36  ;;  %1252 = vmatprep.mubr.f32.mxu0 %v1091_v4  ;;  %v1092_v51 = vmax.f32 %v1038_v12, 0.0  ;;  %v8729_v4 = vld [vmem:[#allocation26_spill] sm:$0xff]  ;;  %v1306_v2 = vld [vmem:[%s8648_s6 + $0x10] sm:$0xff] }
 0x1a9   :  { %v1043_v38 = vpop.f32.mrf.mxu1  ;;  %1253 = vmatmul.mubr.f32.gmra.mxu0 %v1090_v59  ;;  %v909_v28 = vadd.f32 %v8728_v17, %v748_v45  ;;  %4506 = vmatprep.subr.mxu1 %v1306_v2 }
 0x1aa   :  { %v1093_v7 = vmax.f32 %v1040_v6, 0.0  ;;  %v1044_v54 = vadd.f32 %v1043_v38, %v883_v8  ;;  %4507 = vmatpush3.msra.mxu1 %v1306_v2  ;;  %v6619_v6 = vld [vmem:[%s8651_s5] ss:$0 sm:$0xff] }
 0x1ab   :  { %v1045_v5 = vpop.f32.mrf.mxu1  ;;  %4508 = vmatprep.subr.mxu1 %v1305_v25 }
 0x1ac   :  { %v1046_v56 = vadd.f32 %v1045_v5, %v885_v23  ;;  %1257 = vmatprep.mubr.f32.mxu0 %v1093_v7  ;;  %v1094_v19 = vmax.f32 %v1044_v54, 0.0  ;;  %4509 = vmatpush3.msra.mxu1 %v1305_v25 }
 0x1ad   :  { %v1049_v3 = vpop.f32.mrf.mxu1  ;;  %1258 = vmatmul.mubr.f32.gmra.mxu0 %v1092_v51  ;;  %4510 = vmatprep.subr.mxu1 %v1304_v35 }
 0x1ae   :  { %v1095_v30 = vmax.f32 %v1046_v56, 0.0  ;;  %v1050_v55 = vadd.f32 %v1049_v3, %v8719_v15  ;;  %4511 = vmatpush3.msra.mxu1 %v1304_v35  ;;  %v1489_v15 = vld [vmem:[%s8650_s8 + $0x8] sm:$0xff] }
 0x1af   :  { %v1051_v60 = vpop.f32.mrf.mxu1  ;;  %4536 = vmatprep.subr.mxu1 %v1491_v49 }
 0x1b0   :  { %v1052_v32 = vadd.f32 %v1051_v60, %v891_v26  ;;  %1262 = vmatprep.mubr.f32.mxu0 %v1095_v30  ;;  %v1096_v41 = vmax.f32 %v1050_v55, 0.0  ;;  %v1490_v26 = vld [vmem:[%s8650_s8 + $0x10] sm:$0xff] }
 0x1b1   :  { %v1055_v57 = vpop.f32.mrf.mxu1  ;;  %1263 = vmatmul.mubr.f32.gmra.mxu0 %v1094_v19 }
 0x1b2   :  { %v1097_v63 = vmax.f32 %v1052_v32, 0.0  ;;  %v1056_v58 = vadd.f32 %v1055_v57, %v8722_v16 }
 0x1b3   :  { %v1057_v9 = vpop.f32.mrf.mxu1 }
 0x1b4   :  { %v1058_v18 = vadd.f32 %v1057_v9, %v897_v10  ;;  %1267 = vmatprep.mubr.f32.mxu0 %v1097_v63  ;;  %v1098_v46 = vmax.f32 %v1056_v58, 0.0 }
 0x1b5   :  { %v1061_v31 = vpop.f32.mrf.mxu1  ;;  %1268 = vmatmul.mubr.f32.gmra.mxu0 %v1096_v41 }
 0x1b6   :  { %v1099_v43 = vmax.f32 %v1058_v18, 0.0  ;;  %v1062_v62 = vadd.f32 %v1061_v31, %v8726_v34 }
 0x1b7   :  { %v1063_v20 = vpop.f32.mrf.mxu1 }
 0x1b8   :  { %v1064_v48 = vadd.f32 %v1063_v20, %v903_v11  ;;  %1272 = vmatprep.mubr.f32.mxu0 %v1099_v43  ;;  %v1100_v36 = vmax.f32 %v1062_v62, 0.0 }
 0x1b9   :  { %v1067_v13 = vpop.f32.mrf.mxu1  ;;  %1273 = vmatmul.mubr.f32.gmra.mxu0 %v1098_v46 }
 0x1ba   :  { %v1101_v1 = vmax.f32 %v1064_v48, 0.0  ;;  %v1068_v14 = vadd.f32 %v1067_v13, %v8729_v4 }
 0x1bb   :  { %v1069_v47 = vpop.f32.mrf.mxu1 }
 0x1bc   :  { %v1070_v50 = vadd.f32 %v1069_v47, %v909_v28  ;;  %1277 = vmatprep.mubr.f32.mxu0 %v1101_v1  ;;  %v1102_v12 = vmax.f32 %v1068_v14, 0.0 }
 0x1bd   :  { %1278 = vmatmul.mubr.f32.gmra.mxu0 %v1100_v36 }
 0x1be   :  { %v1103_v59 = vmax.f32 %v1070_v50, 0.0 }
 0x1c0   :  { %1282 = vmatprep.mubr.f32.mxu0 %v1103_v59 }
 0x1c1   :  { %1283 = vmatmul.mubr.f32.gmra.mxu0 %v1102_v12 }
 0x245   :  { %v4263_v52 = vpop.f32.mrf.mxu0 }
 0x247   :  { %v4264_v8 = vpop.f32.mrf.mxu0 }
 0x248   :  { %v4265_v38 = vadd.f32 %v4264_v8, %v4263_v52 }
 0x249   :  { %v4266_v23 = vpop.f32.mrf.mxu0 }
 0x24a   :  { %v1210_v7 = vadd.f32 %v4265_v38, %v6619_v6 }
 0x24b   :  { %v4267_v51 = vpop.f32.mrf.mxu0 }
 0x24c   :  { %v4268_v54 = vadd.f32 %v4267_v51, %v4266_v23  ;;  %v1288_v5 = vmax.f32 %v1210_v7, 0.0 }
 0x24d   :  { %v4269_v37 = vpop.f32.mrf.mxu0 }
 0x24e   :  { %v1215_v27 = vadd.f32 %v4268_v54, %v6619_v6  ;;  %4512 = vmatprep.mubr.f32.mxu1 %v1288_v5 }
 0x24f   :  { %v4270_v40 = vpop.f32.mrf.mxu0 }
 0x250   :  { %v1289_v53 = vmax.f32 %v1215_v27, 0.0  ;;  %v4271_v56 = vadd.f32 %v4270_v40, %v4269_v37 }
 0x251   :  { %v4272_v3 = vpop.f32.mrf.mxu0 }
 0x252   :  { %v1220_v30 = vadd.f32 %v4271_v56, %v6619_v6  ;;  %4513 = vmatmul.mubr.f32.vlgmr.msra.gmra.mxu1 %v1289_v53 }
 0x253   :  { %v4273_v19 = vpop.f32.mrf.mxu0  ;;  %4537 = vmatpush3.msra.mxu1 %v1491_v49 }
 0x254   :  { %v4274_v55 = vadd.f32 %v4273_v19, %v4272_v3  ;;  %v1290_v60 = vmax.f32 %v1220_v30, 0.0  ;;  %4538 = vmatprep.subr.mxu1 %v1490_v26 }
 0x255   :  { %v4275_v22 = vpop.f32.mrf.mxu0  ;;  %4539 = vmatpush3.msra.mxu1 %v1490_v26 }
 0x256   :  { %v1225_v39 = vadd.f32 %v4274_v55, %v6619_v6  ;;  %4515 = vmatprep.mubr.f32.mxu1 %v1290_v60  ;;  %4540 = vmatprep.subr.mxu1 %v1489_v15  ;;  %v1488_v60 = vld [vmem:[%s8650_s8] sm:$0xff] }
 0x257   :  { %v4276_v29 = vpop.f32.mrf.mxu0  ;;  %4541 = vmatpush3.msra.mxu1 %v1489_v15 }
 0x258   :  { %v4277_v42 = vadd.f32 %v4276_v29, %v4275_v22  ;;  %v1291_v32 = vmax.f32 %v1225_v39, 0.0  ;;  %4542 = vmatprep.subr.mxu1 %v1488_v60  ;;  %v1741_v22 = vld [vmem:[%s8652_s1] sm:$0xff]  ;;  %v1743_v39 = vld [vmem:[%s8652_s1 + $0x10] sm:$0xff]  ;;  %v1744_v29 = vld [vmem:[%s8652_s1 + $0x18] sm:$0xff] }
 0x259   :  { %v4278_v57 = vpop.f32.mrf.mxu0  ;;  %4543 = vmatpush3.msra.mxu1 %v1488_v60  ;;  %1773 = vrot.lane.b32.xlu0 %v1741_v22, %s5175_s4 }
 0x25a   :  { %v1230_v10 = vadd.f32 %v4277_v42, %v6619_v6  ;;  %4516 = vmatmul.mubr.f32.gmra.mxu1 %v1291_v32  ;;  %1777 = vrot.lane.b32.xlu1 %v1743_v39, %s5175_s4  ;;  %v1746_v42 = vld [vmem:[%s8652_s1 + $0x28] sm:$0xff]  ;;  %v1745_v32 = vld [vmem:[%s8652_s1 + $0x20] sm:$0xff] }
 0x25b   :  { %v4279_v63 = vpop.f32.mrf.mxu0  ;;  %v1917_v39 = vld [vmem:[%s8654_s10] sm:$0xf] }
 0x25c   :  { %v4280_v41 = vadd.f32 %v4279_v63, %v4278_v57  ;;  %v1292_v16 = vmax.f32 %v1230_v10, 0.0  ;;  %v1748_v57 = vld [vmem:[%s8652_s1 + $0x38] sm:$0xff]  ;;  %v1747_v10 = vld [vmem:[%s8652_s1 + $0x30] sm:$0xff]  ;;  %v1750_v63 = vld [vmem:[%s8652_s1 + $0x48] sm:$0xff]  ;;  %4568 = vmatprep.subr.msk.mxu0 %vm1974_vm2, %v1917_v39 }
 0x25d   :  { %v4281_v58 = vpop.f32.mrf.mxu0  ;;  %4569 = vmatpush3.msk.msra.mxu0 %vm1974_vm2, %v1917_v39 }
 0x25e   :  { %v1235_v9 = vadd.f32 %v4280_v41, %v6619_v6  ;;  %4518 = vmatprep.mubr.f32.mxu1 %v1292_v16  ;;  %1779 = vrot.lane.b32.xlu1 %v1744_v29, %s5175_s4  ;;  %v1749_v41 = vld [vmem:[%s8652_s1 + $0x40] sm:$0xff]  ;;  %v1752_v16 = vld [vmem:[%s8652_s1 + $0x58] sm:$0xff] }
 0x25f   :  { %v4282_v44 = vpop.f32.mrf.mxu0 }
 0x260   :  { %v4283_v0 = vadd.f32 %v4282_v44, %v4281_v58  ;;  %v1293_v24 = vmax.f32 %v1235_v9, 0.0  ;;  %v1751_v58 = vld [vmem:[%s8652_s1 + $0x50] sm:$0xff]  ;;  %v1754_v9 = vld [vmem:[%s8652_s1 + $0x68] sm:$0xff]  ;;  %v1753_v44 = vld [vmem:[%s8652_s1 + $0x60] sm:$0xff] }
 0x261   :  { %v4284_v61 = vpop.f32.mrf.mxu0 }
 0x262   :  { %v1240_v18 = vadd.f32 %v4283_v0, %v6619_v6  ;;  %4519 = vmatmul.mubr.f32.gmra.mxu1 %v1293_v24  ;;  %1783 = vrot.lane.b32.xlu1 %v1746_v42, %s5175_s4  ;;  %v1756_v0 = vld [vmem:[%s8652_s1 + $0x78] sm:$0xff]  ;;  %v1755_v24 = vld [vmem:[%s8652_s1 + $0x70] sm:$0xff] }
 0x263   :  { %v4285_v31 = vpop.f32.mrf.mxu0 }
 0x264   :  { %v4286_v21 = vadd.f32 %v4285_v31, %v4284_v61  ;;  %v1294_v11 = vmax.f32 %v1240_v18, 0.0  ;;  %v4178_v61 = vld [vmem:[%s8653_s7] ss:$0 sm:$0xff] }
 0x265   :  { %v4287_v43 = vpop.f32.mrf.mxu0 }
 0x266   :  { %v1245_v46 = vadd.f32 %v4286_v21, %v6619_v6  ;;  %4521 = vmatprep.mubr.f32.mxu1 %v1294_v11  ;;  %1787 = vrot.lane.b32.xlu1 %v1748_v57, %s5175_s4 }
 0x267   :  { %v4288_v34 = vpop.f32.mrf.mxu0 }
 0x268   :  { %v4289_v62 = vadd.f32 %v4288_v34, %v4287_v43  ;;  %v1295_v20 = vmax.f32 %v1245_v46, 0.0 }
 0x269   :  { %v4290_v33 = vpop.f32.mrf.mxu0 }
 0x26a   :  { %v1250_v45 = vadd.f32 %v4289_v62, %v6619_v6  ;;  %4522 = vmatmul.mubr.f32.gmra.mxu1 %v1295_v20  ;;  %1791 = vrot.lane.b32.xlu1 %v1750_v63, %s5175_s4 }
 0x26b   :  { %v4291_v48 = vpop.f32.mrf.mxu0 }
 0x26c   :  { %v4292_v13 = vadd.f32 %v4291_v48, %v4290_v33  ;;  %v1296_v17 = vmax.f32 %v1250_v45, 0.0 }
 0x26d   :  { %v4293_v28 = vpop.f32.mrf.mxu0 }
 0x26e   :  { %v1255_v1 = vadd.f32 %v4292_v13, %v6619_v6  ;;  %4524 = vmatprep.mubr.f32.mxu1 %v1296_v17  ;;  %1795 = vrot.lane.b32.xlu1 %v1752_v16, %s5175_s4 }
 0x26f   :  { %v4294_v36 = vpop.f32.mrf.mxu0 }
 0x270   :  { %v4295_v4 = vadd.f32 %v4294_v36, %v4293_v28  ;;  %v1297_v14 = vmax.f32 %v1255_v1, 0.0 }
 0x271   :  { %v4296_v47 = vpop.f32.mrf.mxu0 }
 0x272   :  { %v1260_v50 = vadd.f32 %v4295_v4, %v6619_v6  ;;  %4525 = vmatmul.mubr.f32.gmra.mxu1 %v1297_v14  ;;  %1799 = vrot.lane.b32.xlu1 %v1754_v9, %s5175_s4 }
 0x273   :  { %v4297_v59 = vpop.f32.mrf.mxu0 }
 0x274   :  { %v4298_v12 = vadd.f32 %v4297_v59, %v4296_v47  ;;  %v1298_v2 = vmax.f32 %v1260_v50, 0.0 }
 0x275   :  { %v4299_v25 = vpop.f32.mrf.mxu0 }
 0x276   :  { %v1265_v35 = vadd.f32 %v4298_v12, %v6619_v6  ;;  %4527 = vmatprep.mubr.f32.mxu1 %v1298_v2  ;;  %1803 = vrot.lane.b32.xlu1 %v1756_v0, %s5175_s4 }
 0x277   :  { %v4300_v49 = vpop.f32.mrf.mxu0 }
 0x278   :  { %v4301_v52 = vadd.f32 %v4300_v49, %v4299_v25  ;;  %v1299_v8 = vmax.f32 %v1265_v35, 0.0 }
 0x279   :  { %v4302_v38 = vpop.f32.mrf.mxu0 }
 0x27a   :  { %v1270_v23 = vadd.f32 %v4301_v52, %v6619_v6  ;;  %4528 = vmatmul.mubr.f32.gmra.mxu1 %v1299_v8 }
 0x27b   :  { %v4303_v7 = vpop.f32.mrf.mxu0 }
 0x27c   :  { %v4304_v51 = vadd.f32 %v4303_v7, %v4302_v38  ;;  %v1300_v54 = vmax.f32 %v1270_v23, 0.0 }
 0x27d   :  { %v4305_v5 = vpop.f32.mrf.mxu0 }
 0x27e   :  { %v1275_v37 = vadd.f32 %v4304_v51, %v6619_v6  ;;  %4530 = vmatprep.mubr.f32.mxu1 %v1300_v54 }
 0x27f   :  { %v4306_v27 = vpop.f32.mrf.mxu0 }
 0x280   :  { %v4307_v40 = vadd.f32 %v4306_v27, %v4305_v5  ;;  %v1301_v53 = vmax.f32 %v1275_v37, 0.0 }
 0x281   :  { %v4308_v56 = vpop.f32.mrf.mxu0 }
 0x282   :  { %v1280_v3 = vadd.f32 %v4307_v40, %v6619_v6  ;;  %4531 = vmatmul.mubr.f32.gmra.mxu1 %v1301_v53 }
 0x283   :  { %v4309_v26 = vpop.f32.mrf.mxu0 }
 0x284   :  { %v4310_v30 = vadd.f32 %v4309_v26, %v4308_v56  ;;  %v1302_v19 = vmax.f32 %v1280_v3, 0.0 }
 0x286   :  { %v1285_v15 = vadd.f32 %v4310_v30, %v6619_v6  ;;  %4533 = vmatprep.mubr.f32.mxu1 %v1302_v19  ;;  %v1742_v6 = vld [vmem:[%s8652_s1 + $0x8] sm:$0xff] }
 0x287   :  { %1775 = vrot.lane.b32.xlu0 %v1742_v6, %s5175_s4  ;;  %v6719_v6 = vld [vmem:[%s8655_s9] ss:$0 sm:$0xff]  ;;  %s5176_s9 = smov 124  }
 0x288   :  { %v1303_v55 = vmax.f32 %v1285_v15, 0.0 }
 0x28a   :  { %4534 = vmatmul.mubr.f32.gmra.mxu1 %v1303_v55 }
 0x28b   :  { %1781 = vrot.lane.b32.xlu0 %v1745_v32, %s5175_s4 }
 0x28f   :  { %1785 = vrot.lane.b32.xlu0 %v1747_v10, %s5175_s4 }
 0x293   :  { %1789 = vrot.lane.b32.xlu0 %v1749_v41, %s5175_s4 }
 0x297   :  { %1793 = vrot.lane.b32.xlu0 %v1751_v58, %s5175_s4 }
 0x29b   :  { %1797 = vrot.lane.b32.xlu0 %v1753_v44, %s5175_s4 }
 0x29f   :  { %1801 = vrot.lane.b32.xlu0 %v1755_v24, %s5175_s4 }
 0x312   :  { %v4514_v18 = vpop.f32.mrf.mxu1 }
 0x313   :  { %v1399_v31 = vadd.f32 %v4514_v18, %v4178_v61 }
 0x314   :  { %v1393_v21 = vpop.f32.mrf.mxu1 }
 0x315   :  { %v1394_v11 = vadd.f32 %v4178_v61, %v1393_v21  ;;  %v1473_v46 = vmax.f32 %v1399_v31, 0.0 }
 0x317   :  { %v1472_v43 = vmax.f32 %v1394_v11, 0.0 }
 0x319   :  { %4544 = vmatprep.mubr.msk.f32.mxu1 %vm1499_vm1, %v1472_v43 }
 0x31a   :  { %v4517_v34 = vpop.f32.mrf.mxu1  ;;  %4545 = vmatmul.mubr.msk.f32.vlgmr.msra.gmra.mxu1 %vm1499_vm1, %v1473_v46 }
 0x31b   :  { %v1409_v62 = vadd.f32 %v4517_v34, %v4178_v61 }
 0x31c   :  { %v1403_v20 = vpop.f32.mrf.mxu1 }
 0x31d   :  { %v1404_v33 = vadd.f32 %v4178_v61, %v1403_v20  ;;  %v1475_v48 = vmax.f32 %v1409_v62, 0.0 }
 0x31f   :  { %v1474_v45 = vmax.f32 %v1404_v33, 0.0 }
 0x321   :  { %4547 = vmatprep.mubr.msk.f32.mxu1 %vm1499_vm1, %v1474_v45  ;;  %v1778_v45 = vpop.permute.xlu1 %1777 }
 0x322   :  { %v4520_v13 = vpop.f32.mrf.mxu1  ;;  %4548 = vmatmul.mubr.msk.f32.gmra.mxu1 %vm1499_vm1, %v1475_v48 }
 0x323   :  { %v1419_v17 = vadd.f32 %v4520_v13, %v4178_v61 }
 0x324   :  { %v1413_v28 = vpop.f32.mrf.mxu1 }
 0x325   :  { %v1414_v1 = vadd.f32 %v4178_v61, %v1413_v28  ;;  %v1477_v4 = vmax.f32 %v1419_v17, 0.0 }
 0x327   :  { %v1476_v36 = vmax.f32 %v1414_v1, 0.0 }
 0x329   :  { %4550 = vmatprep.mubr.msk.f32.mxu1 %vm1499_vm1, %v1476_v36 }
 0x32a   :  { %v4523_v14 = vpop.f32.mrf.mxu1  ;;  %4551 = vmatmul.mubr.msk.f32.gmra.mxu1 %vm1499_vm1, %v1477_v4 }
 0x32b   :  { %v1429_v47 = vadd.f32 %v4523_v14, %v4178_v61 }
 0x32c   :  { %v1423_v50 = vpop.f32.mrf.mxu1 }
 0x32d   :  { %v1424_v59 = vadd.f32 %v4178_v61, %v1423_v50  ;;  %v1479_v2 = vmax.f32 %v1429_v47, 0.0  ;;  %v1780_v50 = vpop.permute.xlu1 %1779 }
 0x32f   :  { %v1478_v12 = vmax.f32 %v1424_v59, 0.0 }
 0x331   :  { %4553 = vmatprep.mubr.msk.f32.mxu1 %vm1499_vm1, %v1478_v12 }
 0x332   :  { %v4526_v25 = vpop.f32.mrf.mxu1  ;;  %4554 = vmatmul.mubr.msk.f32.gmra.mxu1 %vm1499_vm1, %v1479_v2 }
 0x333   :  { %v1439_v35 = vadd.f32 %v4526_v25, %v4178_v61 }
 0x334   :  { %v1433_v49 = vpop.f32.mrf.mxu1 }
 0x335   :  { %v1434_v52 = vadd.f32 %v4178_v61, %v1433_v49  ;;  %v1481_v38 = vmax.f32 %v1439_v35, 0.0 }
 0x337   :  { %v1480_v8 = vmax.f32 %v1434_v52, 0.0 }
 0x339   :  { %4556 = vmatprep.mubr.msk.f32.mxu1 %vm1499_vm1, %v1480_v8 }
 0x33a   :  { %v4529_v23 = vpop.f32.mrf.mxu1  ;;  %4557 = vmatmul.mubr.msk.f32.gmra.mxu1 %vm1499_vm1, %v1481_v38 }
 0x33b   :  { %v1449_v7 = vadd.f32 %v4529_v23, %v4178_v61 }
 0x33c   :  { %v1443_v51 = vpop.f32.mrf.mxu1 }
 0x33d   :  { %v1444_v54 = vadd.f32 %v4178_v61, %v1443_v51  ;;  %v1483_v37 = vmax.f32 %v1449_v7, 0.0 }
 0x33f   :  { %v1482_v5 = vmax.f32 %v1444_v54, 0.0  ;;  %v1784_v54 = vpop.permute.xlu1 %1783 }
 0x341   :  { %4559 = vmatprep.mubr.msk.f32.mxu1 %vm1499_vm1, %v1482_v5 }
 0x342   :  { %v4532_v27 = vpop.f32.mrf.mxu1  ;;  %4560 = vmatmul.mubr.msk.f32.gmra.mxu1 %vm1499_vm1, %v1483_v37 }
 0x343   :  { %v1459_v40 = vadd.f32 %v4532_v27, %v4178_v61 }
 0x344   :  { %v1453_v53 = vpop.f32.mrf.mxu1 }
 0x345   :  { %v1454_v56 = vadd.f32 %v4178_v61, %v1453_v53  ;;  %v1485_v26 = vmax.f32 %v1459_v40, 0.0 }
 0x347   :  { %v1484_v3 = vmax.f32 %v1454_v56, 0.0 }
 0x349   :  { %4562 = vmatprep.mubr.msk.f32.mxu1 %vm1499_vm1, %v1484_v3 }
 0x34a   :  { %v4535_v30 = vpop.f32.mrf.mxu1  ;;  %4563 = vmatmul.mubr.msk.f32.gmra.mxu1 %vm1499_vm1, %v1485_v26 }
 0x34b   :  { %v1469_v19 = vadd.f32 %v4535_v30, %v4178_v61 }
 0x34c   :  { %v1463_v15 = vpop.f32.mrf.mxu1 }
 0x34d   :  { %v1464_v55 = vadd.f32 %v4178_v61, %v1463_v15  ;;  %v1487_v22 = vmax.f32 %v1469_v19, 0.0  ;;  %v1774_v61 = vpop.permute.xlu0 %1773 }
 0x34f   :  { %v1486_v60 = vmax.f32 %v1464_v55, 0.0 }
 0x351   :  { %4565 = vmatprep.mubr.msk.f32.mxu1 %vm1499_vm1, %v1486_v60  ;;  %v1776_v34 = vpop.permute.xlu0 %1775 }
 0x352   :  { %4566 = vmatmul.mubr.msk.f32.gmra.mxu1 %vm1499_vm1, %v1487_v22  ;;  %v1788_v22 = vpop.permute.xlu1 %1787 }
 0x355   :  { %v1782_v40 = vpop.permute.xlu0 %1781 }
 0x3da   :  { %v4546_v29 = vpop.f32.mrf.mxu1 }
 0x3db   :  { %v6722_v42 = vadd.f32 %v4546_v29, %v6719_v6 }
 0x3dc   :  { %v1614_v32 = vpop.f32.mrf.mxu1 }
 0x3dd   :  { %v1694_v57 = vmul.f32 0.5, %v6722_v42  ;;  %v6726_v10 = vadd.f32 %v6719_v6, %v1614_v32 }
 0x3df   :  { %v1711_v63 = vmul.f32 1.442695, %v1694_v57  ;;  %v1693_v41 = vmul.f32 0.5, %v6726_v10  ;;  %v1786_v57 = vpop.permute.xlu0 %1785 }
 0x3e1   :  { %4693 = vpow2.f32 %v1711_v63  ;;  %v1709_v16 = vmul.f32 1.442695, %v1693_v41 }
 0x3e2   :  { %v4549_v58 = vpop.f32.mrf.mxu1 }
 0x3e3   :  { %4695 = vpow2.f32 %v1709_v16  ;;  %v6730_v9 = vadd.f32 %v4549_v58, %v6719_v6 }
 0x3e4   :  { %v1624_v44 = vpop.f32.mrf.mxu1 }
 0x3e5   :  { %v1696_v0 = vmul.f32 0.5, %v6730_v9  ;;  %v6734_v24 = vadd.f32 %v6719_v6, %v1624_v44 }
 0x3e7   :  { %v1715_v18 = vmul.f32 1.442695, %v1696_v0  ;;  %v1695_v31 = vmul.f32 0.5, %v6734_v24 }
 0x3e9   :  { %4697 = vpow2.f32 %v1715_v18  ;;  %v1713_v21 = vmul.f32 1.442695, %v1695_v31 }
 0x3ea   :  { %v4552_v11 = vpop.f32.mrf.mxu1 }
 0x3eb   :  { %4699 = vpow2.f32 %v1713_v21  ;;  %v6738_v43 = vadd.f32 %v4552_v11, %v6719_v6  ;;  %v1792_v21 = vpop.permute.xlu1 %1791 }
 0x3ec   :  { %v1634_v46 = vpop.f32.mrf.mxu1 }
 0x3ed   :  { %v1698_v62 = vmul.f32 0.5, %v6738_v43  ;;  %v6742_v20 = vadd.f32 %v6719_v6, %v1634_v46 }
 0x3ee   :  { %v4694_v33 = vpop.eup %4693 }
 0x3ef   :  { %v1719_v48 = vmul.f32 1.442695, %v1698_v62  ;;  %v1697_v13 = vmul.f32 0.5, %v6742_v20  ;;  %v1822_v17 = vmul.f32 %v4694_v33, %v1776_v34  ;;  %v1790_v62 = vpop.permute.xlu0 %1789 }
 0x3f0   :  { %v4696_v28 = vpop.eup %4695 }
 0x3f1   :  { %v1821_v1 = vmul.f32 %v4696_v28, %v1774_v61  ;;  %4701 = vpow2.f32 %v1719_v48  ;;  %v1717_v36 = vmul.f32 1.442695, %v1697_v13  ;;  %1855 = vrot.lane.b32.xlu1 %v1822_v17, %s5176_s9 }
 0x3f2   :  { %v4555_v4 = vpop.f32.mrf.mxu1 }
 0x3f3   :  { %4703 = vpow2.f32 %v1717_v36  ;;  %v6747_v14 = vadd.f32 %v4555_v4, %v6719_v6  ;;  %1853 = vrot.lane.b32.xlu0 %v1821_v1, %s5176_s9 }
 0x3f4   :  { %v1644_v47 = vpop.f32.mrf.mxu1 }
 0x3f5   :  { %v1700_v59 = vmul.f32 0.5, %v6747_v14  ;;  %v6752_v12 = vadd.f32 %v6719_v6, %v1644_v47  ;;  %v1796_v47 = vpop.permute.xlu1 %1795 }
 0x3f6   :  { %v4698_v2 = vpop.eup %4697 }
 0x3f7   :  { %v1723_v25 = vmul.f32 1.442695, %v1700_v59  ;;  %v1699_v35 = vmul.f32 0.5, %v6752_v12  ;;  %v1824_v49 = vmul.f32 %v4698_v2, %v1780_v50 }
 0x3f8   :  { %v4700_v52 = vpop.eup %4699 }
 0x3f9   :  { %v1823_v8 = vmul.f32 %v4700_v52, %v1778_v45  ;;  %4705 = vpow2.f32 %v1723_v25  ;;  %v1721_v38 = vmul.f32 1.442695, %v1699_v35  ;;  %1859 = vrot.lane.b32.xlu1 %v1824_v49, %s5176_s9  ;;  %v1794_v25 = vpop.permute.xlu0 %1793 }
 0x3fa   :  { %v4558_v23 = vpop.f32.mrf.mxu1 }
 0x3fb   :  { %4707 = vpow2.f32 %v1721_v38  ;;  %v6757_v7 = vadd.f32 %v4558_v23, %v6719_v6  ;;  %1857 = vrot.lane.b32.xlu0 %v1823_v8, %s5176_s9 }
 0x3fc   :  { %v1654_v51 = vpop.f32.mrf.mxu1 }
 0x3fd   :  { %v1702_v5 = vmul.f32 0.5, %v6757_v7  ;;  %v6762_v37 = vadd.f32 %v6719_v6, %v1654_v51  ;;  %v1800_v51 = vpop.permute.xlu1 %1799 }
 0x3fe   :  { %v4702_v27 = vpop.eup %4701 }
 0x3ff   :  { %v1727_v53 = vmul.f32 1.442695, %v1702_v5  ;;  %v1701_v56 = vmul.f32 0.5, %v6762_v37  ;;  %v1826_v3 = vmul.f32 %v4702_v27, %v1784_v54  ;;  %v1798_v5 = vpop.permute.xlu0 %1797 }
 0x400   :  { %v4704_v26 = vpop.eup %4703 }
 0x401   :  { %4709 = vpow2.f32 %v1727_v53  ;;  %v1725_v30 = vmul.f32 1.442695, %v1701_v56  ;;  %v1825_v19 = vmul.f32 %v4704_v26, %v1782_v40  ;;  %1863 = vrot.lane.b32.xlu1 %v1826_v3, %s5176_s9  ;;  %v2142_v53 = vld [vmem:[%s8656_s12 + $0x18] sm:$0xff]  ;;  %v2141_v56 = vld [vmem:[%s8656_s12 + $0x10] sm:$0xff]  ;;  %v1804_v3 = vpop.permute.xlu1 %1803  ;;  %v2140_v26 = vld [vmem:[%s8656_s12 + $0x8] sm:$0xff] }
 0x402   :  { %v4561_v15 = vpop.f32.mrf.mxu1  ;;  %4594 = vmatprep.subr.mxu1 %v2142_v53 }
 0x403   :  { %4711 = vpow2.f32 %v1725_v30  ;;  %v6767_v55 = vadd.f32 %v4561_v15, %v6719_v6  ;;  %1861 = vrot.lane.b32.xlu0 %v1825_v19, %s5176_s9  ;;  %4595 = vmatpush3.msra.mxu1 %v2142_v53  ;;  %v1802_v19 = vpop.permute.xlu0 %1801  ;;  %v2369_v53 = vld [vmem:[%s8657_s14 + $0x50] sm:$0xff] }
 0x404   :  { %v1664_v60 = vpop.f32.mrf.mxu1  ;;  %4596 = vmatprep.subr.mxu1 %v2141_v56 }
 0x405   :  { %v1704_v39 = vmul.f32 0.5, %v6767_v55  ;;  %v6772_v29 = vadd.f32 %v6719_v6, %v1664_v60  ;;  %4597 = vmatpush3.msra.mxu1 %v2141_v56  ;;  %v2368_v56 = vld [vmem:[%s8657_s14 + $0x48] sm:$0xff] }
 0x406   :  { %v4706_v32 = vpop.eup %4705  ;;  %4598 = vmatprep.subr.mxu1 %v2140_v26 }
 0x407   :  { %v1731_v63 = vmul.f32 1.442695, %v1704_v39  ;;  %v1703_v41 = vmul.f32 0.5, %v6772_v29  ;;  %v1828_v16 = vmul.f32 %v4706_v32, %v1788_v22  ;;  %4599 = vmatpush3.msra.mxu1 %v2140_v26  ;;  %v2366_v26 = vld [vmem:[%s8657_s14 + $0x38] sm:$0xff] }
 0x408   :  { %v4708_v58 = vpop.eup %4707 }
 0x409   :  { %4713 = vpow2.f32 %v1731_v63  ;;  %v1729_v44 = vmul.f32 1.442695, %v1703_v41  ;;  %v1827_v0 = vmul.f32 %v4708_v58, %v1786_v57  ;;  %1867 = vrot.lane.b32.xlu1 %v1828_v16, %s5176_s9 }
 0x40a   :  { %v4564_v61 = vpop.f32.mrf.mxu1 }
 0x40b   :  { %4715 = vpow2.f32 %v1729_v44  ;;  %v6777_v18 = vadd.f32 %v4564_v61, %v6719_v6  ;;  %1865 = vrot.lane.b32.xlu0 %v1827_v0, %s5176_s9 }
 0x40c   :  { %v1674_v31 = vpop.f32.mrf.mxu1 }
 0x40d   :  { %v1706_v11 = vmul.f32 0.5, %v6777_v18  ;;  %v6782_v46 = vadd.f32 %v6719_v6, %v1674_v31 }
 0x40e   :  { %v4710_v34 = vpop.eup %4709 }
 0x40f   :  { %v1735_v33 = vmul.f32 1.442695, %v1706_v11  ;;  %v1705_v45 = vmul.f32 0.5, %v6782_v46  ;;  %v1830_v48 = vmul.f32 %v4710_v34, %v1792_v21 }
 0x410   :  { %v4712_v13 = vpop.eup %4711 }
 0x411   :  { %4717 = vpow2.f32 %v1735_v33  ;;  %v1733_v17 = vmul.f32 1.442695, %v1705_v45  ;;  %v1829_v28 = vmul.f32 %v4712_v13, %v1790_v62  ;;  %1871 = vrot.lane.b32.xlu1 %v1830_v48, %s5176_s9 }
 0x412   :  { %v4567_v1 = vpop.f32.mrf.mxu1 }
 0x413   :  { %4719 = vpow2.f32 %v1733_v17  ;;  %v6787_v36 = vadd.f32 %v4567_v1, %v6719_v6  ;;  %1869 = vrot.lane.b32.xlu0 %v1829_v28, %s5176_s9  ;;  %v8730_v28 = vmov 0.0   ;;  %v2389_v1 = vld [vmem:[%s8657_s14 + $0xf0] sm:$0xff] }
 0x414   :  { %v1684_v4 = vpop.f32.mrf.mxu1 }
 0x415   :  { %v1708_v50 = vmul.f32 0.5, %v6787_v36  ;;  %v6792_v59 = vadd.f32 %v6719_v6, %v1684_v4  ;;  %v2387_v4 = vld [vmem:[%s8657_s14 + $0xe0] sm:$0xff] }
 0x416   :  { %v4714_v2 = vpop.eup %4713 }
 0x417   :  { %v1739_v35 = vmul.f32 1.442695, %v1708_v50  ;;  %v1707_v49 = vmul.f32 0.5, %v6792_v59  ;;  %v1832_v52 = vmul.f32 %v4714_v2, %v1796_v47  ;;  %v2386_v47 = vld [vmem:[%s8657_s14 + $0xd8] sm:$0xff]  ;;  %v2385_v50 = vld [vmem:[%s8657_s14 + $0xd0] sm:$0xff]  ;;  %v2383_v2 = vld [vmem:[%s8657_s14 + $0xc0] sm:$0xff] }
 0x418   :  { %v4716_v8 = vpop.eup %4715 }
 0x419   :  { %4721 = vpow2.f32 %v1739_v35  ;;  %v1737_v38 = vmul.f32 1.442695, %v1707_v49  ;;  %v1831_v23 = vmul.f32 %v4716_v8, %v1794_v25  ;;  %1875 = vrot.lane.b32.xlu1 %v1832_v52, %s5176_s9  ;;  %v2382_v25 = vld [vmem:[%s8657_s14 + $0xb8] sm:$0xff]  ;;  %v2381_v35 = vld [vmem:[%s8657_s14 + $0xb0] sm:$0xff]  ;;  %v2380_v49 = vld [vmem:[%s8657_s14 + $0xa8] sm:$0xff] }
 0x41a   :  { %v2379_v52 = vld [vmem:[%s8657_s14 + $0xa0] sm:$0xff]  ;;  %v2378_v8 = vld [vmem:[%s8657_s14 + $0x98] sm:$0xff] }
 0x41b   :  { %4723 = vpow2.f32 %v1737_v38  ;;  %1873 = vrot.lane.b32.xlu0 %v1831_v23, %s5176_s9  ;;  %v2377_v38 = vld [vmem:[%s8657_s14 + $0x90] sm:$0xff]  ;;  %v2376_v23 = vld [vmem:[%s8657_s14 + $0x88] sm:$0xff] }
 0x41e   :  { %v4718_v54 = vpop.eup %4717 }
 0x41f   :  { %v1834_v6 = vmul.f32 %v4718_v54, %v1800_v51  ;;  %v2375_v51 = vld [vmem:[%s8657_s14 + $0x80] sm:$0xff]  ;;  %v2374_v54 = vld [vmem:[%s8657_s14 + $0x78] sm:$0xff] }
 0x420   :  { %v4720_v27 = vpop.eup %4719 }
 0x421   :  { %v1833_v40 = vmul.f32 %v4720_v27, %v1798_v5  ;;  %1879 = vrot.lane.b32.xlu1 %v1834_v6, %s5176_s9  ;;  %v2373_v5 = vld [vmem:[%s8657_s14 + $0x70] sm:$0xff]  ;;  %v2372_v6 = vld [vmem:[%s8657_s14 + $0x68] sm:$0xff]  ;;  %v2371_v27 = vld [vmem:[%s8657_s14 + $0x60] sm:$0xff] }
 0x423   :  { %1877 = vrot.lane.b32.xlu0 %v1833_v40, %s5176_s9  ;;  %v2370_v40 = vld [vmem:[%s8657_s14 + $0x58] sm:$0xff] }
 0x426   :  { %v4722_v30 = vpop.eup %4721 }
 0x427   :  { %v1836_v15 = vmul.f32 %v4722_v30, %v1804_v3  ;;  %v2367_v3 = vld [vmem:[%s8657_s14 + $0x40] sm:$0xff] }
 0x428   :  { %v4724_v60 = vpop.eup %4723  ;;  %v4196_v30 = vld [vmem:[%s8658_s11] ss:$0 sm:$0xff] }
 0x429   :  { %v1835_v22 = vmul.f32 %v4724_v60, %v1802_v19  ;;  %1883 = vrot.lane.b32.xlu1 %v1836_v15, %s5176_s9 }
 0x42b   :  { %1881 = vrot.lane.b32.xlu0 %v1835_v22, %s5176_s9 }
 0x463   :  { %v1856_v39 = vpop.permute.xlu1 %1855 }
 0x464   :  { %v1902_v63 = vadd.f32 %v1856_v39, %v6722_v42 }
 0x465   :  { %v1854_v32 = vpop.permute.xlu0 %1853 }
 0x466   :  { %v1901_v57 = vadd.f32 %v1854_v32, %v6726_v10 }
 0x468   :  { %4570 = vmatprep.mubr.msk.f32.mxu0 %vm1925_vm3, %v1901_v57 }
 0x469   :  { %4571 = vmatmul.mubr.msk.f32.vlgmr.msra.gmra.mxu0 %vm1925_vm3, %v1902_v63 }
 0x46b   :  { %v1860_v41 = vpop.permute.xlu1 %1859 }
 0x46c   :  { %v1904_v44 = vadd.f32 %v1860_v41, %v6730_v9 }
 0x46d   :  { %v1858_v16 = vpop.permute.xlu0 %1857 }
 0x46e   :  { %v1903_v58 = vadd.f32 %v1858_v16, %v6734_v24 }
 0x470   :  { %4573 = vmatprep.mubr.msk.f32.mxu0 %vm1925_vm3, %v1903_v58 }
 0x471   :  { %4574 = vmatmul.mubr.msk.f32.gmra.mxu0 %vm1925_vm3, %v1904_v44 }
 0x473   :  { %v1864_v0 = vpop.permute.xlu1 %1863 }
 0x474   :  { %v1906_v42 = vadd.f32 %v1864_v0, %v6738_v43 }
 0x475   :  { %v1862_v61 = vpop.permute.xlu0 %1861 }
 0x476   :  { %v1905_v10 = vadd.f32 %v1862_v61, %v6742_v20 }
 0x478   :  { %4576 = vmatprep.mubr.msk.f32.mxu0 %vm1925_vm3, %v1905_v10 }
 0x479   :  { %4577 = vmatmul.mubr.msk.f32.gmra.mxu0 %vm1925_vm3, %v1906_v42 }
 0x47b   :  { %v1868_v31 = vpop.permute.xlu1 %1867 }
 0x47c   :  { %v1908_v9 = vadd.f32 %v1868_v31, %v6747_v14 }
 0x47d   :  { %v1866_v21 = vpop.permute.xlu0 %1865 }
 0x47e   :  { %v1907_v24 = vadd.f32 %v1866_v21, %v6752_v12 }
 0x480   :  { %4579 = vmatprep.mubr.msk.f32.mxu0 %vm1925_vm3, %v1907_v24 }
 0x481   :  { %4580 = vmatmul.mubr.msk.f32.gmra.mxu0 %vm1925_vm3, %v1908_v9 }
 0x483   :  { %v1872_v11 = vpop.permute.xlu1 %1871 }
 0x484   :  { %v1910_v43 = vadd.f32 %v1872_v11, %v6757_v7 }
 0x485   :  { %v1870_v34 = vpop.permute.xlu0 %1869 }
 0x486   :  { %v1909_v20 = vadd.f32 %v1870_v34, %v6762_v37 }
 0x488   :  { %4582 = vmatprep.mubr.msk.f32.mxu0 %vm1925_vm3, %v1909_v20 }
 0x489   :  { %4583 = vmatmul.mubr.msk.f32.gmra.mxu0 %vm1925_vm3, %v1910_v43 }
 0x48b   :  { %v1876_v62 = vpop.permute.xlu1 %1875 }
 0x48c   :  { %v1912_v14 = vadd.f32 %v1876_v62, %v6767_v55 }
 0x48d   :  { %v1874_v33 = vpop.permute.xlu0 %1873 }
 0x48e   :  { %v1911_v12 = vadd.f32 %v1874_v33, %v6772_v29 }
 0x490   :  { %4585 = vmatprep.mubr.msk.f32.mxu0 %vm1925_vm3, %v1911_v12 }
 0x491   :  { %4586 = vmatmul.mubr.msk.f32.gmra.mxu0 %vm1925_vm3, %v1912_v14 }
 0x493   :  { %v1880_v45 = vpop.permute.xlu1 %1879 }
 0x494   :  { %v1914_v7 = vadd.f32 %v1880_v45, %v6777_v18  ;;  %v2139_v18 = vld [vmem:[%s8656_s12] sm:$0xff] }
 0x495   :  { %v1878_v48 = vpop.permute.xlu0 %1877  ;;  %4600 = vmatprep.subr.mxu1 %v2139_v18 }
 0x496   :  { %v1913_v37 = vadd.f32 %v1878_v48, %v6782_v46  ;;  %4601 = vmatpush3.msra.mxu1 %v2139_v18  ;;  %v2390_v46 = vld [vmem:[%s8657_s14 + $0xf8] sm:$0xff] }
 0x497   :  { %2403 = vmatprep.subr.mxu0 %v2390_v46 }
 0x498   :  { %4588 = vmatprep.mubr.msk.f32.mxu0 %vm1925_vm3, %v1913_v37  ;;  %2404 = vmatpush1.msra.mxu0 %v2389_v1 }
 0x499   :  { %4589 = vmatmul.mubr.msk.f32.gmra.mxu0 %vm1925_vm3, %v1914_v7 }
 0x49b   :  { %v1884_v13 = vpop.permute.xlu1 %1883 }
 0x49c   :  { %v1916_v55 = vadd.f32 %v1884_v13, %v6787_v36  ;;  %v2388_v36 = vld [vmem:[%s8657_s14 + $0xe8] sm:$0xff] }
 0x49d   :  { %v1882_v17 = vpop.permute.xlu0 %1881  ;;  %2405 = vmatprep.subr.mxu0 %v2388_v36 }
 0x49e   :  { %v1915_v29 = vadd.f32 %v1882_v17, %v6792_v59  ;;  %2406 = vmatpush1.msra.mxu0 %v2387_v4  ;;  %v2384_v59 = vld [vmem:[%s8657_s14 + $0xc8] sm:$0xff] }
 0x49f   :  { %2407 = vmatprep.subr.mxu0 %v2386_v47 }
 0x4a0   :  { %4591 = vmatprep.mubr.msk.f32.mxu0 %vm1925_vm3, %v1915_v29  ;;  %2408 = vmatpush1.msra.mxu0 %v2385_v50 }
 0x4a1   :  { %4592 = vmatmul.mubr.msk.f32.gmra.mxu0 %vm1925_vm3, %v1916_v55  ;;  %2409 = vmatprep.subr.mxu0 %v2384_v59 }
 0x4a2   :  { %2467 = vmatprep.mubr.f32.mxu0 %v8730_v28  ;;  %2410 = vmatpush1.msra.mxu0 %v2383_v2 }
 0x4a3   :  { %2411 = vmatprep.subr.mxu0 %v2382_v25 }
 0x4a4   :  { %2412 = vmatpush1.msra.mxu0 %v2381_v35 }
 0x4a5   :  { %2413 = vmatprep.subr.mxu0 %v2380_v49 }
 0x4a6   :  { %2414 = vmatpush1.msra.mxu0 %v2379_v52  ;;  %v2365_v52 = vld [vmem:[%s8657_s14 + $0x30] sm:$0xff] }
 0x4a7   :  { %2415 = vmatprep.subr.mxu0 %v2378_v8  ;;  %v2364_v8 = vld [vmem:[%s8657_s14 + $0x28] sm:$0xff] }
 0x4a8   :  { %2416 = vmatpush1.msra.mxu0 %v2377_v38  ;;  %v2363_v38 = vld [vmem:[%s8657_s14 + $0x20] sm:$0xff] }
 0x4a9   :  { %2417 = vmatprep.subr.mxu0 %v2376_v23  ;;  %v2362_v23 = vld [vmem:[%s8657_s14 + $0x18] sm:$0xff] }
 0x4aa   :  { %2418 = vmatpush1.msra.mxu0 %v2375_v51  ;;  %v2361_v51 = vld [vmem:[%s8657_s14 + $0x10] sm:$0xff] }
 0x4ab   :  { %2419 = vmatprep.subr.mxu0 %v2374_v54  ;;  %v2360_v54 = vld [vmem:[%s8657_s14 + $0x8] sm:$0xff] }
 0x4ac   :  { %2420 = vmatpush1.msra.mxu0 %v2373_v5  ;;  %v2359_v5 = vld [vmem:[%s8657_s14] sm:$0xff] }
 0x4ad   :  { %2421 = vmatprep.subr.mxu0 %v2372_v6  ;;  %v2702_v6 = vld [vmem:[%s8659_s16 + $0x350] sm:$0xff] }
 0x4ae   :  { %2422 = vmatpush1.msra.mxu0 %v2371_v27  ;;  %v2704_v27 = vld [vmem:[%s8659_s16 + $0x360] sm:$0xff]  ;;  %2857 = vmatprep.subr.mxu1 %v2702_v6  ;;  %v2703_v6 = vld [vmem:[%s8659_s16 + $0x358] sm:$0xff] }
 0x4af   :  { %2423 = vmatprep.subr.mxu0 %v2370_v40  ;;  %v2701_v40 = vld [vmem:[%s8659_s16 + $0x348] sm:$0xff] }
 0x4b0   :  { %2424 = vmatpush1.msra.mxu0 %v2369_v53  ;;  %v2695_v53 = vld [vmem:[%s8659_s16 + $0x318] sm:$0xff] }
 0x4b1   :  { %2425 = vmatprep.subr.mxu0 %v2368_v56  ;;  %v2694_v56 = vld [vmem:[%s8659_s16 + $0x310] sm:$0xff] }
 0x4b2   :  { %2426 = vmatpush1.msra.mxu0 %v2367_v3  ;;  %v2688_v3 = vld [vmem:[%s8659_s16 + $0x2e0] sm:$0xff] }
 0x4b3   :  { %2427 = vmatprep.subr.mxu0 %v2366_v26  ;;  %v2687_v26 = vld [vmem:[%s8659_s16 + $0x2d8] sm:$0xff] }
 0x4b4   :  { %2428 = vmatpush1.msra.mxu0 %v2365_v52  ;;  %v2736_v52 = vld [vmem:[%s8659_s16 + $0x460] sm:$0xff] }
 0x4b5   :  { %2429 = vmatprep.subr.mxu0 %v2364_v8 }
 0x4b6   :  { %2430 = vmatpush1.msra.mxu0 %v2363_v38  ;;  %v7135_v38 = vld [vmem:[%s8660_s13] ss:$0 sm:$0xff] }
 0x4b7   :  { %2431 = vmatprep.subr.mxu0 %v2362_v23 }
 0x4b8   :  { %2432 = vmatpush1.msra.mxu0 %v2361_v51 }
 0x4b9   :  { %2433 = vmatprep.subr.mxu0 %v2360_v54 }
 0x4ba   :  { %2434 = vmatpush1.msra.mxu0 %v2359_v5 }
 0x4bb   :  { %3018 = vmatprep.subr.mxu0 %v2704_v27  ;;  %v2697_v27 = vld [vmem:[%s8659_s16 + $0x328] sm:$0xff] }
 0x529   :  { %v4572_v19 = vpop.f32.mrf.mxu0 }
 0x52a   :  { %v2050_v15 = vadd.f32 %v4572_v19, %v4196_v30  ;;  %v2680_v19 = vld [vmem:[%s8659_s16 + $0x2a0] sm:$0xff] }
 0x52b   :  { %v2044_v60 = vpop.f32.mrf.mxu0 }
 0x52c   :  { %v2045_v22 = vadd.f32 %v4196_v30, %v2044_v60  ;;  %v2124_v32 = vmax.f32 %v2050_v15, 0.0  ;;  %v2674_v15 = vld [vmem:[%s8659_s16 + $0x270] sm:$0xff]  ;;  %v2673_v60 = vld [vmem:[%s8659_s16 + $0x268] sm:$0xff] }
 0x52e   :  { %v2123_v39 = vmax.f32 %v2045_v22, 0.0  ;;  %v2667_v22 = vld [vmem:[%s8659_s16 + $0x238] sm:$0xff] }
 0x530   :  { %4602 = vmatprep.mubr.msk.f32.mxu1 %vm1499_vm1, %v2123_v39  ;;  %v2666_v39 = vld [vmem:[%s8659_s16 + $0x230] sm:$0xff] }
 0x531   :  { %v4575_v57 = vpop.f32.mrf.mxu0  ;;  %4603 = vmatmul.mubr.msk.f32.vlgmr.msra.gmra.mxu1 %vm1499_vm1, %v2124_v32  ;;  %v2660_v32 = vld [vmem:[%s8659_s16 + $0x200] sm:$0xff] }
 0x532   :  { %v2060_v63 = vadd.f32 %v4575_v57, %v4196_v30  ;;  %2858 = vmatpush1.msra.mxu1 %v2701_v40  ;;  %v2659_v57 = vld [vmem:[%s8659_s16 + $0x1f8] sm:$0xff]  ;;  %v2696_v40 = vld [vmem:[%s8659_s16 + $0x320] sm:$0xff] }
 0x533   :  { %v2054_v41 = vpop.f32.mrf.mxu0  ;;  %2859 = vmatprep.subr.mxu1 %v2695_v53 }
 0x534   :  { %v2055_v16 = vadd.f32 %v4196_v30, %v2054_v41  ;;  %v2126_v44 = vmax.f32 %v2060_v63, 0.0  ;;  %2860 = vmatpush1.msra.mxu1 %v2694_v56  ;;  %v2653_v63 = vld [vmem:[%s8659_s16 + $0x1c8] sm:$0xff]  ;;  %v2652_v41 = vld [vmem:[%s8659_s16 + $0x1c0] sm:$0xff]  ;;  %v2690_v56 = vld [vmem:[%s8659_s16 + $0x2f0] sm:$0xff] }
 0x535   :  { %2861 = vmatprep.subr.mxu1 %v2688_v3 }
 0x536   :  { %v2125_v58 = vmax.f32 %v2055_v16, 0.0  ;;  %2862 = vmatpush1.msra.mxu1 %v2687_v26  ;;  %v2646_v16 = vld [vmem:[%s8659_s16 + $0x190] sm:$0xff]  ;;  %v2689_v26 = vld [vmem:[%s8659_s16 + $0x2e8] sm:$0xff] }
 0x538   :  { %4605 = vmatprep.mubr.msk.f32.mxu1 %vm1499_vm1, %v2125_v58  ;;  %v2645_v58 = vld [vmem:[%s8659_s16 + $0x188] sm:$0xff] }
 0x539   :  { %v4578_v0 = vpop.f32.mrf.mxu0  ;;  %4606 = vmatmul.mubr.msk.f32.gmra.mxu1 %vm1499_vm1, %v2126_v44  ;;  %v2639_v44 = vld [vmem:[%s8659_s16 + $0x158] sm:$0xff] }
 0x53a   :  { %v2070_v61 = vadd.f32 %v4578_v0, %v4196_v30  ;;  %v2638_v0 = vld [vmem:[%s8659_s16 + $0x150] sm:$0xff] }
 0x53b   :  { %v2064_v10 = vpop.f32.mrf.mxu0 }
 0x53c   :  { %v2065_v42 = vadd.f32 %v4196_v30, %v2064_v10  ;;  %v2128_v21 = vmax.f32 %v2070_v61, 0.0  ;;  %v2632_v61 = vld [vmem:[%s8659_s16 + $0x120] sm:$0xff]  ;;  %v2631_v10 = vld [vmem:[%s8659_s16 + $0x118] sm:$0xff] }
 0x53e   :  { %v2127_v31 = vmax.f32 %v2065_v42, 0.0  ;;  %v2625_v42 = vld [vmem:[%s8659_s16 + $0xe8] sm:$0xff] }
 0x540   :  { %4608 = vmatprep.mubr.msk.f32.mxu1 %vm1499_vm1, %v2127_v31  ;;  %v2624_v31 = vld [vmem:[%s8659_s16 + $0xe0] sm:$0xff] }
 0x541   :  { %v4581_v24 = vpop.f32.mrf.mxu0  ;;  %4609 = vmatmul.mubr.msk.f32.gmra.mxu1 %vm1499_vm1, %v2128_v21  ;;  %v2618_v21 = vld [vmem:[%s8659_s16 + $0xb0] sm:$0xff] }
 0x542   :  { %v2080_v9 = vadd.f32 %v4581_v24, %v4196_v30  ;;  %v2617_v24 = vld [vmem:[%s8659_s16 + $0xa8] sm:$0xff] }
 0x543   :  { %v2074_v11 = vpop.f32.mrf.mxu0 }
 0x544   :  { %v2075_v34 = vadd.f32 %v4196_v30, %v2074_v11  ;;  %v2130_v43 = vmax.f32 %v2080_v9, 0.0  ;;  %v2611_v9 = vld [vmem:[%s8659_s16 + $0x78] sm:$0xff]  ;;  %v2610_v11 = vld [vmem:[%s8659_s16 + $0x70] sm:$0xff] }
 0x546   :  { %v2129_v20 = vmax.f32 %v2075_v34, 0.0  ;;  %v2604_v34 = vld [vmem:[%s8659_s16 + $0x40] sm:$0xff] }
 0x548   :  { %4611 = vmatprep.mubr.msk.f32.mxu1 %vm1499_vm1, %v2129_v20  ;;  %v2603_v20 = vld [vmem:[%s8659_s16 + $0x38] sm:$0xff] }
 0x549   :  { %v4584_v62 = vpop.f32.mrf.mxu0  ;;  %4612 = vmatmul.mubr.msk.f32.gmra.mxu1 %vm1499_vm1, %v2130_v43  ;;  %v2597_v43 = vld [vmem:[%s8659_s16 + $0x8] sm:$0xff] }
 0x54a   :  { %v2090_v33 = vadd.f32 %v4584_v62, %v4196_v30  ;;  %v2596_v62 = vld [vmem:[%s8659_s16] sm:$0xff] }
 0x54b   :  { %v2084_v12 = vpop.f32.mrf.mxu0 }
 0x54c   :  { %v2085_v14 = vadd.f32 %v4196_v30, %v2084_v12  ;;  %v2132_v48 = vmax.f32 %v2090_v33, 0.0  ;;  %v2814_v33 = vld [vmem:[%s8659_s16 + $0x6d0] sm:$0xff]  ;;  %v2813_v12 = vld [vmem:[%s8659_s16 + $0x6c8] sm:$0xff] }
 0x54e   :  { %v2131_v45 = vmax.f32 %v2085_v14, 0.0  ;;  %v2807_v14 = vld [vmem:[%s8659_s16 + $0x698] sm:$0xff] }
 0x550   :  { %4614 = vmatprep.mubr.msk.f32.mxu1 %vm1499_vm1, %v2131_v45  ;;  %v2806_v45 = vld [vmem:[%s8659_s16 + $0x690] sm:$0xff] }
 0x551   :  { %v4587_v37 = vpop.f32.mrf.mxu0  ;;  %4615 = vmatmul.mubr.msk.f32.gmra.mxu1 %vm1499_vm1, %v2132_v48  ;;  %v2800_v48 = vld [vmem:[%s8659_s16 + $0x660] sm:$0xff] }
 0x552   :  { %v2100_v7 = vadd.f32 %v4587_v37, %v4196_v30  ;;  %v2799_v37 = vld [vmem:[%s8659_s16 + $0x658] sm:$0xff] }
 0x553   :  { %v2094_v13 = vpop.f32.mrf.mxu0 }
 0x554   :  { %v2095_v17 = vadd.f32 %v4196_v30, %v2094_v13  ;;  %v2134_v55 = vmax.f32 %v2100_v7, 0.0  ;;  %v2793_v7 = vld [vmem:[%s8659_s16 + $0x628] sm:$0xff]  ;;  %v2792_v13 = vld [vmem:[%s8659_s16 + $0x620] sm:$0xff] }
 0x556   :  { %v2133_v29 = vmax.f32 %v2095_v17, 0.0  ;;  %v2786_v17 = vld [vmem:[%s8659_s16 + $0x5f0] sm:$0xff] }
 0x558   :  { %4617 = vmatprep.mubr.msk.f32.mxu1 %vm1499_vm1, %v2133_v29  ;;  %v2785_v29 = vld [vmem:[%s8659_s16 + $0x5e8] sm:$0xff] }
 0x559   :  { %v4590_v18 = vpop.f32.mrf.mxu0  ;;  %4618 = vmatmul.mubr.msk.f32.gmra.mxu1 %vm1499_vm1, %v2134_v55  ;;  %v2779_v55 = vld [vmem:[%s8659_s16 + $0x5b8] sm:$0xff] }
 0x55a   :  { %v2110_v46 = vadd.f32 %v4590_v18, %v4196_v30  ;;  %v2778_v18 = vld [vmem:[%s8659_s16 + $0x5b0] sm:$0xff] }
 0x55b   :  { %v2104_v1 = vpop.f32.mrf.mxu0 }
 0x55c   :  { %v2105_v36 = vadd.f32 %v4196_v30, %v2104_v1  ;;  %v2136_v47 = vmax.f32 %v2110_v46, 0.0  ;;  %v2772_v46 = vld [vmem:[%s8659_s16 + $0x580] sm:$0xff]  ;;  %v2771_v1 = vld [vmem:[%s8659_s16 + $0x578] sm:$0xff] }
 0x55e   :  { %v2135_v4 = vmax.f32 %v2105_v36, 0.0  ;;  %v2765_v36 = vld [vmem:[%s8659_s16 + $0x548] sm:$0xff] }
 0x560   :  { %4620 = vmatprep.mubr.msk.f32.mxu1 %vm1499_vm1, %v2135_v4  ;;  %v2764_v4 = vld [vmem:[%s8659_s16 + $0x540] sm:$0xff] }
 0x561   :  { %v4593_v50 = vpop.f32.mrf.mxu0  ;;  %4621 = vmatmul.mubr.msk.f32.gmra.mxu1 %vm1499_vm1, %v2136_v47  ;;  %v2758_v47 = vld [vmem:[%s8659_s16 + $0x510] sm:$0xff] }
 0x562   :  { %v2120_v59 = vadd.f32 %v4593_v50, %v4196_v30  ;;  %v2757_v50 = vld [vmem:[%s8659_s16 + $0x508] sm:$0xff] }
 0x563   :  { %v2114_v2 = vpop.f32.mrf.mxu0 }
 0x564   :  { %v2115_v25 = vadd.f32 %v4196_v30, %v2114_v2  ;;  %v2138_v49 = vmax.f32 %v2120_v59, 0.0  ;;  %v2681_v30 = vld [vmem:[%s8659_s16 + $0x2a8] sm:$0xff]  ;;  %v2751_v59 = vld [vmem:[%s8659_s16 + $0x4d8] sm:$0xff]  ;;  %v2750_v2 = vld [vmem:[%s8659_s16 + $0x4d0] sm:$0xff] }
 0x565   :  { %2863 = vmatprep.subr.mxu1 %v2681_v30 }
 0x566   :  { %v2137_v35 = vmax.f32 %v2115_v25, 0.0  ;;  %2864 = vmatpush1.msra.mxu1 %v2680_v19  ;;  %v2744_v25 = vld [vmem:[%s8659_s16 + $0x4a0] sm:$0xff]  ;;  %v2683_v19 = vld [vmem:[%s8659_s16 + $0x2b8] sm:$0xff] }
 0x567   :  { %2865 = vmatprep.subr.mxu1 %v2674_v15 }
 0x568   :  { %4623 = vmatprep.mubr.msk.f32.mxu1 %vm1499_vm1, %v2137_v35  ;;  %2866 = vmatpush1.msra.mxu1 %v2673_v60  ;;  %v2743_v35 = vld [vmem:[%s8659_s16 + $0x498] sm:$0xff]  ;;  %v2682_v60 = vld [vmem:[%s8659_s16 + $0x2b0] sm:$0xff] }
 0x569   :  { %4624 = vmatmul.mubr.msk.f32.gmra.mxu1 %vm1499_vm1, %v2138_v49  ;;  %2867 = vmatprep.subr.mxu1 %v2667_v22  ;;  %v2737_v49 = vld [vmem:[%s8659_s16 + $0x468] sm:$0xff]  ;;  %v2676_v22 = vld [vmem:[%s8659_s16 + $0x280] sm:$0xff] }
 0x56a   :  { %2868 = vmatpush1.msra.mxu1 %v2666_v39 }
 0x56b   :  { %2869 = vmatprep.subr.mxu1 %v2660_v32 }
 0x56c   :  { %2870 = vmatpush1.msra.mxu1 %v2659_v57  ;;  %v2675_v57 = vld [vmem:[%s8659_s16 + $0x278] sm:$0xff] }
 0x56d   :  { %2871 = vmatprep.subr.mxu1 %v2653_v63  ;;  %v2669_v63 = vld [vmem:[%s8659_s16 + $0x248] sm:$0xff] }
 0x56e   :  { %2872 = vmatpush1.msra.mxu1 %v2652_v41  ;;  %v2668_v41 = vld [vmem:[%s8659_s16 + $0x240] sm:$0xff] }
 0x56f   :  { %2873 = vmatprep.subr.mxu1 %v2646_v16 }
 0x570   :  { %2874 = vmatpush1.msra.mxu1 %v2645_v58  ;;  %v2662_v58 = vld [vmem:[%s8659_s16 + $0x210] sm:$0xff] }
 0x571   :  { %2875 = vmatprep.subr.mxu1 %v2639_v44 }
 0x572   :  { %2876 = vmatpush1.msra.mxu1 %v2638_v0  ;;  %v2661_v0 = vld [vmem:[%s8659_s16 + $0x208] sm:$0xff] }
 0x573   :  { %2877 = vmatprep.subr.mxu1 %v2632_v61 }
 0x574   :  { %2878 = vmatpush1.msra.mxu1 %v2631_v10  ;;  %v2655_v10 = vld [vmem:[%s8659_s16 + $0x1d8] sm:$0xff] }
 0x575   :  { %2879 = vmatprep.subr.mxu1 %v2625_v42 }
 0x576   :  { %2880 = vmatpush1.msra.mxu1 %v2624_v31  ;;  %v2654_v31 = vld [vmem:[%s8659_s16 + $0x1d0] sm:$0xff] }
 0x577   :  { %2881 = vmatprep.subr.mxu1 %v2618_v21  ;;  %v2648_v21 = vld [vmem:[%s8659_s16 + $0x1a0] sm:$0xff] }
 0x578   :  { %2882 = vmatpush1.msra.mxu1 %v2617_v24 }
 0x579   :  { %2883 = vmatprep.subr.mxu1 %v2611_v9 }
 0x57a   :  { %2884 = vmatpush1.msra.mxu1 %v2610_v11  ;;  %v2647_v11 = vld [vmem:[%s8659_s16 + $0x198] sm:$0xff] }
 0x57b   :  { %2885 = vmatprep.subr.mxu1 %v2604_v34  ;;  %v2641_v34 = vld [vmem:[%s8659_s16 + $0x168] sm:$0xff] }
 0x57c   :  { %2886 = vmatpush1.msra.mxu1 %v2603_v20  ;;  %v2640_v20 = vld [vmem:[%s8659_s16 + $0x160] sm:$0xff] }
 0x57d   :  { %2887 = vmatprep.subr.mxu1 %v2597_v43 }
 0x57e   :  { %2888 = vmatpush1.msra.mxu1 %v2596_v62  ;;  %v2634_v62 = vld [vmem:[%s8659_s16 + $0x130] sm:$0xff] }
 0x57f   :  { %2889 = vmatprep.subr.mxu1 %v2814_v33 }
 0x580   :  { %2890 = vmatpush2.msra.mxu1 %v2813_v12  ;;  %v2633_v12 = vld [vmem:[%s8659_s16 + $0x128] sm:$0xff] }
 0x581   :  { %2891 = vmatprep.subr.mxu1 %v2807_v14 }
 0x582   :  { %2892 = vmatpush2.msra.mxu1 %v2806_v45  ;;  %v2627_v45 = vld [vmem:[%s8659_s16 + $0xf8] sm:$0xff] }
 0x583   :  { %2893 = vmatprep.subr.mxu1 %v2800_v48 }
 0x584   :  { %2894 = vmatpush2.msra.mxu1 %v2799_v37  ;;  %v2626_v37 = vld [vmem:[%s8659_s16 + $0xf0] sm:$0xff] }
 0x585   :  { %2895 = vmatprep.subr.mxu1 %v2793_v7  ;;  %v2620_v7 = vld [vmem:[%s8659_s16 + $0xc0] sm:$0xff] }
 0x586   :  { %2896 = vmatpush2.msra.mxu1 %v2792_v13 }
 0x587   :  { %2897 = vmatprep.subr.mxu1 %v2786_v17 }
 0x588   :  { %2898 = vmatpush2.msra.mxu1 %v2785_v29  ;;  %v2619_v29 = vld [vmem:[%s8659_s16 + $0xb8] sm:$0xff] }
 0x589   :  { %2899 = vmatprep.subr.mxu1 %v2779_v55  ;;  %v2613_v55 = vld [vmem:[%s8659_s16 + $0x88] sm:$0xff] }
 0x58a   :  { %2900 = vmatpush2.msra.mxu1 %v2778_v18  ;;  %v2612_v18 = vld [vmem:[%s8659_s16 + $0x80] sm:$0xff] }
 0x58b   :  { %2901 = vmatprep.subr.mxu1 %v2772_v46 }
 0x58c   :  { %2902 = vmatpush2.msra.mxu1 %v2771_v1  ;;  %v2606_v1 = vld [vmem:[%s8659_s16 + $0x50] sm:$0xff] }
 0x58d   :  { %2903 = vmatprep.subr.mxu1 %v2765_v36 }
 0x58e   :  { %2904 = vmatpush2.msra.mxu1 %v2764_v4  ;;  %v2605_v4 = vld [vmem:[%s8659_s16 + $0x48] sm:$0xff] }
 0x58f   :  { %2905 = vmatprep.subr.mxu1 %v2758_v47 }
 0x590   :  { %2906 = vmatpush2.msra.mxu1 %v2757_v50  ;;  %v2599_v50 = vld [vmem:[%s8659_s16 + $0x18] sm:$0xff] }
 0x591   :  { %2907 = vmatprep.subr.mxu1 %v2751_v59 }
 0x592   :  { %2908 = vmatpush2.msra.mxu1 %v2750_v2  ;;  %v2598_v2 = vld [vmem:[%s8659_s16 + $0x10] sm:$0xff] }
 0x593   :  { %2909 = vmatprep.subr.mxu1 %v2744_v25  ;;  %v2816_v25 = vld [vmem:[%s8659_s16 + $0x6e0] sm:$0xff] }
 0x594   :  { %2910 = vmatpush2.msra.mxu1 %v2743_v35 }
 0x595   :  { %2911 = vmatprep.subr.mxu1 %v2737_v49 }
 0x596   :  { %2912 = vmatpush2.msra.mxu1 %v2736_v52  ;;  %v2815_v52 = vld [vmem:[%s8659_s16 + $0x6d8] sm:$0xff] }
 0x5f1   :  { %v4604_v8 = vpop.f32.mrf.mxu1 }
 0x5f2   :  { %v2270_v54 = vadd.f32 %v4604_v8, %v7135_v38  ;;  %v2809_v8 = vld [vmem:[%s8659_s16 + $0x6a8] sm:$0xff] }
 0x5f3   :  { %v2264_v23 = vpop.f32.mrf.mxu1 }
 0x5f4   :  { %v2265_v51 = vadd.f32 %v7135_v38, %v2264_v23  ;;  %v2344_v3 = vmax.f32 %v2270_v54, 0.0  ;;  %v2808_v23 = vld [vmem:[%s8659_s16 + $0x6a0] sm:$0xff]  ;;  %v2802_v54 = vld [vmem:[%s8659_s16 + $0x670] sm:$0xff] }
 0x5f6   :  { %v2343_v5 = vmax.f32 %v2265_v51, 0.0 }
 0x5f8   :  { %2468 = vmatmul.mubr.f32.vlgmr.msra.gmra.mxu0 %v2343_v5 }
 0x5f9   :  { %v4607_v53 = vpop.f32.mrf.mxu1  ;;  %2473 = vmatprep.mubr.f32.mxu0 %v8730_v28  ;;  %3019 = vmatpush1.msra.mxu0 %v2703_v6  ;;  %v2801_v6 = vld [vmem:[%s8659_s16 + $0x668] sm:$0xff] }
 0x5fa   :  { %3020 = vmatprep.subr.mxu0 %v2697_v27  ;;  %v2280_v39 = vadd.f32 %v4607_v53, %v7135_v38 }
 0x5fb   :  { %v2274_v30 = vpop.f32.mrf.mxu1  ;;  %3021 = vmatpush1.msra.mxu0 %v2696_v40  ;;  %v2795_v40 = vld [vmem:[%s8659_s16 + $0x638] sm:$0xff] }
 0x5fc   :  { %v2275_v15 = vadd.f32 %v7135_v38, %v2274_v30  ;;  %2474 = vmatmul.mubr.f32.gmra.mxu0 %v2344_v3  ;;  %3022 = vmatprep.subr.mxu0 %v2690_v56  ;;  %v2346_v44 = vmax.f32 %v2280_v39, 0.0  ;;  %v2794_v56 = vld [vmem:[%s8659_s16 + $0x630] sm:$0xff]  ;;  %v2788_v3 = vld [vmem:[%s8659_s16 + $0x600] sm:$0xff] }
 0x5fd   :  { %2479 = vmatprep.mubr.f32.mxu0 %v8730_v28  ;;  %3023 = vmatpush1.msra.mxu0 %v2689_v26  ;;  %v2774_v39 = vld [vmem:[%s8659_s16 + $0x590] sm:$0xff] }
 0x5fe   :  { %v2345_v32 = vmax.f32 %v2275_v15, 0.0  ;;  %3024 = vmatprep.subr.mxu0 %v2683_v19  ;;  %v2787_v19 = vld [vmem:[%s8659_s16 + $0x5f8] sm:$0xff]  ;;  %v2781_v15 = vld [vmem:[%s8659_s16 + $0x5c8] sm:$0xff] }
 0x5ff   :  { %3025 = vmatpush1.msra.mxu0 %v2682_v60  ;;  %v2780_v60 = vld [vmem:[%s8659_s16 + $0x5c0] sm:$0xff] }
 0x600   :  { %2480 = vmatmul.mubr.f32.gmra.mxu0 %v2345_v32  ;;  %3026 = vmatprep.subr.mxu0 %v2676_v22 }
 0x601   :  { %v4610_v16 = vpop.f32.mrf.mxu1  ;;  %2485 = vmatprep.mubr.f32.mxu0 %v8730_v28  ;;  %3027 = vmatpush1.msra.mxu0 %v2675_v57  ;;  %v2773_v57 = vld [vmem:[%s8659_s16 + $0x588] sm:$0xff] }
 0x602   :  { %3028 = vmatprep.subr.mxu0 %v2669_v63  ;;  %v2290_v24 = vadd.f32 %v4610_v16, %v7135_v38 }
 0x603   :  { %v2284_v61 = vpop.f32.mrf.mxu1  ;;  %3029 = vmatpush1.msra.mxu0 %v2668_v41  ;;  %v2767_v41 = vld [vmem:[%s8659_s16 + $0x558] sm:$0xff] }
 0x604   :  { %v2285_v42 = vadd.f32 %v7135_v38, %v2284_v61  ;;  %2486 = vmatmul.mubr.f32.gmra.mxu0 %v2346_v44  ;;  %3030 = vmatprep.subr.mxu0 %v2662_v58  ;;  %v2348_v33 = vmax.f32 %v2290_v24, 0.0  ;;  %v2766_v58 = vld [vmem:[%s8659_s16 + $0x550] sm:$0xff]  ;;  %v2760_v44 = vld [vmem:[%s8659_s16 + $0x520] sm:$0xff] }
 0x605   :  { %2491 = vmatprep.mubr.f32.mxu0 %v8730_v28  ;;  %3031 = vmatpush1.msra.mxu0 %v2661_v0  ;;  %v2746_v24 = vld [vmem:[%s8659_s16 + $0x4b0] sm:$0xff] }
 0x606   :  { %v2347_v9 = vmax.f32 %v2285_v42, 0.0  ;;  %3032 = vmatprep.subr.mxu0 %v2655_v10  ;;  %v2759_v10 = vld [vmem:[%s8659_s16 + $0x518] sm:$0xff]  ;;  %v2753_v42 = vld [vmem:[%s8659_s16 + $0x4e8] sm:$0xff] }
 0x607   :  { %3033 = vmatpush1.msra.mxu0 %v2654_v31  ;;  %v2752_v31 = vld [vmem:[%s8659_s16 + $0x4e0] sm:$0xff] }
 0x608   :  { %2492 = vmatmul.mubr.f32.gmra.mxu0 %v2347_v9  ;;  %3034 = vmatprep.subr.mxu0 %v2648_v21 }
 0x609   :  { %v4613_v43 = vpop.f32.mrf.mxu1  ;;  %2497 = vmatprep.mubr.f32.mxu0 %v8730_v28  ;;  %3035 = vmatpush1.msra.mxu0 %v2647_v11  ;;  %v2745_v11 = vld [vmem:[%s8659_s16 + $0x4a8] sm:$0xff] }
 0x60a   :  { %3036 = vmatprep.subr.mxu0 %v2641_v34  ;;  %v2300_v13 = vadd.f32 %v4613_v43, %v7135_v38 }
 0x60b   :  { %v2294_v14 = vpop.f32.mrf.mxu1  ;;  %3037 = vmatpush1.msra.mxu0 %v2640_v20  ;;  %v2739_v20 = vld [vmem:[%s8659_s16 + $0x478] sm:$0xff] }
 0x60c   :  { %v2295_v48 = vadd.f32 %v7135_v38, %v2294_v14  ;;  %2498 = vmatmul.mubr.f32.gmra.mxu0 %v2348_v33  ;;  %3038 = vmatprep.subr.mxu0 %v2634_v62  ;;  %v2350_v36 = vmax.f32 %v2300_v13, 0.0  ;;  %v2738_v62 = vld [vmem:[%s8659_s16 + $0x470] sm:$0xff] }
 0x60d   :  { %2503 = vmatprep.mubr.f32.mxu0 %v8730_v28  ;;  %3039 = vmatpush1.msra.mxu0 %v2633_v12  ;;  %v2722_v13 = vld [vmem:[%s8659_s16 + $0x3f0] sm:$0xff] }
 0x60e   :  { %v2349_v17 = vmax.f32 %v2295_v48, 0.0  ;;  %3040 = vmatprep.subr.mxu0 %v2627_v45  ;;  %v2730_v45 = vld [vmem:[%s8659_s16 + $0x430] sm:$0xff]  ;;  %v2732_v48 = vld [vmem:[%s8659_s16 + $0x440] sm:$0xff] }
 0x60f   :  { %3041 = vmatpush1.msra.mxu0 %v2626_v37  ;;  %2913 = vmatprep.subr.mxu1 %v2730_v45  ;;  %v2723_v37 = vld [vmem:[%s8659_s16 + $0x3f8] sm:$0xff] }
 0x610   :  { %2504 = vmatmul.mubr.f32.gmra.mxu0 %v2349_v17  ;;  %3042 = vmatprep.subr.mxu0 %v2620_v7  ;;  %v2725_v7 = vld [vmem:[%s8659_s16 + $0x408] sm:$0xff]  ;;  %v2724_v17 = vld [vmem:[%s8659_s16 + $0x400] sm:$0xff] }
 0x611   :  { %v4616_v46 = vpop.f32.mrf.mxu1  ;;  %2509 = vmatprep.mubr.f32.mxu0 %v8730_v28  ;;  %3043 = vmatpush1.msra.mxu0 %v2619_v29  ;;  %v2716_v29 = vld [vmem:[%s8659_s16 + $0x3c0] sm:$0xff] }
 0x612   :  { %3044 = vmatprep.subr.mxu0 %v2613_v55  ;;  %v2310_v35 = vadd.f32 %v4616_v46, %v7135_v38  ;;  %v2718_v55 = vld [vmem:[%s8659_s16 + $0x3d0] sm:$0xff]  ;;  %v2717_v46 = vld [vmem:[%s8659_s16 + $0x3c8] sm:$0xff] }
 0x613   :  { %v2304_v47 = vpop.f32.mrf.mxu1  ;;  %3045 = vmatpush1.msra.mxu0 %v2612_v18  ;;  %v2715_v18 = vld [vmem:[%s8659_s16 + $0x3b8] sm:$0xff] }
 0x614   :  { %v2305_v59 = vadd.f32 %v7135_v38, %v2304_v47  ;;  %2510 = vmatmul.mubr.f32.gmra.mxu0 %v2350_v36  ;;  %3046 = vmatprep.subr.mxu0 %v2606_v1  ;;  %v2352_v5 = vmax.f32 %v2310_v35, 0.0  ;;  %v2709_v1 = vld [vmem:[%s8659_s16 + $0x388] sm:$0xff]  ;;  %v2711_v36 = vld [vmem:[%s8659_s16 + $0x398] sm:$0xff]  ;;  %v2710_v47 = vld [vmem:[%s8659_s16 + $0x390] sm:$0xff] }
 0x615   :  { %2515 = vmatprep.mubr.f32.mxu0 %v8730_v28  ;;  %3047 = vmatpush1.msra.mxu0 %v2605_v4  ;;  %v2708_v4 = vld [vmem:[%s8659_s16 + $0x380] sm:$0xff] }
 0x616   :  { %v2351_v49 = vmax.f32 %v2305_v59, 0.0  ;;  %3048 = vmatprep.subr.mxu0 %v2599_v50  ;;  %v2706_v50 = vld [vmem:[%s8659_s16 + $0x370] sm:$0xff]  ;;  %v2819_v59 = vld [vmem:[%s8659_s16 + $0x6f8] sm:$0xff] }
 0x617   :  { %3049 = vmatpush1.msra.mxu0 %v2598_v2  ;;  %v2391_v2 = vld [vmem:[%s8661_s15] sm:$0x3] }
 0x618   :  { %2516 = vmatmul.mubr.f32.gmra.mxu0 %v2351_v49  ;;  %3050 = vmatprep.subr.mxu0 %v2816_v25  ;;  %v8731_v25 = vld [vmem:[#allocation16_spill] sm:$0xff]  ;;  %v8732_v49 = vld [vmem:[#allocation22_spill] sm:$0xff] }
 0x619   :  { %v4619_v51 = vpop.f32.mrf.mxu1  ;;  %2521 = vmatprep.mubr.f32.mxu0 %v8730_v28  ;;  %3051 = vmatpush2.msra.mxu0 %v2815_v52  ;;  %v7391_v35 = vrot.slane %v2391_v2, %v8731_v25  ;;  %v7394_v52 = vrot.slane %v2391_v2, %v8732_v49 }
 0x61a   :  { %3052 = vmatprep.subr.mxu0 %v2809_v8  ;;  %v2320_v26 = vadd.f32 %v4619_v51, %v7135_v38 }
 0x61b   :  { %v2314_v27 = vpop.f32.mrf.mxu1  ;;  %3053 = vmatpush2.msra.mxu0 %v2808_v23 }
 0x61c   :  { %v2315_v53 = vadd.f32 %v7135_v38, %v2314_v27  ;;  %2522 = vmatmul.mubr.f32.gmra.mxu0 %v2352_v5  ;;  %3054 = vmatprep.subr.mxu0 %v2802_v54  ;;  %v2354_v32 = vmax.f32 %v2320_v26, 0.0 }
 0x61d   :  { %2527 = vmatprep.mubr.f32.mxu0 %v8730_v28  ;;  %3055 = vmatpush2.msra.mxu0 %v2801_v6 }
 0x61e   :  { %v2353_v30 = vmax.f32 %v2315_v53, 0.0  ;;  %3056 = vmatprep.subr.mxu0 %v2795_v40 }
 0x61f   :  { %3057 = vmatpush2.msra.mxu0 %v2794_v56  ;;  %v2705_v56 = vld [vmem:[%s8659_s16 + $0x368] sm:$0xff] }
 0x620   :  { %2528 = vmatmul.mubr.f32.gmra.mxu0 %v2353_v30  ;;  %3058 = vmatprep.subr.mxu0 %v2788_v3  ;;  %v2707_v3 = vld [vmem:[%s8659_s16 + $0x378] sm:$0xff] }
 0x621   :  { %v4622_v22 = vpop.f32.mrf.mxu1  ;;  %2533 = vmatprep.mubr.f32.mxu0 %v8730_v28  ;;  %3059 = vmatpush2.msra.mxu0 %v2787_v19  ;;  %v2699_v30 = vld [vmem:[%s8659_s16 + $0x338] sm:$0xff]  ;;  %v2812_v19 = vld [vmem:[%s8659_s16 + $0x6c0] sm:$0xff] }
 0x622   :  { %3060 = vmatprep.subr.mxu0 %v2781_v15  ;;  %v2330_v0 = vadd.f32 %v4622_v22, %v7135_v38  ;;  %v2698_v22 = vld [vmem:[%s8659_s16 + $0x330] sm:$0xff] }
 0x623   :  { %v2324_v63 = vpop.f32.mrf.mxu1  ;;  %3061 = vmatpush2.msra.mxu0 %v2780_v60 }
 0x624   :  { %v2325_v16 = vadd.f32 %v7135_v38, %v2324_v63  ;;  %2534 = vmatmul.mubr.f32.gmra.mxu0 %v2354_v32  ;;  %3062 = vmatprep.subr.mxu0 %v2774_v39  ;;  %v2356_v9 = vmax.f32 %v2330_v0, 0.0  ;;  %v2685_v0 = vld [vmem:[%s8659_s16 + $0x2c8] sm:$0xff] }
 0x625   :  { %2539 = vmatprep.mubr.f32.mxu0 %v8730_v28  ;;  %3063 = vmatpush2.msra.mxu0 %v2773_v57  ;;  %v2692_v57 = vld [vmem:[%s8659_s16 + $0x300] sm:$0xff] }
 0x626   :  { %v2355_v61 = vmax.f32 %v2325_v16, 0.0  ;;  %3064 = vmatprep.subr.mxu0 %v2767_v41  ;;  %v2691_v16 = vld [vmem:[%s8659_s16 + $0x2f8] sm:$0xff] }
 0x627   :  { %3065 = vmatpush2.msra.mxu0 %v2766_v58  ;;  %v2700_v58 = vld [vmem:[%s8659_s16 + $0x340] sm:$0xff] }
 0x628   :  { %2540 = vmatmul.mubr.f32.gmra.mxu0 %v2355_v61  ;;  %3066 = vmatprep.subr.mxu0 %v2760_v44 }
 0x629   :  { %v4625_v21 = vpop.f32.mrf.mxu1  ;;  %2545 = vmatprep.mubr.f32.mxu0 %v8730_v28  ;;  %3067 = vmatpush2.msra.mxu0 %v2759_v10  ;;  %v2684_v10 = vld [vmem:[%s8659_s16 + $0x2c0] sm:$0xff] }
 0x62a   :  { %3068 = vmatprep.subr.mxu0 %v2753_v42  ;;  %v2340_v33 = vadd.f32 %v4625_v21, %v7135_v38 }
 0x62b   :  { %v2334_v34 = vpop.f32.mrf.mxu1  ;;  %3069 = vmatpush2.msra.mxu0 %v2752_v31 }
 0x62c   :  { %v2335_v43 = vadd.f32 %v7135_v38, %v2334_v34  ;;  %2546 = vmatmul.mubr.f32.gmra.mxu0 %v2356_v9  ;;  %3070 = vmatprep.subr.mxu0 %v2746_v24  ;;  %v2358_v14 = vmax.f32 %v2340_v33, 0.0  ;;  %v2729_v38 = vld [vmem:[%s8659_s16 + $0x428] sm:$0xff]  ;;  %v2678_v24 = vld [vmem:[%s8659_s16 + $0x290] sm:$0xff]  ;;  %v2671_v33 = vld [vmem:[%s8659_s16 + $0x258] sm:$0xff] }
 0x62d   :  { %2551 = vmatprep.mubr.f32.mxu0 %v8730_v28  ;;  %3071 = vmatpush2.msra.mxu0 %v2745_v11  ;;  %v2805_v9 = vld [vmem:[%s8659_s16 + $0x688] sm:$0xff] }
 0x62e   :  { %v2357_v12 = vmax.f32 %v2335_v43, 0.0  ;;  %3072 = vmatprep.subr.mxu0 %v2739_v20  ;;  %2914 = vmatpush2.msra.mxu1 %v2729_v38  ;;  %v2677_v20 = vld [vmem:[%s8659_s16 + $0x288] sm:$0xff] }
 0x62f   :  { %3073 = vmatpush2.msra.mxu0 %v2738_v62  ;;  %2915 = vmatprep.subr.mxu1 %v2723_v37  ;;  %v2693_v43 = vld [vmem:[%s8659_s16 + $0x308] sm:$0xff]  ;;  %v2798_v37 = vld [vmem:[%s8659_s16 + $0x650] sm:$0xff] }
 0x630   :  { %2552 = vmatmul.mubr.f32.gmra.mxu0 %v2357_v12  ;;  %3074 = vmatprep.subr.mxu0 %v2732_v48 }
 0x631   :  { %2557 = vmatprep.mubr.f32.mxu0 %v8730_v28  ;;  %v2731_v28 = vld [vmem:[%s8659_s16 + $0x438] sm:$0xff]  ;;  %2916 = vmatpush2.msra.mxu1 %v2722_v13 }
 0x632   :  { %3075 = vmatpush2.msra.mxu0 %v2731_v28  ;;  %2917 = vmatprep.subr.mxu1 %v2716_v29  ;;  %v2664_v28 = vld [vmem:[%s8659_s16 + $0x220] sm:$0xff]  ;;  %v2686_v29 = vld [vmem:[%s8659_s16 + $0x2d0] sm:$0xff] }
 0x633   :  { %3076 = vmatprep.subr.mxu0 %v2725_v7  ;;  %2918 = vmatpush2.msra.mxu1 %v2715_v18  ;;  %v2657_v18 = vld [vmem:[%s8659_s16 + $0x1e8] sm:$0xff] }
 0x634   :  { %2558 = vmatmul.mubr.f32.gmra.mxu0 %v2358_v14  ;;  %2919 = vmatprep.subr.mxu1 %v2709_v1  ;;  %v2670_v14 = vld [vmem:[%s8659_s16 + $0x250] sm:$0xff]  ;;  %v2656_v1 = vld [vmem:[%s8659_s16 + $0x1e0] sm:$0xff] }
 0x635   :  { %3077 = vmatpush2.msra.mxu0 %v2724_v17  ;;  %2920 = vmatpush2.msra.mxu1 %v2708_v4  ;;  %v2663_v17 = vld [vmem:[%s8659_s16 + $0x218] sm:$0xff] }
 0x636   :  { %3078 = vmatprep.subr.mxu0 %v2718_v55  ;;  %3179 = vmatprep.subr.mxu1 %v2706_v50  ;;  %v2791_v50 = vld [vmem:[%s8659_s16 + $0x618] sm:$0xff] }
 0x637   :  { %3079 = vmatpush2.msra.mxu0 %v2717_v46 }
 0x638   :  { %3080 = vmatprep.subr.mxu0 %v2711_v36 }
 0x639   :  { %3081 = vmatpush2.msra.mxu0 %v2710_v47  ;;  %v2650_v47 = vld [vmem:[%s8659_s16 + $0x1b0] sm:$0xff] }
 0x63a   :  { %4400 = vmatprep.subr.mxu0 %v2819_v59 }
 0x6b8   :  { %v2469_v8 = vpop.f32.mrf.mxu0 }
 0x6b9   :  { %v2470_v23 = vadd.f32 %v2469_v8, %v7391_v35  ;;  %v2649_v8 = vld [vmem:[%s8659_s16 + $0x1a8] sm:$0xff] }
 0x6ba   :  { %v2471_v51 = vpop.f32.mrf.mxu0 }
 0x6bb   :  { %v2472_v54 = vadd.f32 %v2471_v51, %v7394_v52  ;;  %v7400_v27 = vmax.f32 %v2470_v23, 0.0  ;;  %v2679_v23 = vld [vmem:[%s8659_s16 + $0x298] sm:$0xff] }
 0x6bc   :  { %v2475_v5 = vpop.f32.mrf.mxu0 }
 0x6bd   :  { %v7398_v6 = vmax.f32 %v2472_v54, 0.0  ;;  %v2476_v40 = vadd.f32 %v2475_v5, %v7391_v35  ;;  %v2643_v5 = vld [vmem:[%s8659_s16 + $0x178] sm:$0xff] }
 0x6be   :  { %v2477_v53 = vpop.f32.mrf.mxu0 }
 0x6bf   :  { %v2478_v26 = vadd.f32 %v2477_v53, %v7394_v52  ;;  %2921 = vmatprep.mubr.f32.mxu1 %v7398_v6  ;;  %3082 = vmatprep.mubr.f32.mxu0 %v7398_v6  ;;  %v7425_v39 = vmax.f32 %v2476_v40, 0.0  ;;  %v2642_v40 = vld [vmem:[%s8659_s16 + $0x170] sm:$0xff] }
 0x6c0   :  { %v2481_v15 = vpop.f32.mrf.mxu0  ;;  %2922 = vmatmul.mubr.f32.vlgmr.msra.gmra.mxu1 %v7400_v27  ;;  %3083 = vmatmul.mubr.f32.vlgmr.msra.gmra.mxu0 %v7400_v27 }
 0x6c1   :  { %v7420_v60 = vmax.f32 %v2478_v26, 0.0  ;;  %3180 = vmatpush1.msra.mxu1 %v2705_v56  ;;  %4401 = vmatpush3.msra.mxu0 %v2707_v3  ;;  %v2482_v63 = vadd.f32 %v2481_v15, %v7391_v35  ;;  %v2636_v3 = vld [vmem:[%s8659_s16 + $0x140] sm:$0xff] }
 0x6c2   :  { %v2483_v32 = vpop.f32.mrf.mxu0  ;;  %3181 = vmatprep.subr.mxu1 %v2699_v30  ;;  %4402 = vmatprep.subr.mxu0 %v2812_v19  ;;  %v2784_v26 = vld [vmem:[%s8659_s16 + $0x5e0] sm:$0xff] }
 0x6c3   :  { %v2484_v41 = vadd.f32 %v2483_v32, %v7394_v52  ;;  %2927 = vmatprep.mubr.f32.mxu1 %v7420_v60  ;;  %3088 = vmatprep.mubr.f32.mxu0 %v7420_v60  ;;  %v7450_v31 = vmax.f32 %v2482_v63, 0.0  ;;  %v2672_v32 = vld [vmem:[%s8659_s16 + $0x260] sm:$0xff]  ;;  %v2629_v63 = vld [vmem:[%s8659_s16 + $0x108] sm:$0xff] }
 0x6c4   :  { %3182 = vmatpush1.msra.mxu1 %v2698_v22  ;;  %v2487_v44 = vpop.f32.mrf.mxu0  ;;  %3089 = vmatmul.mubr.f32.gmra.mxu0 %v7425_v39  ;;  %v2635_v22 = vld [vmem:[%s8659_s16 + $0x138] sm:$0xff] }
 0x6c5   :  { %v7444_v61 = vmax.f32 %v2484_v41, 0.0  ;;  %2928 = vmatmul.mubr.f32.gmra.mxu1 %v7425_v39  ;;  %3183 = vmatprep.subr.mxu1 %v2692_v57  ;;  %v2488_v11 = vadd.f32 %v2487_v44, %v7391_v35 }
 0x6c6   :  { %3184 = vmatpush1.msra.mxu1 %v2691_v16  ;;  %4403 = vmatpush3.msra.mxu0 %v2700_v58  ;;  %v2489_v42 = vpop.f32.mrf.mxu0  ;;  %v2628_v16 = vld [vmem:[%s8659_s16 + $0x100] sm:$0xff] }
 0x6c7   :  { %v2490_v21 = vadd.f32 %v2489_v42, %v7394_v52  ;;  %3185 = vmatprep.subr.mxu1 %v2685_v0  ;;  %2933 = vmatprep.mubr.f32.mxu1 %v7444_v61  ;;  %v7479_v48 = vmax.f32 %v2488_v11, 0.0  ;;  %v2622_v0 = vld [vmem:[%s8659_s16 + $0xd0] sm:$0xff] }
 0x6c8   :  { %3094 = vmatprep.mubr.f32.mxu0 %v7444_v61  ;;  %3186 = vmatpush1.msra.mxu1 %v2684_v10  ;;  %v2493_v34 = vpop.f32.mrf.mxu0  ;;  %v2777_v10 = vld [vmem:[%s8659_s16 + $0x5a8] sm:$0xff] }
 0x6c9   :  { %v7468_v62 = vmax.f32 %v2490_v21, 0.0  ;;  %2934 = vmatmul.mubr.f32.gmra.mxu1 %v7450_v31  ;;  %3095 = vmatmul.mubr.f32.gmra.mxu0 %v7450_v31  ;;  %v2494_v7 = vadd.f32 %v2493_v34, %v7391_v35 }
 0x6ca   :  { %3187 = vmatprep.subr.mxu1 %v2678_v24  ;;  %4404 = vmatprep.subr.mxu0 %v2805_v9  ;;  %v2495_v12 = vpop.f32.mrf.mxu0  ;;  %v2621_v24 = vld [vmem:[%s8659_s16 + $0xc8] sm:$0xff] }
 0x6cb   :  { %3188 = vmatpush1.msra.mxu1 %v2677_v20  ;;  %4405 = vmatpush3.msra.mxu0 %v2693_v43  ;;  %v2496_v45 = vadd.f32 %v2495_v12, %v7394_v52  ;;  %v7507_v4 = vmax.f32 %v2494_v7, 0.0  ;;  %v2665_v9 = vld [vmem:[%s8659_s16 + $0x228] sm:$0xff]  ;;  %v2615_v20 = vld [vmem:[%s8659_s16 + $0x98] sm:$0xff]  ;;  %v2614_v43 = vld [vmem:[%s8659_s16 + $0x90] sm:$0xff] }
 0x6cc   :  { %3189 = vmatprep.subr.mxu1 %v2671_v33  ;;  %2939 = vmatprep.mubr.f32.mxu1 %v7468_v62  ;;  %v2499_v38 = vpop.f32.mrf.mxu0  ;;  %v2607_v7 = vld [vmem:[%s8659_s16 + $0x58] sm:$0xff] }
 0x6cd   :  { %v7489_v13 = vmax.f32 %v2496_v45, 0.0  ;;  %3100 = vmatprep.mubr.f32.mxu0 %v7468_v62  ;;  %3190 = vmatpush1.msra.mxu1 %v2670_v14  ;;  %v2500_v59 = vadd.f32 %v2499_v38, %v7391_v35  ;;  %v2608_v14 = vld [vmem:[%s8659_s16 + $0x60] sm:$0xff]  ;;  %v2770_v45 = vld [vmem:[%s8659_s16 + $0x570] sm:$0xff] }
 0x6ce   :  { %2940 = vmatmul.mubr.f32.gmra.mxu1 %v7479_v48  ;;  %3101 = vmatmul.mubr.f32.gmra.mxu0 %v7479_v48  ;;  %v2501_v55 = vpop.f32.mrf.mxu0 }
 0x6cf   :  { %3191 = vmatprep.subr.mxu1 %v2664_v28  ;;  %4406 = vmatprep.subr.mxu0 %v2798_v37  ;;  %v2502_v46 = vadd.f32 %v2501_v55, %v7394_v52  ;;  %v7535_v56 = vmax.f32 %v2500_v59, 0.0  ;;  %v2601_v55 = vld [vmem:[%s8659_s16 + $0x28] sm:$0xff] }
 0x6d0   :  { %3192 = vmatpush1.msra.mxu1 %v2663_v17  ;;  %4407 = vmatpush3.msra.mxu0 %v2686_v29  ;;  %v2505_v36 = vpop.f32.mrf.mxu0  ;;  %v2658_v17 = vld [vmem:[%s8659_s16 + $0x1f0] sm:$0xff] }
 0x6d1   :  { %3193 = vmatprep.subr.mxu1 %v2657_v18  ;;  %2945 = vmatprep.mubr.f32.mxu1 %v7489_v13  ;;  %v7517_v2 = vmax.f32 %v2502_v46, 0.0  ;;  %v2506_v19 = vadd.f32 %v2505_v36, %v7391_v35  ;;  %v2600_v46 = vld [vmem:[%s8659_s16 + $0x20] sm:$0xff] }
 0x6d2   :  { %3106 = vmatprep.mubr.f32.mxu0 %v7489_v13  ;;  %3194 = vmatpush1.msra.mxu1 %v2656_v1  ;;  %v2507_v51 = vpop.f32.mrf.mxu0 }
 0x6d3   :  { %2946 = vmatmul.mubr.f32.gmra.mxu1 %v7507_v4  ;;  %3107 = vmatmul.mubr.f32.gmra.mxu0 %v7507_v4  ;;  %v2508_v54 = vadd.f32 %v2507_v51, %v7394_v52  ;;  %v7563_v44 = vmax.f32 %v2506_v19, 0.0  ;;  %v2651_v51 = vld [vmem:[%s8659_s16 + $0x1b8] sm:$0xff]  ;;  %v2756_v19 = vld [vmem:[%s8659_s16 + $0x500] sm:$0xff] }
 0x6d4   :  { %3195 = vmatprep.subr.mxu1 %v2650_v47  ;;  %4408 = vmatprep.subr.mxu0 %v2791_v50  ;;  %v2511_v53 = vpop.f32.mrf.mxu0  ;;  %v2818_v47 = vld [vmem:[%s8659_s16 + $0x6f0] sm:$0xff]  ;;  %v2763_v50 = vld [vmem:[%s8659_s16 + $0x538] sm:$0xff] }
 0x6d5   :  { %3196 = vmatpush1.msra.mxu1 %v2649_v8  ;;  %4409 = vmatpush3.msra.mxu0 %v2679_v23  ;;  %v7545_v15 = vmax.f32 %v2508_v54, 0.0  ;;  %v2512_v42 = vadd.f32 %v2511_v53, %v7391_v35  ;;  %v2817_v23 = vld [vmem:[%s8659_s16 + $0x6e8] sm:$0xff]  ;;  %v2810_v53 = vld [vmem:[%s8659_s16 + $0x6b0] sm:$0xff] }
 0x6d6   :  { %3197 = vmatprep.subr.mxu1 %v2643_v5  ;;  %2951 = vmatprep.mubr.f32.mxu1 %v7517_v2  ;;  %v2513_v30 = vpop.f32.mrf.mxu0 }
 0x6d7   :  { %3112 = vmatprep.mubr.f32.mxu0 %v7517_v2  ;;  %3198 = vmatpush1.msra.mxu1 %v2642_v40  ;;  %v2514_v57 = vadd.f32 %v2513_v30, %v7394_v52  ;;  %v7591_v12 = vmax.f32 %v2512_v42, 0.0  ;;  %v2811_v40 = vld [vmem:[%s8659_s16 + $0x6b8] sm:$0xff]  ;;  %v2804_v30 = vld [vmem:[%s8659_s16 + $0x680] sm:$0xff] }
 0x6d8   :  { %2952 = vmatmul.mubr.f32.gmra.mxu1 %v7535_v56  ;;  %3113 = vmatmul.mubr.f32.gmra.mxu0 %v7535_v56  ;;  %v2517_v41 = vpop.f32.mrf.mxu0 }
 0x6d9   :  { %3199 = vmatprep.subr.mxu1 %v2636_v3  ;;  %4410 = vmatprep.subr.mxu0 %v2784_v26  ;;  %v7573_v21 = vmax.f32 %v2514_v57, 0.0  ;;  %v2518_v28 = vadd.f32 %v2517_v41, %v7391_v35  ;;  %v2644_v41 = vld [vmem:[%s8659_s16 + $0x180] sm:$0xff] }
 0x6da   :  { %3200 = vmatpush1.msra.mxu1 %v2635_v22  ;;  %4411 = vmatpush3.msra.mxu0 %v2672_v32  ;;  %v2519_v58 = vpop.f32.mrf.mxu0 }
 0x6db   :  { %3201 = vmatprep.subr.mxu1 %v2629_v63  ;;  %2957 = vmatprep.mubr.f32.mxu1 %v7545_v15  ;;  %v2520_v34 = vadd.f32 %v2519_v58, %v7394_v52  ;;  %v7619_v36 = vmax.f32 %v2518_v28, 0.0  ;;  %v2803_v63 = vld [vmem:[%s8659_s16 + $0x678] sm:$0xff]  ;;  %v2797_v58 = vld [vmem:[%s8659_s16 + $0x648] sm:$0xff]  ;;  %v2782_v28 = vld [vmem:[%s8659_s16 + $0x5d0] sm:$0xff] }
 0x6dc   :  { %3118 = vmatprep.mubr.f32.mxu0 %v7545_v15  ;;  %3202 = vmatpush1.msra.mxu1 %v2628_v16  ;;  %v2523_v11 = vpop.f32.mrf.mxu0 }
 0x6dd   :  { %2958 = vmatmul.mubr.f32.gmra.mxu1 %v7563_v44  ;;  %3119 = vmatmul.mubr.f32.gmra.mxu0 %v7563_v44  ;;  %v7601_v37 = vmax.f32 %v2520_v34, 0.0  ;;  %v2524_v59 = vadd.f32 %v2523_v11, %v7391_v35  ;;  %v2749_v11 = vld [vmem:[%s8659_s16 + $0x4c8] sm:$0xff] }
 0x6de   :  { %3203 = vmatprep.subr.mxu1 %v2622_v0  ;;  %4412 = vmatprep.subr.mxu0 %v2777_v10  ;;  %v2525_v33 = vpop.f32.mrf.mxu0  ;;  %v2796_v10 = vld [vmem:[%s8659_s16 + $0x640] sm:$0xff] }
 0x6df   :  { %3204 = vmatpush1.msra.mxu1 %v2621_v24  ;;  %4413 = vmatpush3.msra.mxu0 %v2665_v9  ;;  %v2526_v29 = vadd.f32 %v2525_v33, %v7394_v52  ;;  %v7647_v26 = vmax.f32 %v2524_v59, 0.0  ;;  %v2790_v9 = vld [vmem:[%s8659_s16 + $0x610] sm:$0xff]  ;;  %v2637_v33 = vld [vmem:[%s8659_s16 + $0x148] sm:$0xff] }
 0x6e0   :  { %3205 = vmatprep.subr.mxu1 %v2615_v20  ;;  %2963 = vmatprep.mubr.f32.mxu1 %v7573_v21  ;;  %v2529_v38 = vpop.f32.mrf.mxu0  ;;  %v2769_v59 = vld [vmem:[%s8659_s16 + $0x568] sm:$0xff] }
 0x6e1   :  { %3124 = vmatprep.mubr.f32.mxu0 %v7573_v21  ;;  %3206 = vmatpush1.msra.mxu1 %v2614_v43  ;;  %v7629_v8 = vmax.f32 %v2526_v29, 0.0  ;;  %v2530_v32 = vadd.f32 %v2529_v38, %v7391_v35  ;;  %v2789_v43 = vld [vmem:[%s8659_s16 + $0x608] sm:$0xff]  ;;  %v2742_v29 = vld [vmem:[%s8659_s16 + $0x490] sm:$0xff] }
 0x6e2   :  { %2964 = vmatmul.mubr.f32.gmra.mxu1 %v7591_v12  ;;  %3125 = vmatmul.mubr.f32.gmra.mxu0 %v7591_v12  ;;  %v2531_v18 = vpop.f32.mrf.mxu0 }
 0x6e3   :  { %3207 = vmatprep.subr.mxu1 %v2608_v14  ;;  %4414 = vmatprep.subr.mxu0 %v2770_v45  ;;  %v2532_v5 = vadd.f32 %v2531_v18, %v7394_v52  ;;  %v7675_v24 = vmax.f32 %v2530_v32, 0.0  ;;  %v2783_v45 = vld [vmem:[%s8659_s16 + $0x5d8] sm:$0xff] }
 0x6e4   :  { %3208 = vmatpush1.msra.mxu1 %v2607_v7  ;;  %4415 = vmatpush3.msra.mxu0 %v2658_v17  ;;  %v2535_v1 = vpop.f32.mrf.mxu0  ;;  %v2776_v17 = vld [vmem:[%s8659_s16 + $0x5a0] sm:$0xff]  ;;  %v2755_v32 = vld [vmem:[%s8659_s16 + $0x4f8] sm:$0xff] }
 0x6e5   :  { %3209 = vmatprep.subr.mxu1 %v2601_v55  ;;  %2969 = vmatprep.mubr.f32.mxu1 %v7601_v37  ;;  %v7657_v57 = vmax.f32 %v2532_v5, 0.0  ;;  %v2536_v34 = vadd.f32 %v2535_v1, %v7391_v35  ;;  %v2630_v1 = vld [vmem:[%s8659_s16 + $0x110] sm:$0xff]  ;;  %v2735_v5 = vld [vmem:[%s8659_s16 + $0x458] sm:$0xff] }
 0x6e6   :  { %3130 = vmatprep.mubr.f32.mxu0 %v7601_v37  ;;  %3210 = vmatpush1.msra.mxu1 %v2600_v46  ;;  %v2537_v54 = vpop.f32.mrf.mxu0  ;;  %v2775_v46 = vld [vmem:[%s8659_s16 + $0x598] sm:$0xff] }
 0x6e7   :  { %2970 = vmatmul.mubr.f32.gmra.mxu1 %v7619_v36  ;;  %3131 = vmatmul.mubr.f32.gmra.mxu0 %v7619_v36  ;;  %v2538_v16 = vadd.f32 %v2537_v54, %v7394_v52  ;;  %v7703_v7 = vmax.f32 %v2536_v34, 0.0  ;;  %v2762_v54 = vld [vmem:[%s8659_s16 + $0x530] sm:$0xff] }
 0x6e8   :  { %3211 = vmatprep.subr.mxu1 %v2818_v47  ;;  %4416 = vmatprep.subr.mxu0 %v2763_v50  ;;  %v2541_v3 = vpop.f32.mrf.mxu0 }
 0x6e9   :  { %3212 = vmatpush2.msra.mxu1 %v2817_v23  ;;  %4417 = vmatpush3.msra.mxu0 %v2651_v51  ;;  %v7685_v20 = vmax.f32 %v2538_v16, 0.0  ;;  %v2542_v55 = vadd.f32 %v2541_v3, %v7391_v35  ;;  %v2768_v23 = vld [vmem:[%s8659_s16 + $0x560] sm:$0xff] }
 0x6ea   :  { %3213 = vmatprep.subr.mxu1 %v2811_v40  ;;  %2975 = vmatprep.mubr.f32.mxu1 %v7629_v8  ;;  %v2543_v22 = vpop.f32.mrf.mxu0 }
 0x6eb   :  { %3136 = vmatprep.mubr.f32.mxu0 %v7629_v8  ;;  %3214 = vmatpush2.msra.mxu1 %v2810_v53  ;;  %v2544_v14 = vadd.f32 %v2543_v22, %v7394_v52  ;;  %v7731_v51 = vmax.f32 %v2542_v55, 0.0  ;;  %v2726_v55 = vld [vmem:[%s8659_s16 + $0x410] sm:$0xff] }
 0x6ec   :  { %2976 = vmatmul.mubr.f32.gmra.mxu1 %v7647_v26  ;;  %3137 = vmatmul.mubr.f32.gmra.mxu0 %v7647_v26  ;;  %v2547_v0 = vpop.f32.mrf.mxu0 }
 0x6ed   :  { %3215 = vmatprep.subr.mxu1 %v2804_v30  ;;  %4418 = vmatprep.subr.mxu0 %v2756_v19  ;;  %v7713_v18 = vmax.f32 %v2544_v14, 0.0  ;;  %v2548_v53 = vadd.f32 %v2547_v0, %v7391_v35  ;;  %v2761_v30 = vld [vmem:[%s8659_s16 + $0x528] sm:$0xff]  ;;  %v2623_v19 = vld [vmem:[%s8659_s16 + $0xd8] sm:$0xff]  ;;  %v2728_v0 = vld [vmem:[%s8659_s16 + $0x420] sm:$0xff] }
 0x6ee   :  { %3216 = vmatpush2.msra.mxu1 %v2803_v63  ;;  %4419 = vmatpush3.msra.mxu0 %v2644_v41  ;;  %v2549_v42 = vpop.f32.mrf.mxu0  ;;  %v2754_v63 = vld [vmem:[%s8659_s16 + $0x4f0] sm:$0xff] }
 0x6ef   :  { %3217 = vmatprep.subr.mxu1 %v2797_v58  ;;  %2981 = vmatprep.mubr.f32.mxu1 %v7657_v57  ;;  %v2550_v50 = vadd.f32 %v2549_v42, %v7394_v52  ;;  %v7759_v16 = vmax.f32 %v2548_v53, 0.0  ;;  %v2748_v58 = vld [vmem:[%s8659_s16 + $0x4c0] sm:$0xff] }
 0x6f0   :  { %3142 = vmatprep.mubr.f32.mxu0 %v7657_v57  ;;  %3218 = vmatpush2.msra.mxu1 %v2796_v10  ;;  %v2553_v38 = vpop.f32.mrf.mxu0 }
 0x6f1   :  { %2982 = vmatmul.mubr.f32.gmra.mxu1 %v7675_v24  ;;  %3143 = vmatmul.mubr.f32.gmra.mxu0 %v7675_v24  ;;  %v7741_v3 = vmax.f32 %v2550_v50, 0.0  ;;  %v2554_v10 = vadd.f32 %v2553_v38, %v7391_v35  ;;  %v2719_v50 = vld [vmem:[%s8659_s16 + $0x3d8] sm:$0xff] }
 0x6f2   :  { %3219 = vmatprep.subr.mxu1 %v2790_v9  ;;  %4420 = vmatprep.subr.mxu0 %v2749_v11  ;;  %v2555_v47 = vpop.f32.mrf.mxu0  ;;  %v2747_v9 = vld [vmem:[%s8659_s16 + $0x4b8] sm:$0xff]  ;;  %v2616_v11 = vld [vmem:[%s8659_s16 + $0xa0] sm:$0xff] }
 0x6f3   :  { %3220 = vmatpush2.msra.mxu1 %v2789_v43  ;;  %4421 = vmatpush3.msra.mxu0 %v2637_v33  ;;  %v2556_v22 = vadd.f32 %v2555_v47, %v7394_v52  ;;  %v2741_v43 = vld [vmem:[%s8659_s16 + $0x488] sm:$0xff]  ;;  %v2740_v33 = vld [vmem:[%s8659_s16 + $0x480] sm:$0xff]  ;;  %v7787_v14 = vmax.f32 %v2554_v10, 0.0  ;;  %v2714_v47 = vld [vmem:[%s8659_s16 + $0x3b0] sm:$0xff] }
 0x6f4   :  { %3221 = vmatprep.subr.mxu1 %v2783_v45  ;;  %2987 = vmatprep.mubr.f32.mxu1 %v7685_v20  ;;  %v2559_v40 = vpop.f32.mrf.mxu0  ;;  %v2721_v45 = vld [vmem:[%s8659_s16 + $0x3e8] sm:$0xff] }
 0x6f5   :  { %3148 = vmatprep.mubr.f32.mxu0 %v7685_v20  ;;  %3222 = vmatpush2.msra.mxu1 %v2782_v28  ;;  %v7769_v42 = vmax.f32 %v2556_v22, 0.0  ;;  %v2560_v38 = vadd.f32 %v2559_v40, %v7391_v35  ;;  %v2727_v35 = vld [vmem:[%s8659_s16 + $0x418] sm:$0xff] }
 0x6f6   :  { %2988 = vmatmul.mubr.f32.gmra.mxu1 %v7703_v7  ;;  %3149 = vmatmul.mubr.f32.gmra.mxu0 %v7703_v7  ;;  %v2561_v41 = vpop.f32.mrf.mxu0 }
 0x6f7   :  { %3223 = vmatprep.subr.mxu1 %v2776_v17  ;;  %4422 = vmatprep.subr.mxu0 %v2742_v29  ;;  %v2562_v34 = vadd.f32 %v2561_v41, %v7394_v52  ;;  %v2734_v52 = vld [vmem:[%s8659_s16 + $0x450] sm:$0xff]  ;;  %v2733_v17 = vld [vmem:[%s8659_s16 + $0x448] sm:$0xff] }
 0x6f8   :  { %3224 = vmatpush2.msra.mxu1 %v2775_v46  ;;  %4423 = vmatpush3.msra.mxu0 %v2630_v1  ;;  %v2609_v29 = vld [vmem:[%s8659_s16 + $0x68] sm:$0xff]  ;;  %v7814_v46 = vmax.f32 %v2560_v38, 0.0  ;;  %v2720_v1 = vld [vmem:[%s8659_s16 + $0x3e0] sm:$0xff] }
 0x6f9   :  { %3225 = vmatprep.subr.mxu1 %v2769_v59  ;;  %2993 = vmatprep.mubr.f32.mxu1 %v7713_v18  ;;  %v7797_v28 = vmax.f32 %v2562_v34, 0.0  ;;  %v2602_v59 = vld [vmem:[%s8659_s16 + $0x30] sm:$0xff] }
 0x6fa   :  { %3154 = vmatprep.mubr.f32.mxu0 %v7713_v18  ;;  %3226 = vmatpush2.msra.mxu1 %v2768_v23  ;;  %v2713_v23 = vld [vmem:[%s8659_s16 + $0x3a8] sm:$0xff] }
 0x6fb   :  { %2994 = vmatmul.mubr.f32.gmra.mxu1 %v7731_v51  ;;  %3155 = vmatmul.mubr.f32.gmra.mxu0 %v7731_v51 }
 0x6fc   :  { %3227 = vmatprep.subr.mxu1 %v2762_v54  ;;  %4424 = vmatprep.subr.mxu0 %v2735_v5  ;;  %v2712_v54 = vld [vmem:[%s8659_s16 + $0x3a0] sm:$0xff] }
 0x6fd   :  { %3228 = vmatpush2.msra.mxu1 %v2761_v30  ;;  %4425 = vmatpush3.msra.mxu0 %v2623_v19 }
 0x6fe   :  { %3229 = vmatprep.subr.mxu1 %v2755_v32  ;;  %2999 = vmatprep.mubr.f32.mxu1 %v7741_v3 }
 0x6ff   :  { %3160 = vmatprep.mubr.f32.mxu0 %v7741_v3  ;;  %3230 = vmatpush2.msra.mxu1 %v2754_v63 }
 0x700   :  { %3000 = vmatmul.mubr.f32.gmra.mxu1 %v7759_v16  ;;  %3161 = vmatmul.mubr.f32.gmra.mxu0 %v7759_v16 }
 0x701   :  { %3231 = vmatprep.subr.mxu1 %v2748_v58  ;;  %4426 = vmatprep.subr.mxu0 %v2728_v0 }
 0x702   :  { %3232 = vmatpush2.msra.mxu1 %v2747_v9  ;;  %4427 = vmatpush3.msra.mxu0 %v2616_v11 }
 0x703   :  { %3233 = vmatprep.subr.mxu1 %v2741_v43  ;;  %3005 = vmatprep.mubr.f32.mxu1 %v7769_v42 }
 0x704   :  { %3166 = vmatprep.mubr.f32.mxu0 %v7769_v42  ;;  %3234 = vmatpush2.msra.mxu1 %v2740_v33 }
 0x705   :  { %3006 = vmatmul.mubr.f32.gmra.mxu1 %v7787_v14  ;;  %3167 = vmatmul.mubr.f32.gmra.mxu0 %v7787_v14 }
 0x706   :  { %3235 = vmatprep.subr.mxu1 %v2734_v52  ;;  %4428 = vmatprep.subr.mxu0 %v2721_v45 }
 0x707   :  { %3236 = vmatpush2.msra.mxu1 %v2733_v17  ;;  %4429 = vmatpush3.msra.mxu0 %v2609_v29 }
 0x708   :  { %3237 = vmatprep.subr.mxu1 %v2727_v35  ;;  %3011 = vmatprep.mubr.f32.mxu1 %v7797_v28 }
 0x709   :  { %3172 = vmatprep.mubr.f32.mxu0 %v7797_v28  ;;  %3238 = vmatpush2.msra.mxu1 %v2726_v55 }
 0x70a   :  { %3012 = vmatmul.mubr.f32.gmra.mxu1 %v7814_v46  ;;  %3173 = vmatmul.mubr.f32.gmra.mxu0 %v7814_v46 }
 0x70b   :  { %3239 = vmatprep.subr.mxu1 %v2720_v1  ;;  %4430 = vmatprep.subr.mxu0 %v2714_v47 }
 0x70c   :  { %3240 = vmatpush2.msra.mxu1 %v2719_v50  ;;  %3243 = vmatprep.mubr.f32.mxu1 %v7398_v6 }
 0x70d   :  { %4431 = vmatpush3.msra.mxu0 %v2602_v59  ;;  %3404 = vmatprep.mubr.f32.mxu0 %v7398_v6  ;;  %v8733_v6 = vld [vmem:[#allocation15_spill] sm:$0xff] }
 0x70e   :  { %3241 = vmatprep.subr.mxu1 %v2713_v23  ;;  %3405 = vmatmul.mubr.f32.vlgmr.msra.gmra.mxu0 %v7400_v27 }
 0x70f   :  { %3242 = vmatpush2.msra.mxu1 %v2712_v54  ;;  %3409 = vmatprep.mubr.f32.mxu0 %v7420_v60 }
 0x710   :  { %3244 = vmatmul.mubr.f32.vlgmr.msra.gmra.mxu1 %v7400_v27  ;;  %v2832_v27 = vsub.s32 2, %v8733_v6 }
 0x711   :  { %3249 = vmatprep.mubr.f32.mxu1 %v7420_v60  ;;  %v2820_v60 = vld [vmem:[%s8662_s17] sm:$0x7f] }
 0x712   :  { %3410 = vmatmul.mubr.f32.gmra.mxu0 %v7425_v39 }
 0x713   :  { %3414 = vmatprep.mubr.f32.mxu0 %v7444_v61 }
 0x714   :  { %3250 = vmatmul.mubr.f32.gmra.mxu1 %v7425_v39  ;;  %v2836_v39 = vsub.s32 3, %v8733_v6 }
 0x715   :  { %3255 = vmatprep.mubr.f32.mxu1 %v7444_v61  ;;  %v7908_v61 = vrot.slane %v2820_v60, %v8731_v25 }
 0x716   :  { %3415 = vmatmul.mubr.f32.gmra.mxu0 %v7450_v31 }
 0x717   :  { %3419 = vmatprep.mubr.f32.mxu0 %v7468_v62 }
 0x718   :  { %3256 = vmatmul.mubr.f32.gmra.mxu1 %v7450_v31  ;;  %v7910_v31 = vrot.slane %v2820_v60, %v2832_v27 }
 0x719   :  { %3261 = vmatprep.mubr.f32.mxu1 %v7468_v62  ;;  %v7913_v62 = vrot.slane %v2820_v60, %v8732_v49 }
 0x71a   :  { %3420 = vmatmul.mubr.f32.gmra.mxu0 %v7479_v48 }
 0x71b   :  { %3424 = vmatprep.mubr.f32.mxu0 %v7489_v13 }
 0x71c   :  { %3262 = vmatmul.mubr.f32.gmra.mxu1 %v7479_v48  ;;  %v7915_v48 = vrot.slane %v2820_v60, %v2836_v39 }
 0x71d   :  { %3267 = vmatprep.mubr.f32.mxu1 %v7489_v13 }
 0x71e   :  { %3425 = vmatmul.mubr.f32.gmra.mxu0 %v7507_v4 }
 0x71f   :  { %3429 = vmatprep.mubr.f32.mxu0 %v7517_v2 }
 0x720   :  { %3268 = vmatmul.mubr.f32.gmra.mxu1 %v7507_v4 }
 0x721   :  { %3273 = vmatprep.mubr.f32.mxu1 %v7517_v2 }
 0x722   :  { %3430 = vmatmul.mubr.f32.gmra.mxu0 %v7535_v56 }
 0x723   :  { %3434 = vmatprep.mubr.f32.mxu0 %v7545_v15 }
 0x724   :  { %3274 = vmatmul.mubr.f32.gmra.mxu1 %v7535_v56 }
 0x725   :  { %3279 = vmatprep.mubr.f32.mxu1 %v7545_v15 }
 0x726   :  { %3435 = vmatmul.mubr.f32.gmra.mxu0 %v7563_v44 }
 0x727   :  { %3439 = vmatprep.mubr.f32.mxu0 %v7573_v21 }
 0x728   :  { %3280 = vmatmul.mubr.f32.gmra.mxu1 %v7563_v44 }
 0x729   :  { %3285 = vmatprep.mubr.f32.mxu1 %v7573_v21 }
 0x72a   :  { %3440 = vmatmul.mubr.f32.gmra.mxu0 %v7591_v12 }
 0x72b   :  { %3444 = vmatprep.mubr.f32.mxu0 %v7601_v37 }
 0x72c   :  { %3286 = vmatmul.mubr.f32.gmra.mxu1 %v7591_v12 }
 0x72d   :  { %3291 = vmatprep.mubr.f32.mxu1 %v7601_v37 }
 0x72e   :  { %3445 = vmatmul.mubr.f32.gmra.mxu0 %v7619_v36 }
 0x72f   :  { %3449 = vmatprep.mubr.f32.mxu0 %v7629_v8 }
 0x730   :  { %3292 = vmatmul.mubr.f32.gmra.mxu1 %v7619_v36 }
 0x731   :  { %3297 = vmatprep.mubr.f32.mxu1 %v7629_v8 }
 0x732   :  { %3450 = vmatmul.mubr.f32.gmra.mxu0 %v7647_v26 }
 0x733   :  { %3454 = vmatprep.mubr.f32.mxu0 %v7657_v57 }
 0x734   :  { %3298 = vmatmul.mubr.f32.gmra.mxu1 %v7647_v26 }
 0x735   :  { %3303 = vmatprep.mubr.f32.mxu1 %v7657_v57 }
 0x736   :  { %3455 = vmatmul.mubr.f32.gmra.mxu0 %v7675_v24 }
 0x737   :  { %3459 = vmatprep.mubr.f32.mxu0 %v7685_v20 }
 0x738   :  { %3304 = vmatmul.mubr.f32.gmra.mxu1 %v7675_v24 }
 0x739   :  { %3309 = vmatprep.mubr.f32.mxu1 %v7685_v20 }
 0x73a   :  { %3460 = vmatmul.mubr.f32.gmra.mxu0 %v7703_v7 }
 0x73b   :  { %3464 = vmatprep.mubr.f32.mxu0 %v7713_v18 }
 0x73c   :  { %3310 = vmatmul.mubr.f32.gmra.mxu1 %v7703_v7 }
 0x73d   :  { %3315 = vmatprep.mubr.f32.mxu1 %v7713_v18 }
 0x73e   :  { %3465 = vmatmul.mubr.f32.gmra.mxu0 %v7731_v51 }
 0x73f   :  { %3469 = vmatprep.mubr.f32.mxu0 %v7741_v3 }
 0x740   :  { %3316 = vmatmul.mubr.f32.gmra.mxu1 %v7731_v51 }
 0x741   :  { %3321 = vmatprep.mubr.f32.mxu1 %v7741_v3 }
 0x742   :  { %3470 = vmatmul.mubr.f32.gmra.mxu0 %v7759_v16 }
 0x743   :  { %3474 = vmatprep.mubr.f32.mxu0 %v7769_v42 }
 0x744   :  { %3322 = vmatmul.mubr.f32.gmra.mxu1 %v7759_v16 }
 0x745   :  { %3327 = vmatprep.mubr.f32.mxu1 %v7769_v42 }
 0x746   :  { %3475 = vmatmul.mubr.f32.gmra.mxu0 %v7787_v14 }
 0x747   :  { %3479 = vmatprep.mubr.f32.mxu0 %v7797_v28 }
 0x748   :  { %3328 = vmatmul.mubr.f32.gmra.mxu1 %v7787_v14 }
 0x749   :  { %3333 = vmatprep.mubr.f32.mxu1 %v7797_v28 }
 0x74a   :  { %3480 = vmatmul.mubr.f32.gmra.mxu0 %v7814_v46 }
 0x74c   :  { %3334 = vmatmul.mubr.f32.gmra.mxu1 %v7814_v46 }
 0x780   :  { %v2923_v13 = vpop.f32.mrf.mxu1  ;;  %v3084_v4 = vpop.f32.mrf.mxu0 }
 0x781   :  { %v2924_v2 = vadd.f32 %v2923_v13, %v7908_v61  ;;  %v3085_v56 = vadd.f32 %v3084_v4, %v7910_v31 }
 0x782   :  { %v2925_v15 = vpop.f32.mrf.mxu1  ;;  %v3086_v44 = vpop.f32.mrf.mxu0 }
 0x783   :  { %v3485_v21 = vsub.f32 0.0, %v2924_v2  ;;  %v3487_v12 = vsub.f32 0.0, %v3085_v56  ;;  %v2926_v25 = vadd.f32 %v2925_v15, %v7913_v62  ;;  %v3087_v37 = vadd.f32 %v3086_v44, %v7915_v48 }
 0x784   :  { %v3090_v36 = vpop.f32.mrf.mxu0 }
 0x785   :  { %v3597_v8 = vmul.f32 1.442695, %v3485_v21  ;;  %v3601_v49 = vmul.f32 1.442695, %v3487_v12  ;;  %v3486_v26 = vsub.f32 0.0, %v2926_v25  ;;  %v3488_v57 = vsub.f32 0.0, %v3087_v37  ;;  %v2929_v24 = vpop.f32.mrf.mxu1 }
 0x786   :  { %v2930_v20 = vadd.f32 %v2929_v24, %v7908_v61  ;;  %v3091_v7 = vadd.f32 %v3090_v36, %v7910_v31  ;;  %v3092_v18 = vpop.f32.mrf.mxu0 }
 0x787   :  { %4725 = vpow2.f32 %v3597_v8  ;;  %v3599_v51 = vmul.f32 1.442695, %v3486_v26  ;;  %v3603_v5 = vmul.f32 1.442695, %v3488_v57  ;;  %v2931_v40 = vpop.f32.mrf.mxu1  ;;  %v3093_v53 = vadd.f32 %v3092_v18, %v7915_v48 }
 0x788   :  { %4727 = vpow2.f32 %v3601_v49  ;;  %v3492_v3 = vsub.f32 0.0, %v2930_v20  ;;  %v3494_v30 = vsub.f32 0.0, %v3091_v7  ;;  %v2932_v19 = vadd.f32 %v2931_v40, %v7913_v62 }
 0x789   :  { %4729 = vpow2.f32 %v3599_v51  ;;  %v3495_v22 = vsub.f32 0.0, %v3093_v53  ;;  %v2935_v32 = vpop.f32.mrf.mxu1  ;;  %v3096_v63 = vpop.f32.mrf.mxu0 }
 0x78a   :  { %4731 = vpow2.f32 %v3603_v5  ;;  %v3611_v41 = vmul.f32 1.442695, %v3492_v3  ;;  %v3615_v16 = vmul.f32 1.442695, %v3494_v30  ;;  %v3493_v58 = vsub.f32 0.0, %v2932_v19 }
 0x78b   :  { %v3617_v0 = vmul.f32 1.442695, %v3495_v22  ;;  %v2936_v10 = vadd.f32 %v2935_v32, %v7908_v61  ;;  %v3097_v42 = vadd.f32 %v3096_v63, %v7910_v31  ;;  %v2937_v9 = vpop.f32.mrf.mxu1  ;;  %v3098_v11 = vpop.f32.mrf.mxu0 }
 0x78c   :  { %4733 = vpow2.f32 %v3611_v41  ;;  %v3613_v34 = vmul.f32 1.442695, %v3493_v58  ;;  %v2938_v43 = vadd.f32 %v2937_v9, %v7913_v62  ;;  %v3099_v33 = vadd.f32 %v3098_v11, %v7915_v48 }
 0x78d   :  { %4735 = vpow2.f32 %v3615_v16  ;;  %v3499_v14 = vsub.f32 0.0, %v2936_v10  ;;  %v3501_v52 = vsub.f32 0.0, %v3097_v42 }
 0x78e   :  { %4737 = vpow2.f32 %v3613_v34  ;;  %v3500_v45 = vsub.f32 0.0, %v2938_v43  ;;  %v3502_v38 = vsub.f32 0.0, %v3099_v33  ;;  %v2941_v28 = vpop.f32.mrf.mxu1  ;;  %v3102_v17 = vpop.f32.mrf.mxu0 }
 0x78f   :  { %4739 = vpow2.f32 %v3617_v0  ;;  %v3625_v29 = vmul.f32 1.442695, %v3499_v14  ;;  %v3629_v35 = vmul.f32 1.442695, %v3501_v52  ;;  %v2942_v55 = vadd.f32 %v2941_v28, %v7908_v61 }
 0x790   :  { %v3627_v46 = vmul.f32 1.442695, %v3500_v45  ;;  %v3631_v1 = vmul.f32 1.442695, %v3502_v38  ;;  %v3103_v47 = vadd.f32 %v3102_v17, %v7910_v31  ;;  %v2943_v50 = vpop.f32.mrf.mxu1  ;;  %v3104_v59 = vpop.f32.mrf.mxu0 }
 0x791   :  { %4741 = vpow2.f32 %v3625_v29  ;;  %v3506_v23 = vsub.f32 0.0, %v2942_v55  ;;  %v2944_v54 = vadd.f32 %v2943_v50, %v7913_v62  ;;  %v3105_v15 = vadd.f32 %v3104_v59, %v7915_v48 }
 0x792   :  { %4743 = vpow2.f32 %v3629_v35  ;;  %v3508_v27 = vsub.f32 0.0, %v3103_v47 }
 0x793   :  { %4745 = vpow2.f32 %v3627_v46  ;;  %v3639_v60 = vmul.f32 1.442695, %v3506_v23  ;;  %v3507_v39 = vsub.f32 0.0, %v2944_v54  ;;  %v2947_v13 = vpop.f32.mrf.mxu1  ;;  %v3108_v4 = vpop.f32.mrf.mxu0  ;;  %v3509_v24 = vsub.f32 0.0, %v3105_v15 }
 0x794   :  { %v4726_v2 = vpop.eup %4725  ;;  %4747 = vpow2.f32 %v3631_v1  ;;  %v3643_v56 = vmul.f32 1.442695, %v3508_v27  ;;  %v2948_v51 = vadd.f32 %v2947_v13, %v7908_v61  ;;  %v3109_v22 = vadd.f32 %v3108_v4, %v7910_v31 }
 0x795   :  { %v4728_v44 = vpop.eup %4727  ;;  %v3821_v21 = vadd.f32 1.0, %v4726_v2  ;;  %4749 = vpow2.f32 %v3639_v60  ;;  %v2949_v12 = vpop.f32.mrf.mxu1  ;;  %v3641_v26 = vmul.f32 1.442695, %v3507_v39  ;;  %v3645_v41 = vmul.f32 1.442695, %v3509_v24 }
 0x796   :  { %v3110_v25 = vpop.f32.mrf.mxu0  ;;  %v4730_v37 = vpop.eup %4729  ;;  %v3823_v36 = vadd.f32 1.0, %v4728_v44  ;;  %4751 = vpow2.f32 %v3643_v56  ;;  %v3513_v58 = vsub.f32 0.0, %v2948_v51  ;;  %v2950_v0 = vadd.f32 %v2949_v12, %v7913_v62 }
 0x797   :  { %v4732_v8 = vpop.eup %4731  ;;  %4753 = vrcp.f32 %v3821_v21  ;;  %v3822_v49 = vadd.f32 1.0, %v4730_v37  ;;  %v3111_v11 = vadd.f32 %v3110_v25, %v7915_v48  ;;  %v3515_v33 = vsub.f32 0.0, %v3109_v22 }
 0x798   :  { %4755 = vrcp.f32 %v3823_v36  ;;  %v3824_v57 = vadd.f32 1.0, %v4732_v8  ;;  %v2953_v20 = vpop.f32.mrf.mxu1  ;;  %v3114_v7 = vpop.f32.mrf.mxu0  ;;  %v3653_v55 = vmul.f32 1.442695, %v3513_v58  ;;  %v3514_v46 = vsub.f32 0.0, %v2950_v0 }
 0x799   :  { %v4734_v18 = vpop.eup %4733  ;;  %4757 = vrcp.f32 %v3822_v49  ;;  %v2954_v28 = vadd.f32 %v2953_v20, %v7908_v61  ;;  %v3115_v17 = vadd.f32 %v3114_v7, %v7910_v31  ;;  %v3516_v50 = vsub.f32 0.0, %v3111_v11 }
 0x79a   :  { %v4736_v5 = vpop.eup %4735  ;;  %4759 = vrcp.f32 %v3824_v57  ;;  %v3828_v40 = vadd.f32 1.0, %v4734_v18  ;;  %v2955_v53 = vpop.f32.mrf.mxu1  ;;  %v3657_v39 = vmul.f32 1.442695, %v3515_v33  ;;  %v3655_v25 = vmul.f32 1.442695, %v3514_v46 }
 0x79b   :  { %v3116_v3 = vpop.f32.mrf.mxu0  ;;  %v4738_v30 = vpop.eup %4737  ;;  %v3830_v19 = vadd.f32 1.0, %v4736_v5  ;;  %4761 = vpow2.f32 %v3641_v26  ;;  %v2956_v59 = vadd.f32 %v2955_v53, %v7913_v62  ;;  %v3520_v56 = vsub.f32 0.0, %v2954_v28 }
 0x79c   :  { %v4740_v32 = vpop.eup %4739  ;;  %4763 = vrcp.f32 %v3828_v40  ;;  %v3829_v63 = vadd.f32 1.0, %v4738_v30  ;;  %v3117_v13 = vadd.f32 %v3116_v3, %v7915_v48  ;;  %v3522_v15 = vsub.f32 0.0, %v3115_v17 }
 0x79d   :  { %4765 = vrcp.f32 %v3830_v19  ;;  %v3831_v16 = vadd.f32 1.0, %v4740_v32  ;;  %v2959_v10 = vpop.f32.mrf.mxu1  ;;  %v3120_v42 = vpop.f32.mrf.mxu0  ;;  %v3659_v8 = vmul.f32 1.442695, %v3516_v50  ;;  %v3521_v49 = vsub.f32 0.0, %v2956_v59 }
 0x79e   :  { %v4742_v9 = vpop.eup %4741  ;;  %4767 = vrcp.f32 %v3829_v63  ;;  %v2960_v37 = vadd.f32 %v2959_v10, %v7908_v61  ;;  %v3121_v26 = vadd.f32 %v3120_v42, %v7910_v31  ;;  %v3523_v24 = vsub.f32 0.0, %v3117_v13 }
 0x79f   :  { %v4744_v34 = vpop.eup %4743  ;;  %4769 = vrcp.f32 %v3831_v16  ;;  %v3835_v43 = vadd.f32 1.0, %v4742_v9  ;;  %v2961_v14 = vpop.f32.mrf.mxu1  ;;  %v3667_v5 = vmul.f32 1.442695, %v3520_v56  ;;  %v3671_v40 = vmul.f32 1.442695, %v3522_v15 }
 0x7a0   :  { %v3122_v52 = vpop.f32.mrf.mxu0  ;;  %v4746_v45 = vpop.eup %4745  ;;  %v3837_v38 = vadd.f32 1.0, %v4744_v34  ;;  %4771 = vpow2.f32 %v3645_v41  ;;  %v2962_v20 = vadd.f32 %v2961_v14, %v7913_v62  ;;  %v3527_v19 = vsub.f32 0.0, %v2960_v37 }
 0x7a1   :  { %v4748_v29 = vpop.eup %4747  ;;  %4773 = vrcp.f32 %v3835_v43  ;;  %v3836_v35 = vadd.f32 1.0, %v4746_v45  ;;  %v3123_v53 = vadd.f32 %v3122_v52, %v7915_v48  ;;  %v3669_v16 = vmul.f32 1.442695, %v3521_v49 }
 0x7a2   :  { %v4750_v1 = vpop.eup %4749  ;;  %4775 = vrcp.f32 %v3837_v38  ;;  %v3838_v47 = vadd.f32 1.0, %v4748_v29  ;;  %v2965_v23 = vpop.f32.mrf.mxu1  ;;  %v3529_v58 = vsub.f32 0.0, %v3121_v26  ;;  %v3673_v42 = vmul.f32 1.442695, %v3523_v24 }
 0x7a3   :  { %v3126_v54 = vpop.f32.mrf.mxu0  ;;  %v4752_v27 = vpop.eup %4751  ;;  %4777 = vrcp.f32 %v3836_v35  ;;  %v3842_v60 = vadd.f32 1.0, %v4750_v1  ;;  %v2966_v22 = vadd.f32 %v2965_v23, %v7908_v61  ;;  %v3528_v9 = vsub.f32 0.0, %v2962_v20 }
 0x7a4   :  { %v4754_v4 = vpop.eup %4753  ;;  %4779 = vrcp.f32 %v3838_v47  ;;  %v3844_v2 = vadd.f32 1.0, %v4752_v27  ;;  %v7941_v44 = vpop.f32.mrf.mxu1  ;;  %v3127_v0 = vadd.f32 %v3126_v54, %v7910_v31  ;;  %v3530_v34 = vsub.f32 0.0, %v3123_v53 }
 0x7a5   :  { %v7943_v21 = vpop.f32.mrf.mxu0  ;;  %v4756_v12 = vpop.eup %4755  ;;  %4045 = vst [vmem:[%s8663_s18] sm:$0xff] %v4754_v4  ;;  %4781 = vrcp.f32 %v3842_v60  ;;  %v3681_v52 = vmul.f32 1.442695, %v3527_v19  ;;  %v3534_v45 = vsub.f32 0.0, %v2966_v22  ;;  %v3685_v17 = vmul.f32 1.442695, %v3529_v58 }
 0x7a6   :  { %v4758_v36 = vpop.eup %4757  ;;  %4047 = vst [vmem:[%s8663_s18 + $0x10] sm:$0xff] %v4756_v12  ;;  %4783 = vrcp.f32 %v3844_v2  ;;  %v3536_v29 = vsub.f32 0.0, %v3127_v0  ;;  %v3683_v1 = vmul.f32 1.442695, %v3528_v9  ;;  %v2968_v47 = vadd.f32 %v7941_v44, %v7913_v62 }
 0x7a7   :  { %v4760_v57 = vpop.eup %4759  ;;  %4046 = vst [vmem:[%s8663_s18 + $0x8] sm:$0xff] %v4758_v36  ;;  %4785 = vpow2.f32 %v3653_v55  ;;  %v7957_v7 = vpop.f32.mrf.mxu1  ;;  %v3687_v59 = vmul.f32 1.442695, %v3530_v34  ;;  %v3695_v54 = vmul.f32 1.442695, %v3534_v45  ;;  %v3129_v12 = vadd.f32 %v7943_v21, %v7915_v48 }
 0x7a8   :  { %v7959_v18 = vpop.f32.mrf.mxu0  ;;  %v4762_v51 = vpop.eup %4761  ;;  %4048 = vst [vmem:[%s8663_s18 + $0x18] sm:$0xff] %v4760_v57  ;;  %4787 = vpow2.f32 %v3657_v39  ;;  %v3699_v13 = vmul.f32 1.442695, %v3536_v29  ;;  %v3535_v2 = vsub.f32 0.0, %v2968_v47 }
 0x7a9   :  { %v4764_v3 = vpop.eup %4763  ;;  %v3843_v30 = vadd.f32 1.0, %v4762_v51  ;;  %4789 = vpow2.f32 %v3655_v25  ;;  %v7966_v32 = vpop.f32.mrf.mxu1  ;;  %v3133_v58 = vadd.f32 %v7959_v18, %v7910_v31 }
 0x7aa   :  { %v7968_v63 = vpop.f32.mrf.mxu0  ;;  %v4766_v41 = vpop.eup %4765  ;;  %4052 = vst [vmem:[%s8663_s18 + $0x38] sm:$0xff] %v4764_v3  ;;  %4791 = vpow2.f32 %v3659_v8  ;;  %v3697_v20 = vmul.f32 1.442695, %v3535_v2 }
 0x7ab   :  { %v4768_v10 = vpop.eup %4767  ;;  %4054 = vst [vmem:[%s8663_s18 + $0x48] sm:$0xff] %v4766_v41  ;;  %4793 = vrcp.f32 %v3843_v30  ;;  %v2972_v30 = vadd.f32 %v7957_v7, %v7908_v61 }
 0x7ac   :  { %v4770_v11 = vpop.eup %4769  ;;  %4053 = vst [vmem:[%s8663_s18 + $0x40] sm:$0xff] %v4768_v10  ;;  %4795 = vpow2.f32 %v3667_v5  ;;  %v7980_v43 = vpop.f32.mrf.mxu1 }
 0x7ad   :  { %v7982_v33 = vpop.f32.mrf.mxu0  ;;  %v4772_v14 = vpop.eup %4771  ;;  %4055 = vst [vmem:[%s8663_s18 + $0x50] sm:$0xff] %v4770_v11  ;;  %4797 = vpow2.f32 %v3671_v40  ;;  %v3537_v40 = vsub.f32 0.0, %v3129_v12 }
 0x7ae   :  { %v4774_v38 = vpop.eup %4773  ;;  %v3845_v28 = vadd.f32 1.0, %v4772_v14  ;;  %4799 = vpow2.f32 %v3669_v16  ;;  %v7987_v35 = vpop.f32.mrf.mxu1  ;;  %v3541_v14 = vsub.f32 0.0, %v2972_v30 }
 0x7af   :  { %v7989_v55 = vpop.f32.mrf.mxu0  ;;  %v4776_v46 = vpop.eup %4775  ;;  %4059 = vst [vmem:[%s8663_s18 + $0x70] sm:$0xff] %v4774_v38  ;;  %4801 = vpow2.f32 %v3673_v42  ;;  %v3701_v11 = vmul.f32 1.442695, %v3537_v40  ;;  %v2980_v12 = vadd.f32 %v7987_v35, %v7913_v62 }
 0x7b0   :  { %v4778_v50 = vpop.eup %4777  ;;  %4061 = vst [vmem:[%s8663_s18 + $0x80] sm:$0xff] %v4776_v46  ;;  %4803 = vrcp.f32 %v3845_v28  ;;  %v3135_v28 = vadd.f32 %v7968_v63, %v7915_v48  ;;  %v3543_v46 = vsub.f32 0.0, %v3133_v58 }
 0x7b1   :  { %v4780_v23 = vpop.eup %4779  ;;  %4060 = vst [vmem:[%s8663_s18 + $0x78] sm:$0xff] %v4778_v50  ;;  %4805 = vpow2.f32 %v3681_v52  ;;  %v8002_v27 = vpop.f32.mrf.mxu1  ;;  %v2974_v52 = vadd.f32 %v7966_v32, %v7913_v62  ;;  %v2978_v32 = vadd.f32 %v7980_v43, %v7908_v61  ;;  %v3139_v50 = vadd.f32 %v7982_v33, %v7910_v31 }
 0x7b2   :  { %v8004_v60 = vpop.f32.mrf.mxu0  ;;  %v4782_v39 = vpop.eup %4781  ;;  %4062 = vst [vmem:[%s8663_s18 + $0x88] sm:$0xff] %v4780_v23  ;;  %4807 = vpow2.f32 %v3685_v17  ;;  %v2984_v40 = vadd.f32 %v8002_v27, %v7908_v61 }
 0x7b3   :  { %v4784_v4 = vpop.eup %4783  ;;  %4066 = vst [vmem:[%s8663_s18 + $0xa8] sm:$0xff] %v4782_v39  ;;  %4809 = vpow2.f32 %v3683_v1  ;;  %v8012_v56 = vpop.f32.mrf.mxu1  ;;  %v3709_v39 = vmul.f32 1.442695, %v3541_v14 }
 0x7b4   :  { %v8014_v15 = vpop.f32.mrf.mxu0  ;;  %v4786_v44 = vpop.eup %4785  ;;  %4068 = vst [vmem:[%s8663_s18 + $0xb8] sm:$0xff] %v4784_v4  ;;  %4811 = vpow2.f32 %v3687_v59  ;;  %v2986_v58 = vadd.f32 %v8012_v56, %v7913_v62 }
 0x7b5   :  { %v4788_v25 = vpop.eup %4787  ;;  %v3849_v37 = vadd.f32 1.0, %v4786_v44  ;;  %4813 = vpow2.f32 %v3695_v54  ;;  %v3544_v44 = vsub.f32 0.0, %v3135_v28 }
 0x7b6   :  { %v4790_v36 = vpop.eup %4789  ;;  %v3851_v8 = vadd.f32 1.0, %v4788_v25  ;;  %4815 = vpow2.f32 %v3699_v13  ;;  %v8021_v49 = vpop.f32.mrf.mxu1  ;;  %v3542_v13 = vsub.f32 0.0, %v2974_v52 }
 0x7b7   :  { %v8023_v26 = vpop.f32.mrf.mxu0  ;;  %v4792_v57 = vpop.eup %4791  ;;  %4817 = vrcp.f32 %v3849_v37  ;;  %v3850_v24 = vadd.f32 1.0, %v4790_v36  ;;  %v3713_v36 = vmul.f32 1.442695, %v3543_v46  ;;  %v2990_v56 = vadd.f32 %v8021_v49, %v7908_v61 }
 0x7b8   :  { %v4794_v51 = vpop.eup %4793  ;;  %4819 = vrcp.f32 %v3851_v8  ;;  %v3852_v5 = vadd.f32 1.0, %v4792_v57  ;;  %v8025_v53 = vpop.f32.mrf.mxu1  ;;  %v3141_v8 = vadd.f32 %v7989_v55, %v7915_v48  ;;  %v3711_v35 = vmul.f32 1.442695, %v3542_v13 }
 0x7b9   :  { %v8027_v21 = vpop.f32.mrf.mxu0  ;;  %v4796_v3 = vpop.eup %4795  ;;  %4067 = vst [vmem:[%s8663_s18 + $0xb0] sm:$0xff] %v4794_v51  ;;  %4821 = vrcp.f32 %v3850_v24  ;;  %v3550_v51 = vsub.f32 0.0, %v3139_v50  ;;  %v3151_v46 = vadd.f32 %v8023_v26, %v7910_v31 }
 0x7ba   :  { %v4798_v19 = vpop.eup %4797  ;;  %4823 = vrcp.f32 %v3852_v5  ;;  %v3856_v22 = vadd.f32 1.0, %v4796_v3  ;;  %v3551_v27 = vsub.f32 0.0, %v3141_v8 }
 0x7bb   :  { %v4800_v41 = vpop.eup %4799  ;;  %v3858_v16 = vadd.f32 1.0, %v4798_v19  ;;  %4825 = vpow2.f32 %v3697_v20  ;;  %v8036_v0 = vpop.f32.mrf.mxu1  ;;  %v3548_v20 = vsub.f32 0.0, %v2978_v32  ;;  %v3715_v19 = vmul.f32 1.442695, %v3544_v44 }
 0x7bc   :  { %v8038_v10 = vpop.f32.mrf.mxu0  ;;  %v4802_v42 = vpop.eup %4801  ;;  %4827 = vrcp.f32 %v3856_v22  ;;  %v3857_v9 = vadd.f32 1.0, %v4800_v41  ;;  %v3549_v22 = vsub.f32 0.0, %v2980_v12  ;;  %v3145_v41 = vadd.f32 %v8004_v60, %v7910_v31 }
 0x7bd   :  { %v4804_v34 = vpop.eup %4803  ;;  %4829 = vrcp.f32 %v3858_v16  ;;  %v3859_v7 = vadd.f32 1.0, %v4802_v42  ;;  %v8042_v45 = vpop.f32.mrf.mxu1  ;;  %v3723_v60 = vmul.f32 1.442695, %v3548_v20  ;;  %v3729_v49 = vmul.f32 1.442695, %v3551_v27 }
 0x7be   :  { %v8044_v38 = vpop.f32.mrf.mxu0  ;;  %v4806_v18 = vpop.eup %4805  ;;  %4069 = vst [vmem:[%s8663_s18 + $0xc0] sm:$0xff] %v4804_v34  ;;  %4831 = vrcp.f32 %v3857_v9  ;;  %v3727_v34 = vmul.f32 1.442695, %v3550_v51  ;;  %v3556_v32 = vsub.f32 0.0, %v2986_v58  ;;  %v3153_v27 = vadd.f32 %v8027_v21, %v7915_v48 }
 0x7bf   :  { %v4808_v17 = vpop.eup %4807  ;;  %4833 = vrcp.f32 %v3859_v7  ;;  %v3863_v29 = vadd.f32 1.0, %v4806_v18  ;;  %v3147_v7 = vadd.f32 %v8014_v15, %v7915_v48  ;;  %v3555_v18 = vsub.f32 0.0, %v2984_v40 }
 0x7c0   :  { %v4810_v1 = vpop.eup %4809  ;;  %v3865_v47 = vadd.f32 1.0, %v4808_v17  ;;  %4835 = vpow2.f32 %v3701_v11  ;;  %v8055_v59 = vpop.f32.mrf.mxu1  ;;  %v3725_v17 = vmul.f32 1.442695, %v3549_v22  ;;  %v3739_v8 = vmul.f32 1.442695, %v3556_v32 }
 0x7c1   :  { %v8057_v23 = vpop.f32.mrf.mxu0  ;;  %v4812_v54 = vpop.eup %4811  ;;  %4837 = vrcp.f32 %v3863_v29  ;;  %v3864_v63 = vadd.f32 1.0, %v4810_v1  ;;  %v3557_v29 = vsub.f32 0.0, %v3145_v41  ;;  %v3737_v13 = vmul.f32 1.442695, %v3555_v18 }
 0x7c2   :  { %v4814_v4 = vpop.eup %4813  ;;  %4839 = vrcp.f32 %v3865_v47  ;;  %v3866_v2 = vadd.f32 1.0, %v4812_v54  ;;  %v8061_v43 = vpop.f32.mrf.mxu1  ;;  %v3558_v54 = vsub.f32 0.0, %v3147_v7  ;;  %v2996_v21 = vadd.f32 %v8036_v0, %v7908_v61 }
 0x7c3   :  { %v8063_v25 = vpop.f32.mrf.mxu0  ;;  %v4816_v33 = vpop.eup %4815  ;;  %4841 = vrcp.f32 %v3864_v63  ;;  %v3870_v37 = vadd.f32 1.0, %v4814_v4  ;;  %v3562_v4 = vsub.f32 0.0, %v2990_v56  ;;  %v3741_v12 = vmul.f32 1.442695, %v3557_v29 }
 0x7c4   :  { %v4818_v57 = vpop.eup %4817  ;;  %4843 = vrcp.f32 %v3866_v2  ;;  %v3872_v24 = vadd.f32 1.0, %v4816_v33  ;;  %v3564_v33 = vsub.f32 0.0, %v3151_v46  ;;  %v3743_v20 = vmul.f32 1.442695, %v3558_v54 }
 0x7c5   :  { %v4820_v5 = vpop.eup %4819  ;;  %4073 = vst [vmem:[%s8663_s18 + $0xe0] sm:$0xff] %v4818_v57  ;;  %4845 = vrcp.f32 %v3870_v37  ;;  %v8072_v3 = vpop.f32.mrf.mxu1  ;;  %v2992_v57 = vadd.f32 %v8025_v53, %v7913_v62  ;;  %v3565_v29 = vsub.f32 0.0, %v3153_v27  ;;  %v2998_v0 = vadd.f32 %v8042_v45, %v7913_v62 }
 0x7c6   :  { %v8074_v30 = vpop.f32.mrf.mxu0  ;;  %v4822_v55 = vpop.eup %4821  ;;  %4075 = vst [vmem:[%s8663_s18 + $0xf0] sm:$0xff] %v4820_v5  ;;  %4847 = vrcp.f32 %v3872_v24  ;;  %v3755_v53 = vmul.f32 1.442695, %v3564_v33 }
 0x7c7   :  { %v4824_v16 = vpop.eup %4823  ;;  %4074 = vst [vmem:[%s8663_s18 + $0xe8] sm:$0xff] %v4822_v55  ;;  %4849 = vpow2.f32 %v3709_v39  ;;  %v8086_v42 = vpop.f32.mrf.mxu1  ;;  %v3563_v22 = vsub.f32 0.0, %v2992_v57 }
 0x7c8   :  { %v8088_v9 = vpop.f32.mrf.mxu0  ;;  %v4826_v11 = vpop.eup %4825  ;;  %4076 = vst [vmem:[%s8663_s18 + $0xf8] sm:$0xff] %v4824_v16  ;;  %4851 = vpow2.f32 %v3713_v36 }
 0x7c9   :  { %v4828_v14 = vpop.eup %4827  ;;  %v3871_v52 = vadd.f32 1.0, %v4826_v11  ;;  %4853 = vpow2.f32 %v3711_v35  ;;  %v3751_v35 = vmul.f32 1.442695, %v3562_v4  ;;  %v3753_v18 = vmul.f32 1.442695, %v3563_v22 }
 0x7ca   :  { %v4830_v28 = vpop.eup %4829  ;;  %4080 = vst [vmem:[%s8663_s18 + $0x118] sm:$0xff] %v4828_v14  ;;  %4855 = vpow2.f32 %v3715_v19  ;;  %v8102_v1 = vpop.f32.mrf.mxu1 }
 0x7cb   :  { %v8104_v15 = vpop.f32.mrf.mxu0  ;;  %v4832_v47 = vpop.eup %4831  ;;  %4082 = vst [vmem:[%s8663_s18 + $0x128] sm:$0xff] %v4830_v28  ;;  %4857 = vrcp.f32 %v3871_v52 }
 0x7cc   :  { %v4834_v50 = vpop.eup %4833  ;;  %4081 = vst [vmem:[%s8663_s18 + $0x120] sm:$0xff] %v4832_v47  ;;  %4859 = vpow2.f32 %v3723_v60  ;;  %v8112_v26 = vpop.f32.mrf.mxu1 }
 0x7cd   :  { %v8114_v63 = vpop.f32.mrf.mxu0  ;;  %v4836_v39 = vpop.eup %4835  ;;  %4083 = vst [vmem:[%s8663_s18 + $0x130] sm:$0xff] %v4834_v50  ;;  %4861 = vpow2.f32 %v3727_v34 }
 0x7ce   :  { %v4838_v2 = vpop.eup %4837  ;;  %v3873_v44 = vadd.f32 1.0, %v4836_v39  ;;  %4863 = vpow2.f32 %v3725_v17  ;;  %v3157_v39 = vadd.f32 %v8038_v10, %v7910_v31  ;;  %v3159_v10 = vadd.f32 %v8044_v38, %v7915_v48 }
 0x7cf   :  { %v8119_v37 = vpop.f32.mrf.mxu0  ;;  %v4840_v36 = vpop.eup %4839  ;;  %4087 = vst [vmem:[%s8663_s18 + $0x150] sm:$0xff] %v4838_v2  ;;  %4865 = vpow2.f32 %v3729_v49  ;;  %v3163_v38 = vadd.f32 %v8057_v23, %v7910_v31 }
 0x7d0   :  { %v4842_v24 = vpop.eup %4841  ;;  %4089 = vst [vmem:[%s8663_s18 + $0x160] sm:$0xff] %v4840_v36  ;;  %4867 = vrcp.f32 %v3873_v44  ;;  %v8129_v51 = vpop.f32.mrf.mxu1  ;;  %v3757_v44 = vmul.f32 1.442695, %v3565_v29  ;;  %v3569_v36 = vsub.f32 0.0, %v2996_v21  ;;  %v3008_v21 = vadd.f32 %v8072_v3, %v7908_v61 }
 0x7d1   :  { %v4844_v5 = vpop.eup %4843  ;;  %4088 = vst [vmem:[%s8663_s18 + $0x158] sm:$0xff] %v4842_v24  ;;  %4869 = vpow2.f32 %v3737_v13  ;;  %v8137_v55 = vpop.f32.mrf.mxu0 }
 0x7d2   :  { %v4846_v40 = vpop.eup %4845  ;;  %4090 = vst [vmem:[%s8663_s18 + $0x168] sm:$0xff] %v4844_v5  ;;  %4871 = vpow2.f32 %v3741_v12  ;;  %v8142_v41 = vpop.f32.mrf.mxu1  ;;  %v3571_v5 = vsub.f32 0.0, %v3157_v39  ;;  %v3765_v27 = vmul.f32 1.442695, %v3569_v36  ;;  %v3169_v39 = vadd.f32 %v8074_v30, %v7910_v31 }
 0x7d3   :  { %v4848_v19 = vpop.eup %4847  ;;  %4094 = vst [vmem:[%s8663_s18 + $0x188] sm:$0xff] %v4846_v40  ;;  %4873 = vpow2.f32 %v3739_v8  ;;  %v8149_v7 = vpop.f32.mrf.mxu0  ;;  %v3171_v36 = vadd.f32 %v8088_v9, %v7915_v48 }
 0x7d4   :  { %v4850_v16 = vpop.eup %4849  ;;  %4096 = vst [vmem:[%s8663_s18 + $0x198] sm:$0xff] %v4848_v19  ;;  %4875 = vpow2.f32 %v3743_v20  ;;  %v8151_v56 = vpop.f32.mrf.mxu1  ;;  %v3002_v19 = vadd.f32 %v8055_v59, %v7908_v61  ;;  %v3769_v59 = vmul.f32 1.442695, %v3571_v5 }
 0x7d5   :  { %v4852_v58 = vpop.eup %4851  ;;  %v3877_v11 = vadd.f32 1.0, %v4850_v16  ;;  %4877 = vpow2.f32 %v3751_v35  ;;  %v8158_v32 = vpop.f32.mrf.mxu0 }
 0x7d6   :  { %v4854_v60 = vpop.eup %4853  ;;  %v3879_v34 = vadd.f32 1.0, %v4852_v58  ;;  %4879 = vpow2.f32 %v3755_v53  ;;  %v8162_v13 = vpop.f32.mrf.mxu1  ;;  %v3570_v53 = vsub.f32 0.0, %v2998_v0 }
 0x7d7   :  { %v4856_v14 = vpop.eup %4855  ;;  %4881 = vrcp.f32 %v3877_v11  ;;  %v3878_v52 = vadd.f32 1.0, %v4854_v60  ;;  %v8171_v57 = vpop.f32.mrf.mxu0  ;;  %v3572_v60 = vsub.f32 0.0, %v3159_v10 }
 0x7d8   :  { %v4858_v28 = vpop.eup %4857  ;;  %4883 = vrcp.f32 %v3879_v34  ;;  %v3880_v17 = vadd.f32 1.0, %v4856_v14  ;;  %v8173_v45 = vpop.f32.mrf.mxu1  ;;  %v3004_v34 = vadd.f32 %v8061_v43, %v7913_v62  ;;  %v3767_v43 = vmul.f32 1.442695, %v3570_v53 }
 0x7d9   :  { %v4860_v46 = vpop.eup %4859  ;;  %4095 = vst [vmem:[%s8663_s18 + $0x190] sm:$0xff] %v4858_v28  ;;  %4885 = vrcp.f32 %v3878_v52  ;;  %v8181_v14 = vpop.f32.mrf.mxu0  ;;  %v3165_v28 = vadd.f32 %v8063_v25, %v7915_v48  ;;  %v3771_v25 = vmul.f32 1.442695, %v3572_v60 }
 0x7da   :  { %v4862_v47 = vpop.eup %4861  ;;  %4887 = vrcp.f32 %v3880_v17  ;;  %v3884_v49 = vadd.f32 1.0, %v4860_v46  ;;  %v8185_v17 = vpop.f32.mrf.mxu1  ;;  %v3576_v46 = vsub.f32 0.0, %v3002_v19 }
 0x7db   :  { %v4864_v50 = vpop.eup %4863  ;;  %v3886_v54 = vadd.f32 1.0, %v4862_v47  ;;  %4889 = vpow2.f32 %v3753_v18  ;;  %v8197_v3 = vpop.f32.mrf.mxu0 }
 0x7dc   :  { %v4866_v4 = vpop.eup %4865  ;;  %4891 = vrcp.f32 %v3884_v49  ;;  %v3885_v2 = vadd.f32 1.0, %v4864_v50  ;;  %v3578_v49 = vsub.f32 0.0, %v3163_v38  ;;  %v8204_v0 = vpop.f32.mrf.mxu1  ;;  %v3779_v30 = vmul.f32 1.442695, %v3576_v46 }
 0x7dd   :  { %v4868_v12 = vpop.eup %4867  ;;  %4893 = vrcp.f32 %v3886_v54  ;;  %v3887_v33 = vadd.f32 1.0, %v4866_v4  ;;  %v3577_v54 = vsub.f32 0.0, %v3004_v34  ;;  %v8218_v53 = vpop.f32.mrf.mxu0  ;;  %v2840_v38 = vsub.s32 4, %v8733_v6 }
 0x7de   :  { %v4870_v8 = vpop.eup %4869  ;;  %4097 = vst [vmem:[%s8663_s18 + $0x1a0] sm:$0xff] %v4868_v12  ;;  %4895 = vrcp.f32 %v3885_v2  ;;  %v3579_v2 = vsub.f32 0.0, %v3165_v28  ;;  %v8223_v19 = vpop.f32.mrf.mxu1  ;;  %v3016_v28 = vadd.f32 %v8112_v26, %v7913_v62  ;;  %v5173_v26 = vld [vmem:[%s8662_s17] sm:$0x7f] }
 0x7df   :  { %v4872_v24 = vpop.eup %4871  ;;  %4897 = vrcp.f32 %v3887_v33  ;;  %v3891_v20 = vadd.f32 1.0, %v4870_v8  ;;  %v3583_v33 = vsub.f32 0.0, %v3008_v21  ;;  %v3781_v5 = vmul.f32 1.442695, %v3577_v54 }
 0x7e0   :  { %v4874_v35 = vpop.eup %4873  ;;  %v3893_v40 = vadd.f32 1.0, %v4872_v24  ;;  %4899 = vpow2.f32 %v3757_v44  ;;  %v3010_v44 = vadd.f32 %v8086_v42, %v7913_v62  ;;  %v3783_v24 = vmul.f32 1.442695, %v3578_v49 }
 0x7e1   :  { %v4876_v22 = vpop.eup %4875  ;;  %4901 = vrcp.f32 %v3891_v20  ;;  %v3892_v16 = vadd.f32 1.0, %v4874_v35  ;;  %v3014_v42 = vadd.f32 %v8102_v1, %v7908_v61  ;;  %v3585_v35 = vsub.f32 0.0, %v3169_v39 }
 0x7e2   :  { %v4878_v58 = vpop.eup %4877  ;;  %4903 = vrcp.f32 %v3893_v40  ;;  %v3894_v11 = vadd.f32 1.0, %v4876_v22  ;;  %v3175_v40 = vadd.f32 %v8104_v15, %v7910_v31  ;;  %v3785_v61 = vmul.f32 1.442695, %v3579_v2 }
 0x7e3   :  { %v4880_v52 = vpop.eup %4879  ;;  %4905 = vrcp.f32 %v3892_v16  ;;  %v3898_v18 = vadd.f32 1.0, %v4878_v58  ;;  %v3584_v1 = vsub.f32 0.0, %v3010_v44  ;;  %v3586_v16 = vsub.f32 0.0, %v3171_v36 }
 0x7e4   :  { %v4882_v29 = vpop.eup %4881  ;;  %4907 = vrcp.f32 %v3894_v11  ;;  %v3900_v23 = vadd.f32 1.0, %v4880_v52  ;;  %v3793_v15 = vmul.f32 1.442695, %v3583_v33  ;;  %v3797_v60 = vmul.f32 1.442695, %v3585_v35  ;;  %v8232_v52 = vpop.f32.mrf.mxu0 }
 0x7e5   :  { %v4884_v47 = vpop.eup %4883  ;;  %4101 = vst [vmem:[%s8663_s18 + $0x1c0] sm:$0xff] %v4882_v29  ;;  %4909 = vrcp.f32 %v3898_v18  ;;  %v3592_v34 = vsub.f32 0.0, %v3175_v40  ;;  %v8239_v29 = vpop.f32.mrf.mxu1  ;;  %v3799_v46 = vmul.f32 1.442695, %v3586_v16 }
 0x7e6   :  { %v4886_v50 = vpop.eup %4885  ;;  %4103 = vst [vmem:[%s8663_s18 + $0x1d0] sm:$0xff] %v4884_v47  ;;  %4911 = vrcp.f32 %v3900_v23  ;;  %v8257_v54 = vpop.f32.mrf.mxu0 }
 0x7e7   :  { %v4888_v4 = vpop.eup %4887  ;;  %4102 = vst [vmem:[%s8663_s18 + $0x1c8] sm:$0xff] %v4886_v50  ;;  %4913 = vpow2.f32 %v3765_v27  ;;  %v3590_v27 = vsub.f32 0.0, %v3014_v42  ;;  %v3811_v62 = vmul.f32 1.442695, %v3592_v34  ;;  %v8254_v50 = vrot.slane %v5173_v26, %v2840_v38  ;;  %v8262_v2 = vpop.f32.mrf.mxu1 }
 0x7e8   :  { %v4890_v12 = vpop.eup %4889  ;;  %4104 = vst [vmem:[%s8663_s18 + $0x1d8] sm:$0xff] %v4888_v4  ;;  %4915 = vpow2.f32 %v3769_v59  ;;  %v3795_v59 = vmul.f32 1.442695, %v3584_v1  ;;  %v3591_v4 = vsub.f32 0.0, %v3016_v28  ;;  %v8275_v42 = vpop.f32.mrf.mxu0 }
 0x7e9   :  { %v4892_v8 = vpop.eup %4891  ;;  %v3899_v10 = vadd.f32 1.0, %v4890_v12  ;;  %4917 = vpow2.f32 %v3767_v43  ;;  %v3807_v47 = vmul.f32 1.442695, %v3590_v27  ;;  %v2844_v43 = vsub.s32 5, %v8733_v6 }
 0x7ea   :  { %v4894_v20 = vpop.eup %4893  ;;  %4108 = vst [vmem:[%s8663_s18 + $0x1f8] sm:$0xff] %v4892_v8  ;;  %4919 = vpow2.f32 %v3771_v25  ;;  %v2848_v25 = vsub.s32 6, %v8733_v6  ;;  %v3177_v6 = vadd.f32 %v8114_v63, %v7915_v48  ;;  %v3809_v35 = vmul.f32 1.442695, %v3591_v4  ;;  %v8279_v63 = vpop.f32.mrf.mxu1 }
 0x7eb   :  { %v4896_v9 = vpop.eup %4895  ;;  %4110 = vst [vmem:[%s8663_s18 + $0x208] sm:$0xff] %v4894_v20  ;;  %4921 = vrcp.f32 %v3899_v10  ;;  %v8269_v33 = vrot.slane %v5173_v26, %v2844_v43  ;;  %v3246_v10 = vadd.f32 %v8129_v51, %v8254_v50  ;;  %v4434_v48 = vadd.f32 %v8137_v55, %v8119_v37 }
 0x7ec   :  { %v4898_v22 = vpop.eup %4897  ;;  %4109 = vst [vmem:[%s8663_s18 + $0x200] sm:$0xff] %v4896_v9  ;;  %4923 = vpow2.f32 %v3779_v30  ;;  %v8289_v38 = vpop.f32.mrf.mxu1 }
 0x7ed   :  { %v4900_v31 = vpop.eup %4899  ;;  %4111 = vst [vmem:[%s8663_s18 + $0x210] sm:$0xff] %v4898_v22  ;;  %4925 = vpow2.f32 %v3783_v24  ;;  %v8273_v24 = vrot.slane %v5173_v26, %v2848_v25  ;;  %v3248_v51 = vadd.f32 %v8142_v41, %v8269_v33  ;;  %v4437_v41 = vadd.f32 %v8158_v32, %v8149_v7 }
 0x7ee   :  { %v4902_v58 = vpop.eup %4901  ;;  %v3901_v11 = vadd.f32 1.0, %v4900_v31  ;;  %4927 = vpow2.f32 %v3781_v5  ;;  %v8286_v31 = vpop.f32.mrf.mxu0  ;;  %v3254_v7 = vadd.f32 %v8162_v13, %v8269_v33  ;;  %v3258_v13 = vadd.f32 %v8173_v45, %v8254_v50 }
 0x7ef   :  { %v4904_v18 = vpop.eup %4903  ;;  %4115 = vst [vmem:[%s8663_s18 + $0x230] sm:$0xff] %v4902_v58  ;;  %4929 = vpow2.f32 %v3785_v61  ;;  %v3593_v61 = vsub.f32 0.0, %v3177_v6  ;;  %v3407_v27 = vadd.f32 %v4434_v48, %v8273_v24  ;;  %v8302_v32 = vpop.f32.mrf.mxu1  ;;  %v3412_v25 = vadd.f32 %v4437_v41, %v8273_v24 }
 0x7f0   :  { %v4906_v23 = vpop.eup %4905  ;;  %4117 = vst [vmem:[%s8663_s18 + $0x240] sm:$0xff] %v4904_v18  ;;  %4931 = vrcp.f32 %v3901_v11 }
 0x7f1   :  { %v4908_v21 = vpop.eup %4907  ;;  %4116 = vst [vmem:[%s8663_s18 + $0x238] sm:$0xff] %v4906_v23  ;;  %4933 = vpow2.f32 %v3793_v15  ;;  %v3489_v15 = vsub.f32 0.0, %v3246_v10  ;;  %v3252_v23 = vadd.f32 %v8151_v56, %v8254_v50  ;;  %v3491_v26 = vsub.f32 0.0, %v3407_v27 }
 0x7f2   :  { %v4910_v49 = vpop.eup %4909  ;;  %4118 = vst [vmem:[%s8663_s18 + $0x248] sm:$0xff] %v4908_v21  ;;  %4935 = vpow2.f32 %v3797_v60  ;;  %v3813_v60 = vmul.f32 1.442695, %v3593_v61 }
 0x7f3   :  { %v4912_v39 = vpop.eup %4911  ;;  %4122 = vst [vmem:[%s8663_s18 + $0x268] sm:$0xff] %v4910_v49  ;;  %4937 = vpow2.f32 %v3795_v59  ;;  %v3490_v59 = vsub.f32 0.0, %v3248_v51  ;;  %v3605_v43 = vmul.f32 1.442695, %v3489_v15  ;;  %v3609_v45 = vmul.f32 1.442695, %v3491_v26 }
 0x7f4   :  { %v4914_v44 = vpop.eup %4913  ;;  %4124 = vst [vmem:[%s8663_s18 + $0x278] sm:$0xff] %v4912_v39  ;;  %4939 = vpow2.f32 %v3799_v46  ;;  %v8298_v46 = vpop.f32.mrf.mxu0  ;;  %v3503_v51 = vsub.f32 0.0, %v3258_v13 }
 0x7f5   :  { %v4916_v12 = vpop.eup %4915  ;;  %v3905_v30 = vadd.f32 1.0, %v4914_v44  ;;  %4941 = vpow2.f32 %v3807_v47  ;;  %v3607_v4 = vmul.f32 1.442695, %v3490_v59  ;;  %v4440_v44 = vadd.f32 %v8181_v14, %v8171_v57 }
 0x7f6   :  { %v4918_v36 = vpop.eup %4917  ;;  %v3907_v8 = vadd.f32 1.0, %v4916_v12  ;;  %4943 = vpow2.f32 %v3811_v62  ;;  %v3498_v14 = vsub.f32 0.0, %v3412_v25 }
 0x7f7   :  { %v4920_v20 = vpop.eup %4919  ;;  %4945 = vrcp.f32 %v3905_v30  ;;  %v3906_v5 = vadd.f32 1.0, %v4918_v36  ;;  %v3496_v30 = vsub.f32 0.0, %v3252_v23  ;;  %v8309_v36 = vpop.f32.mrf.mxu0  ;;  %v3417_v61 = vadd.f32 %v4440_v44, %v8273_v24 }
 0x7f8   :  { %v4922_v40 = vpop.eup %4921  ;;  %4947 = vrcp.f32 %v3907_v8  ;;  %v3908_v9 = vadd.f32 1.0, %v4920_v20  ;;  %v3497_v20 = vsub.f32 0.0, %v3254_v7  ;;  %v3623_v27 = vmul.f32 1.442695, %v3498_v14 }
 0x7f9   :  { %v4924_v1 = vpop.eup %4923  ;;  %4123 = vst [vmem:[%s8663_s18 + $0x270] sm:$0xff] %v4922_v40  ;;  %4949 = vrcp.f32 %v3906_v5  ;;  %v3260_v5 = vadd.f32 %v8185_v17, %v8269_v33  ;;  %v4443_v40 = vadd.f32 %v8218_v53, %v8197_v3  ;;  %v3619_v17 = vmul.f32 1.442695, %v3496_v30  ;;  %v8326_v53 = vpop.f32.mrf.mxu0 }
 0x7fa   :  { %v4926_v22 = vpop.eup %4925  ;;  %4951 = vrcp.f32 %v3908_v9  ;;  %v3912_v16 = vadd.f32 1.0, %v4924_v1  ;;  %v3264_v3 = vadd.f32 %v8204_v0, %v8254_v50  ;;  %v3621_v0 = vmul.f32 1.442695, %v3497_v20 }
 0x7fb   :  { %v4928_v37 = vpop.eup %4927  ;;  %v3914_v55 = vadd.f32 1.0, %v4926_v22  ;;  %4953 = vpow2.f32 %v3809_v35  ;;  %v8313_v35 = vpop.f32.mrf.mxu1  ;;  %v3505_v41 = vsub.f32 0.0, %v3417_v61 }
 0x7fc   :  { %v4930_v58 = vpop.eup %4929  ;;  %4955 = vrcp.f32 %v3912_v16  ;;  %v3913_v11 = vadd.f32 1.0, %v4928_v37  ;;  %v3504_v16 = vsub.f32 0.0, %v3260_v5  ;;  %v3266_v37 = vadd.f32 %v8223_v19, %v8269_v33  ;;  %v8346_v23 = vpop.f32.mrf.mxu0 }
 0x7fd   :  { %v4932_v34 = vpop.eup %4931  ;;  %4957 = vrcp.f32 %v3914_v55  ;;  %v3915_v18 = vadd.f32 1.0, %v4930_v58  ;;  %v8333_v55 = vpop.f32.mrf.mxu1  ;;  %v3422_v58 = vadd.f32 %v4443_v40, %v8273_v24  ;;  %v3510_v59 = vsub.f32 0.0, %v3264_v3 }
 0x7fe   :  { %v4934_v28 = vpop.eup %4933  ;;  %4125 = vst [vmem:[%s8663_s18 + $0x280] sm:$0xff] %v4932_v34  ;;  %4959 = vrcp.f32 %v3913_v11  ;;  %v3270_v34 = vadd.f32 %v8239_v29, %v8254_v50  ;;  %v3635_v29 = vmul.f32 1.442695, %v3504_v16  ;;  %v3637_v26 = vmul.f32 1.442695, %v3505_v41 }
 0x7ff   :  { %v4936_v21 = vpop.eup %4935  ;;  %4961 = vrcp.f32 %v3915_v18  ;;  %v3919_v47 = vadd.f32 1.0, %v4934_v28  ;;  %v3633_v18 = vmul.f32 1.442695, %v3503_v51  ;;  %v3272_v28 = vadd.f32 %v8262_v2, %v8269_v33  ;;  %v8353_v7 = vpop.f32.mrf.mxu1 }
 0x800   :  { %v4938_v49 = vpop.eup %4937  ;;  %v3921_v62 = vadd.f32 1.0, %v4936_v21  ;;  %4963 = vpow2.f32 %v3813_v60  ;;  %v3512_v2 = vsub.f32 0.0, %v3422_v58  ;;  %v3517_v25 = vsub.f32 0.0, %v3270_v34 }
 0x801   :  { %v4940_v39 = vpop.eup %4939  ;;  %4965 = vrcp.f32 %v3919_v47  ;;  %v3920_v56 = vadd.f32 1.0, %v4938_v49  ;;  %v3511_v47 = vsub.f32 0.0, %v3266_v37  ;;  %v8367_v30 = vpop.f32.mrf.mxu1 }
 0x802   :  { %v4942_v6 = vpop.eup %4941  ;;  %4967 = vrcp.f32 %v3921_v62  ;;  %v3922_v12 = vadd.f32 1.0, %v4940_v39  ;;  %v3661_v20 = vmul.f32 1.442695, %v3517_v25 }
 0x803   :  { %v4944_v8 = vpop.eup %4943  ;;  %4969 = vrcp.f32 %v3920_v56  ;;  %v3926_v10 = vadd.f32 1.0, %v4942_v6  ;;  %v3649_v6 = vmul.f32 1.442695, %v3511_v47 }
 0x804   :  { %v4946_v48 = vpop.eup %4945  ;;  %4971 = vrcp.f32 %v3922_v12  ;;  %v3928_v57 = vadd.f32 1.0, %v4944_v8  ;;  %v3651_v8 = vmul.f32 1.442695, %v3512_v2 }
 0x805   :  { %v4948_v9 = vpop.eup %4947  ;;  %4129 = vst [vmem:[%s8663_s18 + $0x2a0] sm:$0xff] %v4946_v48  ;;  %4973 = vrcp.f32 %v3926_v10 }
 0x806   :  { %v4950_v1 = vpop.eup %4949  ;;  %4131 = vst [vmem:[%s8663_s18 + $0x2b0] sm:$0xff] %v4948_v9  ;;  %4975 = vrcp.f32 %v3928_v57  ;;  %v3276_v9 = vadd.f32 %v8279_v63, %v8254_v50 }
 0x807   :  { %v4952_v22 = vpop.eup %4951  ;;  %4130 = vst [vmem:[%s8663_s18 + $0x2a8] sm:$0xff] %v4950_v1  ;;  %4977 = vpow2.f32 %v3605_v43  ;;  %v4446_v43 = vadd.f32 %v8257_v54, %v8232_v52  ;;  %v3647_v52 = vmul.f32 1.442695, %v3510_v59  ;;  %v3518_v54 = vsub.f32 0.0, %v3272_v28 }
 0x808   :  { %v4954_v15 = vpop.eup %4953  ;;  %4132 = vst [vmem:[%s8663_s18 + $0x2b8] sm:$0xff] %v4952_v22  ;;  %4979 = vpow2.f32 %v3607_v4  ;;  %v8361_v4 = vpop.f32.mrf.mxu0  ;;  %v3278_v22 = vadd.f32 %v8289_v38, %v8269_v33 }
 0x809   :  { %v4956_v11 = vpop.eup %4955  ;;  %v3927_v60 = vadd.f32 1.0, %v4954_v15  ;;  %4981 = vpow2.f32 %v3609_v45  ;;  %v3427_v12 = vadd.f32 %v4446_v43, %v8273_v24  ;;  %v3663_v48 = vmul.f32 1.442695, %v3518_v54  ;;  %v8385_v45 = vpop.f32.mrf.mxu1 }
 0x80a   :  { %v4958_v19 = vpop.eup %4957  ;;  %4136 = vst [vmem:[%s8663_s18 + $0x2d8] sm:$0xff] %v4956_v11  ;;  %4983 = vpow2.f32 %v3619_v17  ;;  %v8378_v57 = vpop.f32.mrf.mxu0  ;;  %v4452_v43 = vadd.f32 %v8309_v36, %v8298_v46 }
 0x80b   :  { %v4960_v21 = vpop.eup %4959  ;;  %4138 = vst [vmem:[%s8663_s18 + $0x2e8] sm:$0xff] %v4958_v19  ;;  %4985 = vrcp.f32 %v3927_v60  ;;  %v3519_v40 = vsub.f32 0.0, %v3427_v12  ;;  %v4449_v60 = vadd.f32 %v8286_v31, %v8275_v42 }
 0x80c   :  { %v4962_v49 = vpop.eup %4961  ;;  %4137 = vst [vmem:[%s8663_s18 + $0x2e0] sm:$0xff] %v4960_v21  ;;  %4987 = vpow2.f32 %v3621_v0  ;;  %v8392_v16 = vpop.f32.mrf.mxu0  ;;  %v3524_v0 = vsub.f32 0.0, %v3276_v9  ;;  %v3525_v21 = vsub.f32 0.0, %v3278_v22  ;;  %v3437_v12 = vadd.f32 %v4452_v43, %v8273_v24 }
 0x80d   :  { %v4964_v62 = vpop.eup %4963  ;;  %4139 = vst [vmem:[%s8663_s18 + $0x2f0] sm:$0xff] %v4962_v49  ;;  %4989 = vpow2.f32 %v3623_v27  ;;  %v3665_v15 = vmul.f32 1.442695, %v3519_v40  ;;  %v8394_v27 = vpop.f32.mrf.mxu1  ;;  %v3432_v31 = vadd.f32 %v4449_v60, %v8273_v24 }
 0x80e   :  { %v4966_v39 = vpop.eup %4965  ;;  %v3929_v56 = vadd.f32 1.0, %v4964_v62  ;;  %4991 = vpow2.f32 %v3633_v18  ;;  %v8401_v19 = vpop.f32.mrf.mxu0  ;;  %v3675_v28 = vmul.f32 1.442695, %v3524_v0  ;;  %v3282_v62 = vadd.f32 %v8302_v32, %v8254_v50 }
 0x80f   :  { %v4968_v44 = vpop.eup %4967  ;;  %4143 = vst [vmem:[%s8663_s18 + $0x310] sm:$0xff] %v4966_v39  ;;  %4993 = vpow2.f32 %v3635_v29  ;;  %v8403_v29 = vpop.f32.mrf.mxu1  ;;  %v3288_v39 = vadd.f32 %v8333_v55, %v8254_v50  ;;  %v4455_v32 = vadd.f32 %v8346_v23, %v8326_v53  ;;  %v3290_v53 = vadd.f32 %v8353_v7, %v8269_v33 }
 0x810   :  { %v4970_v13 = vpop.eup %4969  ;;  %4145 = vst [vmem:[%s8663_s18 + $0x320] sm:$0xff] %v4968_v44  ;;  %4995 = vrcp.f32 %v3929_v56  ;;  %v8417_v56 = vpop.f32.mrf.mxu0  ;;  %v3533_v22 = vsub.f32 0.0, %v3437_v12 }
 0x811   :  { %v4972_v10 = vpop.eup %4971  ;;  %4144 = vst [vmem:[%s8663_s18 + $0x318] sm:$0xff] %v4970_v13  ;;  %4997 = vpow2.f32 %v3637_v26  ;;  %v3284_v26 = vadd.f32 %v8313_v35, %v8269_v33  ;;  %v8421_v54 = vpop.f32.mrf.mxu1  ;;  %v3442_v9 = vadd.f32 %v4455_v32, %v8273_v24 }
 0x812   :  { %v4974_v5 = vpop.eup %4973  ;;  %4146 = vst [vmem:[%s8663_s18 + $0x328] sm:$0xff] %v4972_v10  ;;  %4999 = vpow2.f32 %v3647_v52  ;;  %v3677_v52 = vmul.f32 1.442695, %v3525_v21  ;;  %v8426_v23 = vpop.f32.mrf.mxu0  ;;  %v3302_v21 = vadd.f32 %v8403_v29, %v8269_v33 }
 0x813   :  { %v4976_v14 = vpop.eup %4975  ;;  %4150 = vst [vmem:[%s8663_s18 + $0x348] sm:$0xff] %v4974_v5  ;;  %5001 = vpow2.f32 %v3649_v6  ;;  %v3526_v6 = vsub.f32 0.0, %v3432_v31  ;;  %v3532_v10 = vsub.f32 0.0, %v3284_v26 }
 0x814   :  { %v4978_v61 = vpop.eup %4977  ;;  %4152 = vst [vmem:[%s8663_s18 + $0x358] sm:$0xff] %v4976_v14  ;;  %5003 = vpow2.f32 %v3651_v8  ;;  %v3531_v8 = vsub.f32 0.0, %v3282_v62 }
 0x815   :  { %v4980_v1 = vpop.eup %4979  ;;  %v3825_v17 = vadd.f32 1.0, %v4978_v61  ;;  %5005 = vpow2.f32 %v3661_v20  ;;  %v4458_v61 = vadd.f32 %v8378_v57, %v8361_v4  ;;  %v3539_v4 = vsub.f32 0.0, %v3290_v53 }
 0x816   :  { %v4982_v51 = vpop.eup %4981  ;;  %v3826_v3 = vadd.f32 1.0, %v4980_v1  ;;  %5007 = vpow2.f32 %v3663_v48  ;;  %v3538_v48 = vsub.f32 0.0, %v3288_v39  ;;  %v8431_v1 = vpop.f32.mrf.mxu1  ;;  %v3689_v7 = vmul.f32 1.442695, %v3531_v8 }
 0x817   :  { %v4984_v63 = vpop.eup %4983  ;;  %5009 = vrcp.f32 %v3825_v17  ;;  %v3827_v37 = vadd.f32 1.0, %v4982_v51  ;;  %v3296_v57 = vadd.f32 %v8385_v45, %v8269_v33  ;;  %v3693_v45 = vmul.f32 1.442695, %v3533_v22 }
 0x818   :  { %v4986_v58 = vpop.eup %4985  ;;  %5011 = vrcp.f32 %v3826_v3  ;;  %v3832_v11 = vadd.f32 1.0, %v4984_v63  ;;  %v3679_v3 = vmul.f32 1.442695, %v3526_v6 }
 0x819   :  { %v4988_v41 = vpop.eup %4987  ;;  %4151 = vst [vmem:[%s8663_s18 + $0x350] sm:$0xff] %v4986_v58  ;;  %5013 = vrcp.f32 %v3827_v37  ;;  %v3691_v37 = vmul.f32 1.442695, %v3532_v10  ;;  %v4461_v58 = vadd.f32 %v8401_v19, %v8392_v16  ;;  %v3703_v16 = vmul.f32 1.442695, %v3538_v48 }
 0x81a   :  { %v4990_v38 = vpop.eup %4989  ;;  %5015 = vrcp.f32 %v3832_v11  ;;  %v3833_v34 = vadd.f32 1.0, %v4988_v41  ;;  %v8445_v11 = vpop.f32.mrf.mxu0  ;;  %v3447_v41 = vadd.f32 %v4458_v61, %v8273_v24  ;;  %v3300_v19 = vadd.f32 %v8394_v27, %v8254_v50 }
 0x81b   :  { %v4992_v18 = vpop.eup %4991  ;;  %v3834_v59 = vadd.f32 1.0, %v4990_v38  ;;  %5017 = vpow2.f32 %v3665_v15  ;;  %v3294_v15 = vadd.f32 %v8367_v30, %v8254_v50  ;;  %v3540_v30 = vsub.f32 0.0, %v3442_v9  ;;  %v8452_v38 = vpop.f32.mrf.mxu1 }
 0x81c   :  { %v4994_v47 = vpop.eup %4993  ;;  %5019 = vrcp.f32 %v3833_v34  ;;  %v3839_v42 = vadd.f32 1.0, %v4992_v18  ;;  %v3546_v31 = vsub.f32 0.0, %v3296_v57  ;;  %v3452_v43 = vadd.f32 %v4461_v58, %v8273_v24 }
 0x81d   :  { %v4996_v49 = vpop.eup %4995  ;;  %5021 = vrcp.f32 %v3834_v59  ;;  %v3840_v2 = vadd.f32 1.0, %v4994_v47  ;;  %v3707_v29 = vmul.f32 1.442695, %v3540_v30  ;;  %v8471_v62 = vpop.f32.mrf.mxu1  ;;  %v4464_v61 = vadd.f32 %v8426_v23, %v8417_v56 }
 0x81e   :  { %v4998_v25 = vpop.eup %4997  ;;  %4153 = vst [vmem:[%s8663_s18 + $0x360] sm:$0xff] %v4996_v49  ;;  %5023 = vrcp.f32 %v3839_v42  ;;  %v3705_v42 = vmul.f32 1.442695, %v3539_v4  ;;  %v8465_v49 = vpop.f32.mrf.mxu0 }
 0x81f   :  { %v5000_v46 = vpop.eup %4999  ;;  %5025 = vrcp.f32 %v3840_v2  ;;  %v3841_v36 = vadd.f32 1.0, %v4998_v25  ;;  %v3547_v2 = vsub.f32 0.0, %v3447_v41  ;;  %v3552_v25 = vsub.f32 0.0, %v3300_v19  ;;  %v8487_v8 = vpop.f32.mrf.mxu1 }
 0x820   :  { %v5002_v35 = vpop.eup %5001  ;;  %v3846_v44 = vadd.f32 1.0, %v5000_v46  ;;  %5027 = vpow2.f32 %v3675_v28  ;;  %v3545_v28 = vsub.f32 0.0, %v3294_v15  ;;  %v8479_v6 = vpop.f32.mrf.mxu0  ;;  %v3457_v4 = vadd.f32 %v4464_v61, %v8273_v24 }
 0x821   :  { %v5004_v13 = vpop.eup %5003  ;;  %5029 = vrcp.f32 %v3841_v36  ;;  %v3847_v55 = vadd.f32 1.0, %v5002_v35  ;;  %v3553_v36 = vsub.f32 0.0, %v3302_v21  ;;  %v3719_v35 = vmul.f32 1.442695, %v3546_v31 }
 0x822   :  { %v5006_v20 = vpop.eup %5005  ;;  %5031 = vrcp.f32 %v3846_v44  ;;  %v3848_v5 = vadd.f32 1.0, %v5004_v13  ;;  %v3717_v46 = vmul.f32 1.442695, %v3545_v28  ;;  %v3554_v44 = vsub.f32 0.0, %v3452_v43 }
 0x823   :  { %v5008_v14 = vpop.eup %5007  ;;  %5033 = vrcp.f32 %v3847_v55  ;;  %v3853_v40 = vadd.f32 1.0, %v5006_v20  ;;  %v3721_v13 = vmul.f32 1.442695, %v3547_v2  ;;  %v3306_v55 = vadd.f32 %v8421_v54, %v8254_v50 }
 0x824   :  { %v5010_v17 = vpop.eup %5009  ;;  %5035 = vrcp.f32 %v3848_v5  ;;  %v3854_v51 = vadd.f32 1.0, %v5008_v14  ;;  %v3731_v20 = vmul.f32 1.442695, %v3552_v25  ;;  %v3733_v48 = vmul.f32 1.442695, %v3553_v36  ;;  %v4469_v14 = vpop.f32.mrf.mxu0 }
 0x825   :  { %v5012_v63 = vpop.eup %5011  ;;  %4049 = vst [vmem:[%s8663_s18 + $0x20] sm:$0xff] %v5010_v17  ;;  %5037 = vrcp.f32 %v3853_v40  ;;  %v3735_v54 = vmul.f32 1.442695, %v3554_v44  ;;  %v3559_v9 = vsub.f32 0.0, %v3306_v55  ;;  %v3319_v17 = vpop.f32.mrf.mxu1  ;;  %v3312_v28 = vadd.f32 %v8452_v38, %v8254_v50 }
 0x826   :  { %v5014_v0 = vpop.eup %5013  ;;  %4050 = vst [vmem:[%s8663_s18 + $0x28] sm:$0xff] %v5012_v63  ;;  %5039 = vrcp.f32 %v3854_v51  ;;  %v4471_v15 = vpop.f32.mrf.mxu0  ;;  %v4470_v38 = vadd.f32 %v4469_v14, %v8479_v6 }
 0x827   :  { %v5016_v60 = vpop.eup %5015  ;;  %4051 = vst.msk [vmem:[%s8663_s18 + $0x30] sm:$0xff] %vm379_vm0, %v5014_v0  ;;  %5041 = vpow2.f32 %v3677_v52  ;;  %v3745_v23 = vmul.f32 1.442695, %v3559_v9  ;;  %v3323_v57 = vpop.f32.mrf.mxu1 }
 0x828   :  { %v5018_v34 = vpop.eup %5017  ;;  %4056 = vst [vmem:[%s8663_s18 + $0x58] sm:$0xff] %v5016_v60  ;;  %5043 = vpow2.f32 %v3679_v3  ;;  %v3308_v3 = vadd.f32 %v8431_v1, %v8269_v33  ;;  %v4467_v1 = vadd.f32 %v8465_v49, %v8445_v11  ;;  %v3314_v11 = vadd.f32 %v8471_v62, %v8269_v33 }
 0x829   :  { %v5020_v18 = vpop.eup %5019  ;;  %v3855_v59 = vadd.f32 1.0, %v5018_v34  ;;  %5045 = vpow2.f32 %v3689_v7  ;;  %v3325_v21 = vpop.f32.mrf.mxu1  ;;  %v3318_v62 = vadd.f32 %v8487_v8, %v8254_v50  ;;  %v3324_v8 = vadd.f32 %v3323_v57, %v8254_v50 }
 0x82a   :  { %v5022_v47 = vpop.eup %5021  ;;  %4057 = vst [vmem:[%s8663_s18 + $0x60] sm:$0xff] %v5020_v18  ;;  %5047 = vpow2.f32 %v3691_v37  ;;  %v3560_v30 = vsub.f32 0.0, %v3308_v3  ;;  %v3462_v49 = vadd.f32 %v4467_v1, %v8273_v24 }
 0x82b   :  { %v5024_v27 = vpop.eup %5023  ;;  %4058 = vst.msk [vmem:[%s8663_s18 + $0x68] sm:$0xff] %vm379_vm0, %v5022_v47  ;;  %5049 = vrcp.f32 %v3855_v59  ;;  %v3561_v59 = vsub.f32 0.0, %v3457_v4  ;;  %v3329_v36 = vpop.f32.mrf.mxu1  ;;  %v3580_v4 = vsub.f32 0.0, %v3324_v8 }
 0x82c   :  { %v5026_v26 = vpop.eup %5025  ;;  %4063 = vst [vmem:[%s8663_s18 + $0x90] sm:$0xff] %v5024_v27  ;;  %5051 = vpow2.f32 %v3693_v45  ;;  %v3747_v31 = vmul.f32 1.442695, %v3560_v30  ;;  %v3568_v6 = vsub.f32 0.0, %v3462_v49  ;;  %v3330_v57 = vadd.f32 %v3329_v36, %v8254_v50 }
 0x82d   :  { %v5028_v39 = vpop.eup %5027  ;;  %4064 = vst [vmem:[%s8663_s18 + $0x98] sm:$0xff] %v5026_v26  ;;  %5053 = vpow2.f32 %v3703_v16  ;;  %v4472_v16 = vpop.f32.mrf.mxu0 }
 0x82e   :  { %v5030_v52 = vpop.eup %5029  ;;  %v3860_v32 = vadd.f32 1.0, %v5028_v39  ;;  %5055 = vpow2.f32 %v3705_v42  ;;  %v3749_v39 = vmul.f32 1.442695, %v3561_v59 }
 0x82f   :  { %v5032_v12 = vpop.eup %5031  ;;  %4065 = vst.msk [vmem:[%s8663_s18 + $0xa0] sm:$0xff] %vm379_vm0, %v5030_v52  ;;  %5057 = vpow2.f32 %v3707_v29  ;;  %v4474_v2 = vpop.f32.mrf.mxu0 }
 0x830   :  { %v5034_v10 = vpop.eup %5033  ;;  %4070 = vst [vmem:[%s8663_s18 + $0xc8] sm:$0xff] %v5032_v12  ;;  %5059 = vrcp.f32 %v3860_v32 }
 0x831   :  { %v5036_v5 = vpop.eup %5035  ;;  %4071 = vst [vmem:[%s8663_s18 + $0xd0] sm:$0xff] %v5034_v10  ;;  %5061 = vpow2.f32 %v3717_v46  ;;  %v3566_v46 = vsub.f32 0.0, %v3312_v28 }
 0x832   :  { %v5038_v53 = vpop.eup %5037  ;;  %4072 = vst.msk [vmem:[%s8663_s18 + $0xd8] sm:$0xff] %vm379_vm0, %v5036_v5  ;;  %5063 = vpow2.f32 %v3719_v35  ;;  %v3320_v35 = vadd.f32 %v3319_v17, %v8269_v33  ;;  %v4473_v5 = vadd.f32 %v4472_v16, %v4471_v15  ;;  %v3573_v17 = vsub.f32 0.0, %v3318_v62 }
 0x833   :  { %v5040_v40 = vpop.eup %5039  ;;  %4077 = vst [vmem:[%s8663_s18 + $0x100] sm:$0xff] %v5038_v53  ;;  %5065 = vpow2.f32 %v3721_v13  ;;  %v3567_v13 = vsub.f32 0.0, %v3314_v11  ;;  %v3759_v14 = vmul.f32 1.442695, %v3566_v46  ;;  %v3763_v15 = vmul.f32 1.442695, %v3568_v6 }
 0x834   :  { %v5042_v51 = vpop.eup %5041  ;;  %4078 = vst [vmem:[%s8663_s18 + $0x108] sm:$0xff] %v5040_v40  ;;  %5067 = vpow2.f32 %v3731_v20  ;;  %v3467_v20 = vadd.f32 %v4470_v38, %v8273_v24  ;;  %v3331_v40 = vpop.f32.mrf.mxu1  ;;  %v3773_v30 = vmul.f32 1.442695, %v3573_v17 }
 0x835   :  { %v5044_v22 = vpop.eup %5043  ;;  %v3861_v63 = vadd.f32 1.0, %v5042_v51  ;;  %5069 = vpow2.f32 %v3733_v48  ;;  %v4475_v48 = vpop.f32.mrf.mxu0  ;;  %v3574_v51 = vsub.f32 0.0, %v3320_v35  ;;  %v3332_v1 = vadd.f32 %v3331_v40, %v8269_v33 }
 0x836   :  { %v5046_v7 = vpop.eup %5045  ;;  %v3862_v37 = vadd.f32 1.0, %v5044_v22  ;;  %5071 = vpow2.f32 %v3735_v54  ;;  %v3761_v22 = vmul.f32 1.442695, %v3567_v13 }
 0x837   :  { %v5048_v0 = vpop.eup %5047  ;;  %5073 = vrcp.f32 %v3861_v63  ;;  %v3867_v56 = vadd.f32 1.0, %v5046_v7  ;;  %v3326_v63 = vadd.f32 %v3325_v21, %v8269_v33  ;;  %v4476_v7 = vadd.f32 %v4475_v48, %v4474_v2 }
 0x838   :  { %v5050_v58 = vpop.eup %5049  ;;  %5075 = vrcp.f32 %v3862_v37  ;;  %v3868_v60 = vadd.f32 1.0, %v5048_v0  ;;  %v3575_v0 = vsub.f32 0.0, %v3467_v20  ;;  %v3588_v11 = vsub.f32 0.0, %v3332_v1 }
 0x839   :  { %v5052_v41 = vpop.eup %5051  ;;  %4079 = vst.msk [vmem:[%s8663_s18 + $0x110] sm:$0xff] %vm379_vm0, %v5050_v58  ;;  %5077 = vrcp.f32 %v3867_v56  ;;  %v3472_v56 = vadd.f32 %v4473_v5, %v8273_v24  ;;  %v3335_v58 = vpop.f32.mrf.mxu1  ;;  %v3581_v16 = vsub.f32 0.0, %v3326_v63 }
 0x83a   :  { %v5054_v34 = vpop.eup %5053  ;;  %5079 = vrcp.f32 %v3868_v60  ;;  %v3869_v45 = vadd.f32 1.0, %v5052_v41  ;;  %v3775_v41 = vmul.f32 1.442695, %v3574_v51  ;;  %v3777_v28 = vmul.f32 1.442695, %v3575_v0 }
 0x83b   :  { %v5056_v19 = vpop.eup %5055  ;;  %v3874_v18 = vadd.f32 1.0, %v5054_v34  ;;  %5081 = vpow2.f32 %v3745_v23  ;;  %v3582_v21 = vsub.f32 0.0, %v3472_v56  ;;  %v3337_v49 = vpop.f32.mrf.mxu1  ;;  %v3803_v35 = vmul.f32 1.442695, %v3588_v11 }
 0x83c   :  { %v5058_v47 = vpop.eup %5057  ;;  %5083 = vrcp.f32 %v3869_v45  ;;  %v3875_v42 = vadd.f32 1.0, %v5056_v19  ;;  %v3477_v19 = vadd.f32 %v4476_v7, %v8273_v24 }
 0x83d   :  { %v5060_v43 = vpop.eup %5059  ;;  %5085 = vrcp.f32 %v3874_v18  ;;  %v3876_v27 = vadd.f32 1.0, %v5058_v47  ;;  %v4477_v18 = vpop.f32.mrf.mxu0  ;;  %v3336_v47 = vadd.f32 %v3335_v58, %v8254_v50  ;;  %v3789_v50 = vmul.f32 1.442695, %v3581_v16 }
 0x83e   :  { %v5062_v29 = vpop.eup %5061  ;;  %4084 = vst [vmem:[%s8663_s18 + $0x138] sm:$0xff] %v5060_v43  ;;  %5087 = vrcp.f32 %v3875_v42  ;;  %v3587_v43 = vsub.f32 0.0, %v3330_v57  ;;  %v3589_v38 = vsub.f32 0.0, %v3477_v19 }
 0x83f   :  { %v5064_v26 = vpop.eup %5063  ;;  %5089 = vrcp.f32 %v3876_v27  ;;  %v3881_v25 = vadd.f32 1.0, %v5062_v29  ;;  %v4478_v2 = vpop.f32.mrf.mxu0  ;;  %v3594_v46 = vsub.f32 0.0, %v3336_v47 }
 0x840   :  { %v5066_v52 = vpop.eup %5065  ;;  %v3882_v32 = vadd.f32 1.0, %v5064_v26  ;;  %5091 = vpow2.f32 %v3747_v31  ;;  %v3787_v31 = vmul.f32 1.442695, %v3580_v4  ;;  %v3805_v13 = vmul.f32 1.442695, %v3589_v38 }
 0x841   :  { %v5068_v44 = vpop.eup %5067  ;;  %5093 = vrcp.f32 %v3881_v25  ;;  %v3883_v12 = vadd.f32 1.0, %v5066_v52  ;;  %v3801_v52 = vmul.f32 1.442695, %v3587_v43 }
 0x842   :  { %v5070_v55 = vpop.eup %5069  ;;  %5095 = vrcp.f32 %v3882_v32  ;;  %v3888_v10 = vadd.f32 1.0, %v5068_v44  ;;  %v3338_v32 = vadd.f32 %v3337_v49, %v8269_v33  ;;  %v4479_v44 = vadd.f32 %v4478_v2, %v4477_v18 }
 0x843   :  { %v5072_v53 = vpop.eup %5071  ;;  %5097 = vrcp.f32 %v3883_v12  ;;  %v3889_v54 = vadd.f32 1.0, %v5070_v55  ;;  %v3815_v33 = vmul.f32 1.442695, %v3594_v46 }
 0x844   :  { %v5074_v9 = vpop.eup %5073  ;;  %5099 = vrcp.f32 %v3888_v10  ;;  %v3890_v61 = vadd.f32 1.0, %v5072_v53  ;;  %v3595_v10 = vsub.f32 0.0, %v3338_v32  ;;  %v3482_v5 = vadd.f32 %v4479_v44, %v8273_v24 }
 0x845   :  { %v5076_v3 = vpop.eup %5075  ;;  %4085 = vst [vmem:[%s8663_s18 + $0x140] sm:$0xff] %v5074_v9  ;;  %5101 = vrcp.f32 %v3889_v54 }
 0x846   :  { %v5078_v37 = vpop.eup %5077  ;;  %4086 = vst.msk [vmem:[%s8663_s18 + $0x148] sm:$0xff] %vm379_vm0, %v5076_v3  ;;  %5103 = vrcp.f32 %v3890_v61  ;;  %v3817_v9 = vmul.f32 1.442695, %v3595_v10  ;;  %v3596_v51 = vsub.f32 0.0, %v3482_v5 }
 0x847   :  { %v5080_v23 = vpop.eup %5079  ;;  %4091 = vst [vmem:[%s8663_s18 + $0x170] sm:$0xff] %v5078_v37  ;;  %5105 = vpow2.f32 %v3749_v39  ;;  %v3791_v39 = vmul.f32 1.442695, %v3582_v21 }
 0x848   :  { %v5082_v60 = vpop.eup %5081  ;;  %4092 = vst [vmem:[%s8663_s18 + $0x178] sm:$0xff] %v5080_v23  ;;  %5107 = vpow2.f32 %v3759_v14  ;;  %v3819_v0 = vmul.f32 1.442695, %v3596_v51 }
 0x849   :  { %v5084_v34 = vpop.eup %5083  ;;  %v3895_v45 = vadd.f32 1.0, %v5082_v60  ;;  %5109 = vpow2.f32 %v3761_v22 }
 0x84a   :  { %v5086_v59 = vpop.eup %5085  ;;  %4093 = vst.msk [vmem:[%s8663_s18 + $0x180] sm:$0xff] %vm379_vm0, %v5084_v34  ;;  %5111 = vpow2.f32 %v3763_v15 }
 0x84b   :  { %v5088_v42 = vpop.eup %5087  ;;  %4098 = vst [vmem:[%s8663_s18 + $0x1a8] sm:$0xff] %v5086_v59  ;;  %5113 = vrcp.f32 %v3895_v45 }
 0x84c   :  { %v5090_v27 = vpop.eup %5089  ;;  %4099 = vst [vmem:[%s8663_s18 + $0x1b0] sm:$0xff] %v5088_v42  ;;  %5115 = vpow2.f32 %v3773_v30 }
 0x84d   :  { %v5092_v29 = vpop.eup %5091  ;;  %4100 = vst.msk [vmem:[%s8663_s18 + $0x1b8] sm:$0xff] %vm379_vm0, %v5090_v27  ;;  %5117 = vpow2.f32 %v3775_v41 }
 0x84e   :  { %v5094_v26 = vpop.eup %5093  ;;  %v3896_v25 = vadd.f32 1.0, %v5092_v29  ;;  %5119 = vpow2.f32 %v3777_v28 }
 0x84f   :  { %v5096_v36 = vpop.eup %5095  ;;  %4105 = vst [vmem:[%s8663_s18 + $0x1e0] sm:$0xff] %v5094_v26  ;;  %5121 = vpow2.f32 %v3787_v31 }
 0x850   :  { %v5098_v62 = vpop.eup %5097  ;;  %4106 = vst [vmem:[%s8663_s18 + $0x1e8] sm:$0xff] %v5096_v36  ;;  %5123 = vrcp.f32 %v3896_v25 }
 0x851   :  { %v5100_v12 = vpop.eup %5099  ;;  %4107 = vst.msk [vmem:[%s8663_s18 + $0x1f0] sm:$0xff] %vm379_vm0, %v5098_v62  ;;  %5125 = vpow2.f32 %v3789_v50 }
 0x852   :  { %v5102_v6 = vpop.eup %5101  ;;  %4112 = vst [vmem:[%s8663_s18 + $0x218] sm:$0xff] %v5100_v12  ;;  %5127 = vpow2.f32 %v3791_v39 }
 0x853   :  { %v5104_v55 = vpop.eup %5103  ;;  %4113 = vst [vmem:[%s8663_s18 + $0x220] sm:$0xff] %v5102_v6  ;;  %5129 = vpow2.f32 %v3801_v52 }
 0x854   :  { %v5106_v20 = vpop.eup %5105  ;;  %4114 = vst.msk [vmem:[%s8663_s18 + $0x228] sm:$0xff] %vm379_vm0, %v5104_v55  ;;  %5131 = vpow2.f32 %v3803_v35 }
 0x855   :  { %v5108_v48 = vpop.eup %5107  ;;  %v3897_v53 = vadd.f32 1.0, %v5106_v20  ;;  %5133 = vpow2.f32 %v3805_v13 }
 0x856   :  { %v5110_v54 = vpop.eup %5109  ;;  %v3902_v14 = vadd.f32 1.0, %v5108_v48  ;;  %5135 = vpow2.f32 %v3815_v33 }
 0x857   :  { %v5112_v8 = vpop.eup %5111  ;;  %5137 = vrcp.f32 %v3897_v53  ;;  %v3903_v40 = vadd.f32 1.0, %v5110_v54 }
 0x858   :  { %v5114_v61 = vpop.eup %5113  ;;  %5139 = vrcp.f32 %v3902_v14  ;;  %v3904_v17 = vadd.f32 1.0, %v5112_v8 }
 0x859   :  { %v5116_v3 = vpop.eup %5115  ;;  %4119 = vst [vmem:[%s8663_s18 + $0x250] sm:$0xff] %v5114_v61  ;;  %5141 = vrcp.f32 %v3903_v40 }
 0x85a   :  { %v5118_v24 = vpop.eup %5117  ;;  %5143 = vrcp.f32 %v3904_v17  ;;  %v3909_v22 = vadd.f32 1.0, %v5116_v3 }
 0x85b   :  { %v5120_v63 = vpop.eup %5119  ;;  %v3910_v7 = vadd.f32 1.0, %v5118_v24  ;;  %5145 = vpow2.f32 %v3817_v9 }
 0x85c   :  { %v5122_v37 = vpop.eup %5121  ;;  %5147 = vrcp.f32 %v3909_v22  ;;  %v3911_v15 = vadd.f32 1.0, %v5120_v63 }
 0x85d   :  { %v5124_v56 = vpop.eup %5123  ;;  %5149 = vrcp.f32 %v3910_v7  ;;  %v3916_v23 = vadd.f32 1.0, %v5122_v37 }
 0x85e   :  { %v5126_v4 = vpop.eup %5125  ;;  %4120 = vst [vmem:[%s8663_s18 + $0x258] sm:$0xff] %v5124_v56  ;;  %5151 = vrcp.f32 %v3911_v15 }
 0x85f   :  { %v5128_v57 = vpop.eup %5127  ;;  %5153 = vrcp.f32 %v3916_v23  ;;  %v3917_v58 = vadd.f32 1.0, %v5126_v4 }
 0x860   :  { %v5130_v60 = vpop.eup %5129  ;;  %v3918_v30 = vadd.f32 1.0, %v5128_v57  ;;  %5155 = vpow2.f32 %v3819_v0 }
 0x861   :  { %v5132_v41 = vpop.eup %5131  ;;  %5157 = vrcp.f32 %v3917_v58  ;;  %v3923_v1 = vadd.f32 1.0, %v5130_v60 }
 0x862   :  { %v5134_v34 = vpop.eup %5133  ;;  %5159 = vrcp.f32 %v3918_v30  ;;  %v3924_v45 = vadd.f32 1.0, %v5132_v41 }
 0x863   :  { %v5136_v16 = vpop.eup %5135  ;;  %5161 = vrcp.f32 %v3923_v1  ;;  %v3925_v19 = vadd.f32 1.0, %v5134_v34 }
 0x864   :  { %v5138_v18 = vpop.eup %5137  ;;  %5163 = vrcp.f32 %v3924_v45  ;;  %v3930_v59 = vadd.f32 1.0, %v5136_v16 }
 0x865   :  { %v5140_v28 = vpop.eup %5139  ;;  %4121 = vst.msk [vmem:[%s8663_s18 + $0x260] sm:$0xff] %vm379_vm0, %v5138_v18  ;;  %5165 = vrcp.f32 %v3925_v19 }
 0x866   :  { %v5142_v21 = vpop.eup %5141  ;;  %4126 = vst [vmem:[%s8663_s18 + $0x288] sm:$0xff] %v5140_v28  ;;  %5167 = vrcp.f32 %v3930_v59 }
 0x867   :  { %v5144_v47 = vpop.eup %5143  ;;  %4127 = vst [vmem:[%s8663_s18 + $0x290] sm:$0xff] %v5142_v21 }
 0x868   :  { %v5146_v42 = vpop.eup %5145  ;;  %4128 = vst.msk [vmem:[%s8663_s18 + $0x298] sm:$0xff] %vm379_vm0, %v5144_v47 }
 0x869   :  { %v5148_v31 = vpop.eup %5147  ;;  %v3931_v43 = vadd.f32 1.0, %v5146_v42 }
 0x86a   :  { %v5150_v27 = vpop.eup %5149  ;;  %4133 = vst [vmem:[%s8663_s18 + $0x2c0] sm:$0xff] %v5148_v31 }
 0x86b   :  { %v5152_v11 = vpop.eup %5151  ;;  %4134 = vst [vmem:[%s8663_s18 + $0x2c8] sm:$0xff] %v5150_v27  ;;  %5169 = vrcp.f32 %v3931_v43 }
 0x86c   :  { %v5154_v49 = vpop.eup %5153  ;;  %4135 = vst.msk [vmem:[%s8663_s18 + $0x2d0] sm:$0xff] %vm379_vm0, %v5152_v11 }
 0x86d   :  { %v5156_v29 = vpop.eup %5155  ;;  %4140 = vst [vmem:[%s8663_s18 + $0x2f8] sm:$0xff] %v5154_v49 }
 0x86e   :  { %v5158_v50 = vpop.eup %5157  ;;  %v3932_v38 = vadd.f32 1.0, %v5156_v29 }
 0x86f   :  { %v5160_v2 = vpop.eup %5159  ;;  %4141 = vst [vmem:[%s8663_s18 + $0x300] sm:$0xff] %v5158_v50 }
 0x870   :  { %v5162_v26 = vpop.eup %5161  ;;  %4142 = vst.msk [vmem:[%s8663_s18 + $0x308] sm:$0xff] %vm379_vm0, %v5160_v2  ;;  %5171 = vrcp.f32 %v3932_v38 }
 0x871   :  { %v5164_v25 = vpop.eup %5163  ;;  %4147 = vst [vmem:[%s8663_s18 + $0x330] sm:$0xff] %v5162_v26 }
 0x872   :  { %v5166_v39 = vpop.eup %5165  ;;  %4148 = vst [vmem:[%s8663_s18 + $0x338] sm:$0xff] %v5164_v25 }
 0x873   :  { %v5168_v46 = vpop.eup %5167  ;;  %4149 = vst.msk [vmem:[%s8663_s18 + $0x340] sm:$0xff] %vm379_vm0, %v5166_v39 }
 0x874   :  { %4154 = vst [vmem:[%s8663_s18 + $0x368] sm:$0xff] %v5168_v46 }
 0x878   :  { %v5170_v36 = vpop.eup %5169 }
 0x879   :  { %4155 = vst [vmem:[%s8663_s18 + $0x370] sm:$0xff] %v5170_v36 }
 0x87d   :  { %v5172_v52 = vpop.eup %5171 }
 0x87e   :  { %4156 = vst.msk [vmem:[%s8663_s18 + $0x378] sm:$0xff] %vm379_vm0, %v5172_v52 }

</bundles_post_ra>
